<compile_context>
chip_gen: v5e
topology: v5e:2x2
jax: 0.10.0
libtpu: 0.0.40
codegen_flags: <defaults>
</compile_context>

<pallas_src>
import jax
import jax.numpy as jnp
import numpy as np
from jax.experimental import pallas as pl
from jax.experimental.pallas import tpu as pltpu

BN_EPS = 1e-5


# ----------------------------- Pallas kernels ------------------------------ #

def conv3x3_stats_kernel(xp_ref, w_ref, y_ref, stats_ref):
    """3x3 conv as ONE K=9*Cin matmul + per-tile BN partial statistics.

    xp_ref:    (1, H+2, W+2, Cin)  zero-padded input tile (f32)
    w_ref:     (9*Cin, Cout)       packed conv weight (bf16), row=(dy*3+dx)*Cin+ci
    y_ref:     (1, H*W, Cout)      raw (pre-BN) conv output (f32)
    stats_ref: (1, 2, Cout)        per-tile [sum, sum_of_squares] over rows (f32)
    """
    _, hp, wp, cin = xp_ref.shape
    h, w = hp - 2, wp - 2
    # in-VMEM im2col: 9 shifted views of the padded tile -> (H*W, 9*Cin)
    taps = [xp_ref[0, dy:dy + h, dx:dx + w, :].reshape(h * w, cin)
            for dy in range(3) for dx in range(3)]
    patches = jnp.concatenate(taps, axis=-1).astype(jnp.bfloat16)
    acc = jnp.dot(patches, w_ref[...], preferred_element_type=jnp.float32)
    y_ref[0] = acc
    s = jnp.sum(acc, axis=0, keepdims=True)
    ss = jnp.sum(acc * acc, axis=0, keepdims=True)
    stats_ref[0] = jnp.concatenate([s, ss], axis=0)


def bn_relu_conv3x3_stats_kernel(y_in_ref, ab_ref, w_ref, y_ref, stats_ref,
                                 pad_ref):
    """Apply folded BN + ReLU to the previous conv output, zero-pad in VMEM,
    then 3x3 conv as one K=9*C matmul + BN partial statistics.

    y_in_ref:  (1, H*W, C)    raw conv output of previous layer (f32)
    ab_ref:    (2, C)         rows: [scale, shift] of folded BN affine (f32)
    w_ref:     (9*C, Cout)    packed conv weight (bf16)
    y_ref:     (1, H*W, Cout) raw conv output (f32)
    stats_ref: (1, 2, Cout)   per-tile [sum, sumsq] (f32)
    pad_ref:   VMEM scratch (H+2, W+2, C) f32, zero-padded activated tile
    """
    hp, wp, c = pad_ref.shape
    h, w = hp - 2, wp - 2
    act = jnp.maximum(y_in_ref[0] * ab_ref[0:1, :] + ab_ref[1:2, :], 0.0)
    pad_ref[...] = jnp.zeros_like(pad_ref)
    pad_ref[1:1 + h, 1:1 + w, :] = act.reshape(h, w, c)
    taps = [pad_ref[dy:dy + h, dx:dx + w, :].reshape(h * w, c)
            for dy in range(3) for dx in range(3)]
    patches = jnp.concatenate(taps, axis=-1).astype(jnp.bfloat16)
    acc = jnp.dot(patches, w_ref[...], preferred_element_type=jnp.float32)
    y_ref[0] = acc
    s = jnp.sum(acc, axis=0, keepdims=True)
    ss = jnp.sum(acc * acc, axis=0, keepdims=True)
    stats_ref[0] = jnp.concatenate([s, ss], axis=0)


def bn_relu_dual_deconv_kernel(x_ref, y_in_ref, ab_ref, w_ref, b_ref, out_ref):
    """Apply folded BN2 + ReLU, then shortcut-deconv + up-deconv (k=2, s=2)
    fused into ONE matmul over concatenated [x, h2] channels, bias, final ReLU.

    x_ref:    (1, H, W, Cin)      unpadded block input (f32)
    y_in_ref: (1, H*W, Cout)      raw conv2 output (f32)
    ab_ref:   (2, Cout)           folded BN2 affine [scale, shift]
    w_ref:    (Cin+Cout, 4*Ch)    packed deconv weights (bf16), col=(p*2+q)*Ch+c
    b_ref:    (1, 4*Ch)           (b_sc + b_up) tiled over the 4 sub-pixels
    out_ref:  (1, H*W, 4*Ch)      pre-pixel-shuffle output (f32)
    """
    _, h, w, cin = x_ref.shape
    h2 = jnp.maximum(y_in_ref[0] * ab_ref[0:1, :] + ab_ref[1:2, :], 0.0)
    xin = x_ref[0].reshape(h * w, cin)
    cat = jnp.concatenate([xin, h2], axis=-1).astype(jnp.bfloat16)
    y = jnp.dot(cat, w_ref[...], preferred_element_type=jnp.float32) + b_ref[...]
    out_ref[0] = jnp.maximum(y, 0.0)


# ------------------------------ JAX wrapper -------------------------------- #

def _bn_fold(stats, gamma, beta, m):
    """Reduce per-tile [sum, sumsq] -> folded affine rows [scale, shift]."""
    s = jnp.sum(stats[:, 0, :], axis=0)
    ss = jnp.sum(stats[:, 1, :], axis=0)
    mean = s / m
    var = ss / m - mean * mean                 # biased variance (PyTorch BN)
    scale = gamma * jax.lax.rsqrt(var + BN_EPS)
    shift = beta - mean * scale
    return jnp.stack([scale, shift], axis=0).astype(jnp.float32)   # (2, C)


def resunet_mid_stage_block(x_nchw, p):
    n, cin, h, w = x_nchw.shape
    cout = p['w1'].shape[-1]
    ch = p['w_sc'].shape[1]
    m = n * h * w

    x = jnp.transpose(x_nchw, (0, 2, 3, 1))                       # NCHW -> NHWC
    xp = jnp.pad(x, ((0, 0), (1, 1), (1, 1), (0, 0)))             # zero pad=1

    # weight packing (bf16 for the MXU).  conv: row = (dy*3+dx)*Cin + ci.
    # NOTE: conv biases b1/b2 are intentionally NOT used -- a per-channel
    # constant before training-mode BN is cancelled by the mean subtraction.
    w1p = p['w1'].reshape(9 * cin, cout).astype(jnp.bfloat16)
    w2p = p['w2'].reshape(9 * cout, cout).astype(jnp.bfloat16)
    # deconv: (Cin, Ch, 2, 2) -> (Cin, 4*Ch), column = (p*2+q)*Ch + c
    wsc = jnp.transpose(p['w_sc'], (0, 2, 3, 1)).reshape(cin, 4 * ch)
    wup = jnp.transpose(p['w_up'], (0, 2, 3, 1)).reshape(cout, 4 * ch)
    wcat = jnp.concatenate([wsc, wup], axis=0).astype(jnp.bfloat16)
    bcat = jnp.tile(p['b_sc'] + p['b_up'], 4).reshape(1, 4 * ch).astype(jnp.float32)

    parallel = pltpu.CompilerParams(dimension_semantics=("parallel",))

    # ---- stage 1: conv1 + BN1 partial stats (gridded over batch) ---------- #
    y1, st1 = pl.pallas_call(
        conv3x3_stats_kernel,
        grid=(n,),
        in_specs=[
            pl.BlockSpec((1, h + 2, w + 2, cin), lambda i: (i, 0, 0, 0)),
            pl.BlockSpec((9 * cin, cout), lambda i: (0, 0)),
        ],
        out_specs=(
            pl.BlockSpec((1, h * w, cout), lambda i: (i, 0, 0)),
            pl.BlockSpec((1, 2, cout), lambda i: (i, 0, 0)),
        ),
        out_shape=(
            jax.ShapeDtypeStruct((n, h * w, cout), jnp.float32),
            jax.ShapeDtypeStruct((n, 2, cout), jnp.float32),
        ),
        compiler_params=parallel,
        cost_estimate=pl.CostEstimate(
            flops=2 * m * 9 * cin * cout, transcendentals=0,
            bytes_accessed=4 * (xp.size + m * cout + n * 2 * cout) + 2 * w1p.size),
    )(xp, w1p)
    ab1 = _bn_fold(st1, p['g1'], p['be1'], m)

    # ---- stage 2: BN1-apply + ReLU + conv2 + BN2 partial stats ------------ #
    y2, st2 = pl.pallas_call(
        bn_relu_conv3x3_stats_kernel,
        grid=(n,),
        in_specs=[
            pl.BlockSpec((1, h * w, cout), lambda i: (i, 0, 0)),
            pl.BlockSpec((2, cout), lambda i: (0, 0)),
            pl.BlockSpec((9 * cout, cout), lambda i: (0, 0)),
        ],
        out_specs=(
            pl.BlockSpec((1, h * w, cout), lambda i: (i, 0, 0)),
            pl.BlockSpec((1, 2, cout), lambda i: (i, 0, 0)),
        ),
        out_shape=(
            jax.ShapeDtypeStruct((n, h * w, cout), jnp.float32),
            jax.ShapeDtypeStruct((n, 2, cout), jnp.float32),
        ),
        scratch_shapes=[pltpu.VMEM((h + 2, w + 2, cout), jnp.float32)],
        compiler_params=parallel,
        cost_estimate=pl.CostEstimate(
            flops=2 * m * 9 * cout * cout, transcendentals=0,
            bytes_accessed=4 * (2 * m * cout + n * 2 * cout) + 2 * w2p.size),
    )(y1, ab1, w2p)
    ab2 = _bn_fold(st2, p['g2'], p['be2'], m)

    # ---- stage 3: BN2-apply + ReLU + fused (shortcut ⊕ up) deconv + ReLU --- #
    y = pl.pallas_call(
        bn_relu_dual_deconv_kernel,
        grid=(n,),
        in_specs=[
            pl.BlockSpec((1, h, w, cin), lambda i: (i, 0, 0, 0)),
            pl.BlockSpec((1, h * w, cout), lambda i: (i, 0, 0)),
            pl.BlockSpec((2, cout), lambda i: (0, 0)),
            pl.BlockSpec((cin + cout, 4 * ch), lambda i: (0, 0)),
            pl.BlockSpec((1, 4 * ch), lambda i: (0, 0)),
        ],
        out_specs=pl.BlockSpec((1, h * w, 4 * ch), lambda i: (i, 0, 0)),
        out_shape=jax.ShapeDtypeStruct((n, h * w, 4 * ch), jnp.float32),
        compiler_params=parallel,
        cost_estimate=pl.CostEstimate(
            flops=2 * m * (cin + cout) * 4 * ch, transcendentals=0,
            bytes_accessed=4 * (m * (cin + cout) + m * 4 * ch)),
    )(x, y2, ab2, wcat, bcat)

    # stride-2 scatter (pixel shuffle) + NHWC->NCHW: pure layout glue.  At these
    # channel widths (< 128 lanes) folding it into the out BlockSpec cannot make
    # the stores lane-dense, so it stays in XLA on the small output tensor.
    y = y.reshape(n, h, w, 2, 2, ch)
    y = jnp.transpose(y, (0, 1, 3, 2, 4, 5)).reshape(n, 2 * h, 2 * w, ch)
    return jnp.transpose(y, (0, 3, 1, 2))                          # -> NCHW


# ------------------------------ pure-JAX reference ------------------------- #

def _ref_conv_bn_relu(x, w_hwio, b, gamma, beta):
    y = jax.lax.conv_general_dilated(
        x, w_hwio, (1, 1), 'SAME',
        dimension_numbers=('NHWC', 'HWIO', 'NHWC')) + b
    mean = jnp.mean(y, axis=(0, 1, 2))
    var = jnp.mean((y - mean) ** 2, axis=(0, 1, 2))
    y = (y - mean) * (gamma / jnp.sqrt(var + BN_EPS)) + beta
    return jnp.maximum(y, 0.0)


def _ref_deconv2x2(x, w, b):          # w: (Cin, Ch, 2, 2), stride 2, kernel 2
    n, h, ww, _ = x.shape
    ch = w.shape[1]
    y = jnp.einsum('nhwi,icpq->nhpwqc', x, w).reshape(n, 2 * h, 2 * ww, ch) + b
    return y


def reference_block(x_nchw, p):
    x = jnp.transpose(x_nchw, (0, 2, 3, 1))
    sc = _ref_deconv2x2(x, p['w_sc'], p['b_sc'])
    h = _ref_conv_bn_relu(x, p['w1'], p['b1'], p['g1'], p['be1'])
    h = _ref_conv_bn_relu(h, p['w2'], p['b2'], p['g2'], p['be2'])
    up = _ref_deconv2x2(h, p['w_up'], p['b_up'])
    out = jnp.maximum(sc + up, 0.0)
    return jnp.transpose(out, (0, 3, 1, 2))


# ---------------------------------- main ----------------------------------- #

if __name__ == "__main__":
    N, Cin, H, W = 2, 4, 16, 16
    Cout = 8
    Ch = Cout // 2

    keys = jax.random.split(jax.random.PRNGKey(0), 13)
    x_nchw = jax.random.normal(keys[0], (N, Cin, H, W), jnp.float32)

    params = dict(
        # conv1 / bn1
        w1=0.2 * jax.random.normal(keys[1], (3, 3, Cin, Cout), jnp.float32),
        b1=0.1 * jax.random.normal(keys[2], (Cout,), jnp.float32),
        g1=1.0 + 0.1 * jax.random.normal(keys[3], (Cout,), jnp.float32),
        be1=0.1 * jax.random.normal(keys[4], (Cout,), jnp.float32),
        # conv2 / bn2
        w2=0.2 * jax.random.normal(keys[5], (3, 3, Cout, Cout), jnp.float32),
        b2=0.1 * jax.random.normal(keys[6], (Cout,), jnp.float32),
        g2=1.0 + 0.1 * jax.random.normal(keys[7], (Cout,), jnp.float32),
        be2=0.1 * jax.random.normal(keys[8], (Cout,), jnp.float32),
        # up_conv: ConvTranspose2d(Cout, Ch, 2, 2)  (PyTorch weight layout)
        w_up=0.2 * jax.random.normal(keys[9], (Cout, Ch, 2, 2), jnp.float32),
        b_up=0.1 * jax.random.normal(keys[10], (Ch,), jnp.float32),
        # shortcut: ConvTranspose2d(Cin, Ch, 2, 2)
        w_sc=0.2 * jax.random.normal(keys[11], (Cin, Ch, 2, 2), jnp.float32),
        b_sc=0.1 * jax.random.normal(keys[12], (Ch,), jnp.float32),
    )

    fwd = jax.jit(resunet_mid_stage_block)
    out = jax.block_until_ready(fwd(x_nchw, params))
    assert out.shape == (N, Ch, 2 * H, 2 * W), out.shape

    ref = jax.block_until_ready(jax.jit(reference_block)(x_nchw, params))
    # tolerance sized for bf16 MXU operands (f32 accumulation) vs f32 reference
    np.testing.assert_allclose(np.asarray(out), np.asarray(ref),
                               atol=5e-2, rtol=5e-2)
    print("KERNEL_OK")
</pallas_src>

<mosaic_0001>
module attributes {stable_mosaic.version = 11 : i64} {
  func.func @bn_relu_conv3x3_stats_kernel(%arg0: i32, %arg1: memref<1x256x8xf32, #tpu.memory_space<vmem>>, %arg2: memref<2x8xf32, #tpu.memory_space<vmem>>, %arg3: memref<72x8xbf16, #tpu.memory_space<vmem>>, %arg4: memref<1x256x8xf32, #tpu.memory_space<vmem>>, %arg5: memref<1x2x8xf32, #tpu.memory_space<vmem>>, %arg6: memref<18x18x8xf32, #tpu.memory_space<vmem>>) attributes {dimension_semantics = [#tpu.dimension_semantics<parallel>], iteration_bounds = array<i64: 2>, scalar_prefetch = 0 : i64, scratch_operands = 1 : i64, tpu.core_type = #tpu.core_type<tc>, window_params = [{transform_indices = @transform_0, window_bounds = array<i64: 1, 256, 8>}, {pipeline_mode = #tpu.pipeline_mode<synchronous>, transform_indices = @transform_1, window_bounds = array<i64: 2, 8>}, {pipeline_mode = #tpu.pipeline_mode<synchronous>, transform_indices = @transform_2, window_bounds = array<i64: 72, 8>}, {transform_indices = @transform_3, window_bounds = array<i64: 1, 256, 8>}, {transform_indices = @transform_4, window_bounds = array<i64: 1, 2, 8>}]} {
    %c0 = arith.constant 0 : index
    %c0_0 = arith.constant 0 : index
    %c0_1 = arith.constant 0 : index
    %0 = vector.load %arg1[%c0, %c0_0, %c0_1] : memref<1x256x8xf32, #tpu.memory_space<vmem>>, vector<1x256x8xf32>
    %1 = vector.shape_cast %0 : vector<1x256x8xf32> to vector<256x8xf32>
    %c0_2 = arith.constant 0 : index
    %c0_3 = arith.constant 0 : index
    %2 = vector.load %arg2[%c0_2, %c0_3] : memref<2x8xf32, #tpu.memory_space<vmem>>, vector<1x8xf32>
    %3 = vector.broadcast %2 : vector<1x8xf32> to vector<256x8xf32>
    %4 = arith.mulf %1, %3 : vector<256x8xf32>
    %c1 = arith.constant 1 : index
    %c0_4 = arith.constant 0 : index
    %5 = vector.load %arg2[%c1, %c0_4] : memref<2x8xf32, #tpu.memory_space<vmem>>, vector<1x8xf32>
    %6 = vector.broadcast %5 : vector<1x8xf32> to vector<256x8xf32>
    %7 = arith.addf %4, %6 : vector<256x8xf32>
    %cst = arith.constant 0.000000e+00 : f32
    %8 = vector.broadcast %cst : f32 to vector<256x8xf32>
    %9 = arith.maximumf %7, %8 : vector<256x8xf32>
    %cst_5 = arith.constant 0.000000e+00 : f32
    %10 = vector.broadcast %cst_5 : f32 to vector<18x18x8xf32>
    %c0_6 = arith.constant 0 : index
    %c0_7 = arith.constant 0 : index
    %c0_8 = arith.constant 0 : index
    %11 = vector.load %arg6[%c0_6, %c0_7, %c0_8] : memref<18x18x8xf32, #tpu.memory_space<vmem>>, vector<18x18x8xf32>
    tpu.vector_store %arg6[%c0_6, %c0_7, %c0_8], %10 {strides = array<i32>} : memref<18x18x8xf32, #tpu.memory_space<vmem>>, vector<18x18x8xf32>,
    %12 = vector.shape_cast %9 : vector<256x8xf32> to vector<16x16x8xf32>
    %c1_9 = arith.constant 1 : index
    %c1_10 = arith.constant 1 : index
    %c0_11 = arith.constant 0 : index
    %13 = vector.load %arg6[%c1_9, %c1_10, %c0_11] : memref<18x18x8xf32, #tpu.memory_space<vmem>>, vector<16x16x8xf32>
    tpu.vector_store %arg6[%c1_9, %c1_10, %c0_11], %12 {strides = array<i32>} : memref<18x18x8xf32, #tpu.memory_space<vmem>>, vector<16x16x8xf32>,
    %c0_12 = arith.constant 0 : index
    %c0_13 = arith.constant 0 : index
    %c0_14 = arith.constant 0 : index
    %14 = vector.load %arg6[%c0_12, %c0_13, %c0_14] : memref<18x18x8xf32, #tpu.memory_space<vmem>>, vector<16x16x8xf32>
    %15 = vector.shape_cast %14 : vector<16x16x8xf32> to vector<256x8xf32>
    %c0_15 = arith.constant 0 : index
    %c1_16 = arith.constant 1 : index
    %c0_17 = arith.constant 0 : index
    %16 = vector.load %arg6[%c0_15, %c1_16, %c0_17] : memref<18x18x8xf32, #tpu.memory_space<vmem>>, vector<16x16x8xf32>
    %17 = vector.shape_cast %16 : vector<16x16x8xf32> to vector<256x8xf32>
    %c0_18 = arith.constant 0 : index
    %c2 = arith.constant 2 : index
    %c0_19 = arith.constant 0 : index
    %18 = vector.load %arg6[%c0_18, %c2, %c0_19] : memref<18x18x8xf32, #tpu.memory_space<vmem>>, vector<16x16x8xf32>
    %19 = vector.shape_cast %18 : vector<16x16x8xf32> to vector<256x8xf32>
    %c1_20 = arith.constant 1 : index
    %c0_21 = arith.constant 0 : index
    %c0_22 = arith.constant 0 : index
    %20 = vector.load %arg6[%c1_20, %c0_21, %c0_22] : memref<18x18x8xf32, #tpu.memory_space<vmem>>, vector<16x16x8xf32>
    %21 = vector.shape_cast %20 : vector<16x16x8xf32> to vector<256x8xf32>
    %c1_23 = arith.constant 1 : index
    %c1_24 = arith.constant 1 : index
    %c0_25 = arith.constant 0 : index
    %22 = vector.load %arg6[%c1_23, %c1_24, %c0_25] : memref<18x18x8xf32, #tpu.memory_space<vmem>>, vector<16x16x8xf32>
    %23 = vector.shape_cast %22 : vector<16x16x8xf32> to vector<256x8xf32>
    %c1_26 = arith.constant 1 : index
    %c2_27 = arith.constant 2 : index
    %c0_28 = arith.constant 0 : index
    %24 = vector.load %arg6[%c1_26, %c2_27, %c0_28] : memref<18x18x8xf32, #tpu.memory_space<vmem>>, vector<16x16x8xf32>
    %25 = vector.shape_cast %24 : vector<16x16x8xf32> to vector<256x8xf32>
    %c2_29 = arith.constant 2 : index
    %c0_30 = arith.constant 0 : index
    %c0_31 = arith.constant 0 : index
    %26 = vector.load %arg6[%c2_29, %c0_30, %c0_31] : memref<18x18x8xf32, #tpu.memory_space<vmem>>, vector<16x16x8xf32>
    %27 = vector.shape_cast %26 : vector<16x16x8xf32> to vector<256x8xf32>
    %c2_32 = arith.constant 2 : index
    %c1_33 = arith.constant 1 : index
    %c0_34 = arith.constant 0 : index
    %28 = vector.load %arg6[%c2_32, %c1_33, %c0_34] : memref<18x18x8xf32, #tpu.memory_space<vmem>>, vector<16x16x8xf32>
    %29 = vector.shape_cast %28 : vector<16x16x8xf32> to vector<256x8xf32>
    %c2_35 = arith.constant 2 : index
    %c2_36 = arith.constant 2 : index
    %c0_37 = arith.constant 0 : index
    %30 = vector.load %arg6[%c2_35, %c2_36, %c0_37] : memref<18x18x8xf32, #tpu.memory_space<vmem>>, vector<16x16x8xf32>
    %31 = vector.shape_cast %30 : vector<16x16x8xf32> to vector<256x8xf32>
    %32 = tpu.concatenate %15, %17, %19, %21, %23, %25, %27, %29, %31 in 1 : vector<256x8xf32>, vector<256x8xf32>, vector<256x8xf32>, vector<256x8xf32>, vector<256x8xf32>, vector<256x8xf32>, vector<256x8xf32>, vector<256x8xf32>, vector<256x8xf32> -> vector<256x72xf32>
    %33 = arith.truncf %32 : vector<256x72xf32> to vector<256x72xbf16>
    %c0_38 = arith.constant 0 : index
    %c0_39 = arith.constant 0 : index
    %34 = vector.load %arg3[%c0_38, %c0_39] : memref<72x8xbf16, #tpu.memory_space<vmem>>, vector<72x8xbf16>
    %cst_40 = arith.constant dense<0.000000e+00> : vector<256x8xf32>
    %35 = tpu.matmul %33, %34, %cst_40 {dimension_numbers = #tpu.dot_dimension_numbers<[1], [0], [0], [1], [0, 0, 1, 1], [], []>} : vector<256x72xbf16>, vector<72x8xbf16>, vector<256x8xf32> -> vector<256x8xf32>
    %c0_41 = arith.constant 0 : index
    %c0_42 = arith.constant 0 : index
    %c0_43 = arith.constant 0 : index
    %36 = vector.load %arg4[%c0_41, %c0_42, %c0_43] : memref<1x256x8xf32, #tpu.memory_space<vmem>>, vector<1x256x8xf32>
    %37 = vector.shape_cast %36 : vector<1x256x8xf32> to vector<256x8xf32>
    %38 = vector.shape_cast %35 : vector<256x8xf32> to vector<1x256x8xf32>
    tpu.vector_store %arg4[%c0_41, %c0_42, %c0_43], %38 {strides = array<i32>} : memref<1x256x8xf32, #tpu.memory_space<vmem>>, vector<1x256x8xf32>,
    %cst_44 = arith.constant dense<0.000000e+00> : vector<8xf32>
    %39 = vector.multi_reduction <add>, %35, %cst_44 [0] : vector<256x8xf32> to vector<8xf32>
    %40 = vector.shape_cast %39 : vector<8xf32> to vector<1x8xf32>
    %41 = arith.mulf %35, %35 : vector<256x8xf32>
    %cst_45 = arith.constant dense<0.000000e+00> : vector<8xf32>
    %42 = vector.multi_reduction <add>, %41, %cst_45 [0] : vector<256x8xf32> to vector<8xf32>
    %43 = vector.shape_cast %42 : vector<8xf32> to vector<1x8xf32>
    %44 = tpu.concatenate %40, %43 in 0 : vector<1x8xf32>, vector<1x8xf32> -> vector<2x8xf32>
    %c0_46 = arith.constant 0 : index
    %c0_47 = arith.constant 0 : index
    %c0_48 = arith.constant 0 : index
    %45 = vector.load %arg5[%c0_46, %c0_47, %c0_48] : memref<1x2x8xf32, #tpu.memory_space<vmem>>, vector<1x2x8xf32>
    %46 = vector.shape_cast %45 : vector<1x2x8xf32> to vector<2x8xf32>
    %47 = vector.shape_cast %44 : vector<2x8xf32> to vector<1x2x8xf32>
    tpu.vector_store %arg5[%c0_46, %c0_47, %c0_48], %47 {strides = array<i32>} : memref<1x2x8xf32, #tpu.memory_space<vmem>>, vector<1x2x8xf32>,
    return
  }
  func.func @transform_0(%arg0: i32) -> (i32, i32, i32) {
    %c0_i32 = arith.constant 0 : i32
    %c0_i32_0 = arith.constant 0 : i32
    %c0_i32_1 = arith.constant 0 : i32
    return %arg0, %c0_i32, %c0_i32_0 : i32, i32, i32
  }
  func.func @transform_1(%arg0: i32) -> (i32, i32) {
    %c0_i32 = arith.constant 0 : i32
    %c0_i32_0 = arith.constant 0 : i32
    %c0_i32_1 = arith.constant 0 : i32
    return %c0_i32, %c0_i32_0 : i32, i32
  }
  func.func @transform_2(%arg0: i32) -> (i32, i32) {
    %c0_i32 = arith.constant 0 : i32
    %c0_i32_0 = arith.constant 0 : i32
    %c0_i32_1 = arith.constant 0 : i32
    return %c0_i32, %c0_i32_0 : i32, i32
  }
  func.func @transform_3(%arg0: i32) -> (i32, i32, i32) {
    %c0_i32 = arith.constant 0 : i32
    %c0_i32_0 = arith.constant 0 : i32
    %c0_i32_1 = arith.constant 0 : i32
    return %arg0, %c0_i32, %c0_i32_0 : i32, i32, i32
  }
  func.func @transform_4(%arg0: i32) -> (i32, i32, i32) {
    %c0_i32 = arith.constant 0 : i32
    %c0_i32_0 = arith.constant 0 : i32
    %c0_i32_1 = arith.constant 0 : i32
    return %arg0, %c0_i32, %c0_i32_0 : i32, i32, i32
  }
}

module attributes {stable_mosaic.version = 11 : i64} {
  func.func @conv3x3_stats_kernel(%arg0: i32, %arg1: memref<1x18x18x4xf32, #tpu.memory_space<vmem>>, %arg2: memref<36x8xbf16, #tpu.memory_space<vmem>>, %arg3: memref<1x256x8xf32, #tpu.memory_space<vmem>>, %arg4: memref<1x2x8xf32, #tpu.memory_space<vmem>>) attributes {dimension_semantics = [#tpu.dimension_semantics<parallel>], iteration_bounds = array<i64: 2>, scalar_prefetch = 0 : i64, scratch_operands = 0 : i64, tpu.core_type = #tpu.core_type<tc>, window_params = [{transform_indices = @transform_0, window_bounds = array<i64: 1, 18, 18, 4>}, {pipeline_mode = #tpu.pipeline_mode<synchronous>, transform_indices = @transform_1, window_bounds = array<i64: 36, 8>}, {transform_indices = @transform_2, window_bounds = array<i64: 1, 256, 8>}, {transform_indices = @transform_3, window_bounds = array<i64: 1, 2, 8>}]} {
    %c0 = arith.constant 0 : index
    %c0_0 = arith.constant 0 : index
    %c0_1 = arith.constant 0 : index
    %c0_2 = arith.constant 0 : index
    %0 = vector.load %arg1[%c0, %c0_0, %c0_1, %c0_2] : memref<1x18x18x4xf32, #tpu.memory_space<vmem>>, vector<1x16x16x4xf32>
    %1 = vector.shape_cast %0 : vector<1x16x16x4xf32> to vector<16x16x4xf32>
    %2 = vector.shape_cast %1 : vector<16x16x4xf32> to vector<256x4xf32>
    %c0_3 = arith.constant 0 : index
    %c0_4 = arith.constant 0 : index
    %c1 = arith.constant 1 : index
    %c0_5 = arith.constant 0 : index
    %3 = vector.load %arg1[%c0_3, %c0_4, %c1, %c0_5] : memref<1x18x18x4xf32, #tpu.memory_space<vmem>>, vector<1x16x16x4xf32>
    %4 = vector.shape_cast %3 : vector<1x16x16x4xf32> to vector<16x16x4xf32>
    %5 = vector.shape_cast %4 : vector<16x16x4xf32> to vector<256x4xf32>
    %c0_6 = arith.constant 0 : index
    %c0_7 = arith.constant 0 : index
    %c2 = arith.constant 2 : index
    %c0_8 = arith.constant 0 : index
    %6 = vector.load %arg1[%c0_6, %c0_7, %c2, %c0_8] : memref<1x18x18x4xf32, #tpu.memory_space<vmem>>, vector<1x16x16x4xf32>
    %7 = vector.shape_cast %6 : vector<1x16x16x4xf32> to vector<16x16x4xf32>
    %8 = vector.shape_cast %7 : vector<16x16x4xf32> to vector<256x4xf32>
    %c0_9 = arith.constant 0 : index
    %c1_10 = arith.constant 1 : index
    %c0_11 = arith.constant 0 : index
    %c0_12 = arith.constant 0 : index
    %9 = vector.load %arg1[%c0_9, %c1_10, %c0_11, %c0_12] : memref<1x18x18x4xf32, #tpu.memory_space<vmem>>, vector<1x16x16x4xf32>
    %10 = vector.shape_cast %9 : vector<1x16x16x4xf32> to vector<16x16x4xf32>
    %11 = vector.shape_cast %10 : vector<16x16x4xf32> to vector<256x4xf32>
    %c0_13 = arith.constant 0 : index
    %c1_14 = arith.constant 1 : index
    %c1_15 = arith.constant 1 : index
    %c0_16 = arith.constant 0 : index
    %12 = vector.load %arg1[%c0_13, %c1_14, %c1_15, %c0_16] : memref<1x18x18x4xf32, #tpu.memory_space<vmem>>, vector<1x16x16x4xf32>
    %13 = vector.shape_cast %12 : vector<1x16x16x4xf32> to vector<16x16x4xf32>
    %14 = vector.shape_cast %13 : vector<16x16x4xf32> to vector<256x4xf32>
    %c0_17 = arith.constant 0 : index
    %c1_18 = arith.constant 1 : index
    %c2_19 = arith.constant 2 : index
    %c0_20 = arith.constant 0 : index
    %15 = vector.load %arg1[%c0_17, %c1_18, %c2_19, %c0_20] : memref<1x18x18x4xf32, #tpu.memory_space<vmem>>, vector<1x16x16x4xf32>
    %16 = vector.shape_cast %15 : vector<1x16x16x4xf32> to vector<16x16x4xf32>
    %17 = vector.shape_cast %16 : vector<16x16x4xf32> to vector<256x4xf32>
    %c0_21 = arith.constant 0 : index
    %c2_22 = arith.constant 2 : index
    %c0_23 = arith.constant 0 : index
    %c0_24 = arith.constant 0 : index
    %18 = vector.load %arg1[%c0_21, %c2_22, %c0_23, %c0_24] : memref<1x18x18x4xf32, #tpu.memory_space<vmem>>, vector<1x16x16x4xf32>
    %19 = vector.shape_cast %18 : vector<1x16x16x4xf32> to vector<16x16x4xf32>
    %20 = vector.shape_cast %19 : vector<16x16x4xf32> to vector<256x4xf32>
    %c0_25 = arith.constant 0 : index
    %c2_26 = arith.constant 2 : index
    %c1_27 = arith.constant 1 : index
    %c0_28 = arith.constant 0 : index
    %21 = vector.load %arg1[%c0_25, %c2_26, %c1_27, %c0_28] : memref<1x18x18x4xf32, #tpu.memory_space<vmem>>, vector<1x16x16x4xf32>
    %22 = vector.shape_cast %21 : vector<1x16x16x4xf32> to vector<16x16x4xf32>
    %23 = vector.shape_cast %22 : vector<16x16x4xf32> to vector<256x4xf32>
    %c0_29 = arith.constant 0 : index
    %c2_30 = arith.constant 2 : index
    %c2_31 = arith.constant 2 : index
    %c0_32 = arith.constant 0 : index
    %24 = vector.load %arg1[%c0_29, %c2_30, %c2_31, %c0_32] : memref<1x18x18x4xf32, #tpu.memory_space<vmem>>, vector<1x16x16x4xf32>
    %25 = vector.shape_cast %24 : vector<1x16x16x4xf32> to vector<16x16x4xf32>
    %26 = vector.shape_cast %25 : vector<16x16x4xf32> to vector<256x4xf32>
    %27 = tpu.concatenate %2, %5, %8, %11, %14, %17, %20, %23, %26 in 1 : vector<256x4xf32>, vector<256x4xf32>, vector<256x4xf32>, vector<256x4xf32>, vector<256x4xf32>, vector<256x4xf32>, vector<256x4xf32>, vector<256x4xf32>, vector<256x4xf32> -> vector<256x36xf32>
    %28 = arith.truncf %27 : vector<256x36xf32> to vector<256x36xbf16>
    %c0_33 = arith.constant 0 : index
    %c0_34 = arith.constant 0 : index
    %29 = vector.load %arg2[%c0_33, %c0_34] : memref<36x8xbf16, #tpu.memory_space<vmem>>, vector<36x8xbf16>
    %cst = arith.constant dense<0.000000e+00> : vector<256x8xf32>
    %30 = tpu.matmul %28, %29, %cst {dimension_numbers = #tpu.dot_dimension_numbers<[1], [0], [0], [1], [0, 0, 1, 1], [], []>} : vector<256x36xbf16>, vector<36x8xbf16>, vector<256x8xf32> -> vector<256x8xf32>
    %c0_35 = arith.constant 0 : index
    %c0_36 = arith.constant 0 : index
    %c0_37 = arith.constant 0 : index
    %31 = vector.load %arg3[%c0_35, %c0_36, %c0_37] : memref<1x256x8xf32, #tpu.memory_space<vmem>>, vector<1x256x8xf32>
    %32 = vector.shape_cast %31 : vector<1x256x8xf32> to vector<256x8xf32>
    %33 = vector.shape_cast %30 : vector<256x8xf32> to vector<1x256x8xf32>
    tpu.vector_store %arg3[%c0_35, %c0_36, %c0_37], %33 {strides = array<i32>} : memref<1x256x8xf32, #tpu.memory_space<vmem>>, vector<1x256x8xf32>,
    %cst_38 = arith.constant dense<0.000000e+00> : vector<8xf32>
    %34 = vector.multi_reduction <add>, %30, %cst_38 [0] : vector<256x8xf32> to vector<8xf32>
    %35 = vector.shape_cast %34 : vector<8xf32> to vector<1x8xf32>
    %36 = arith.mulf %30, %30 : vector<256x8xf32>
    %cst_39 = arith.constant dense<0.000000e+00> : vector<8xf32>
    %37 = vector.multi_reduction <add>, %36, %cst_39 [0] : vector<256x8xf32> to vector<8xf32>
    %38 = vector.shape_cast %37 : vector<8xf32> to vector<1x8xf32>
    %39 = tpu.concatenate %35, %38 in 0 : vector<1x8xf32>, vector<1x8xf32> -> vector<2x8xf32>
    %c0_40 = arith.constant 0 : index
    %c0_41 = arith.constant 0 : index
    %c0_42 = arith.constant 0 : index
    %40 = vector.load %arg4[%c0_40, %c0_41, %c0_42] : memref<1x2x8xf32, #tpu.memory_space<vmem>>, vector<1x2x8xf32>
    %41 = vector.shape_cast %40 : vector<1x2x8xf32> to vector<2x8xf32>
    %42 = vector.shape_cast %39 : vector<2x8xf32> to vector<1x2x8xf32>
    tpu.vector_store %arg4[%c0_40, %c0_41, %c0_42], %42 {strides = array<i32>} : memref<1x2x8xf32, #tpu.memory_space<vmem>>, vector<1x2x8xf32>,
    return
  }
  func.func @transform_0(%arg0: i32) -> (i32, i32, i32, i32) {
    %c0_i32 = arith.constant 0 : i32
    %c0_i32_0 = arith.constant 0 : i32
    %c0_i32_1 = arith.constant 0 : i32
    %c0_i32_2 = arith.constant 0 : i32
    return %arg0, %c0_i32, %c0_i32_0, %c0_i32_1 : i32, i32, i32, i32
  }
  func.func @transform_1(%arg0: i32) -> (i32, i32) {
    %c0_i32 = arith.constant 0 : i32
    %c0_i32_0 = arith.constant 0 : i32
    %c0_i32_1 = arith.constant 0 : i32
    return %c0_i32, %c0_i32_0 : i32, i32
  }
  func.func @transform_2(%arg0: i32) -> (i32, i32, i32) {
    %c0_i32 = arith.constant 0 : i32
    %c0_i32_0 = arith.constant 0 : i32
    %c0_i32_1 = arith.constant 0 : i32
    return %arg0, %c0_i32, %c0_i32_0 : i32, i32, i32
  }
  func.func @transform_3(%arg0: i32) -> (i32, i32, i32) {
    %c0_i32 = arith.constant 0 : i32
    %c0_i32_0 = arith.constant 0 : i32
    %c0_i32_1 = arith.constant 0 : i32
    return %arg0, %c0_i32, %c0_i32_0 : i32, i32, i32
  }
}

module attributes {stable_mosaic.version = 11 : i64} {
  func.func @bn_relu_dual_deconv_kernel(%arg0: i32, %arg1: memref<1x16x16x4xf32, #tpu.memory_space<vmem>>, %arg2: memref<1x256x8xf32, #tpu.memory_space<vmem>>, %arg3: memref<2x8xf32, #tpu.memory_space<vmem>>, %arg4: memref<12x16xbf16, #tpu.memory_space<vmem>>, %arg5: memref<1x16xf32, #tpu.memory_space<vmem>>, %arg6: memref<1x256x16xf32, #tpu.memory_space<vmem>>) attributes {dimension_semantics = [#tpu.dimension_semantics<parallel>], iteration_bounds = array<i64: 2>, scalar_prefetch = 0 : i64, scratch_operands = 0 : i64, tpu.core_type = #tpu.core_type<tc>, window_params = [{transform_indices = @transform_0, window_bounds = array<i64: 1, 16, 16, 4>}, {transform_indices = @transform_1, window_bounds = array<i64: 1, 256, 8>}, {pipeline_mode = #tpu.pipeline_mode<synchronous>, transform_indices = @transform_2, window_bounds = array<i64: 2, 8>}, {pipeline_mode = #tpu.pipeline_mode<synchronous>, transform_indices = @transform_3, window_bounds = array<i64: 12, 16>}, {pipeline_mode = #tpu.pipeline_mode<synchronous>, transform_indices = @transform_4, window_bounds = array<i64: 1, 16>}, {transform_indices = @transform_5, window_bounds = array<i64: 1, 256, 16>}]} {
    %c0 = arith.constant 0 : index
    %c0_0 = arith.constant 0 : index
    %c0_1 = arith.constant 0 : index
    %0 = vector.load %arg2[%c0, %c0_0, %c0_1] : memref<1x256x8xf32, #tpu.memory_space<vmem>>, vector<1x256x8xf32>
    %1 = vector.shape_cast %0 : vector<1x256x8xf32> to vector<256x8xf32>
    %c0_2 = arith.constant 0 : index
    %c0_3 = arith.constant 0 : index
    %2 = vector.load %arg3[%c0_2, %c0_3] : memref<2x8xf32, #tpu.memory_space<vmem>>, vector<1x8xf32>
    %3 = vector.broadcast %2 : vector<1x8xf32> to vector<256x8xf32>
    %4 = arith.mulf %1, %3 : vector<256x8xf32>
    %c1 = arith.constant 1 : index
    %c0_4 = arith.constant 0 : index
    %5 = vector.load %arg3[%c1, %c0_4] : memref<2x8xf32, #tpu.memory_space<vmem>>, vector<1x8xf32>
    %6 = vector.broadcast %5 : vector<1x8xf32> to vector<256x8xf32>
    %7 = arith.addf %4, %6 : vector<256x8xf32>
    %cst = arith.constant 0.000000e+00 : f32
    %8 = vector.broadcast %cst : f32 to vector<256x8xf32>
    %9 = arith.maximumf %7, %8 : vector<256x8xf32>
    %c0_5 = arith.constant 0 : index
    %c0_6 = arith.constant 0 : index
    %c0_7 = arith.constant 0 : index
    %c0_8 = arith.constant 0 : index
    %10 = vector.load %arg1[%c0_5, %c0_6, %c0_7, %c0_8] : memref<1x16x16x4xf32, #tpu.memory_space<vmem>>, vector<1x16x16x4xf32>
    %11 = vector.shape_cast %10 : vector<1x16x16x4xf32> to vector<16x16x4xf32>
    %12 = vector.shape_cast %11 : vector<16x16x4xf32> to vector<256x4xf32>
    %13 = tpu.concatenate %12, %9 in 1 : vector<256x4xf32>, vector<256x8xf32> -> vector<256x12xf32>
    %14 = arith.truncf %13 : vector<256x12xf32> to vector<256x12xbf16>
    %c0_9 = arith.constant 0 : index
    %c0_10 = arith.constant 0 : index
    %15 = vector.load %arg4[%c0_9, %c0_10] : memref<12x16xbf16, #tpu.memory_space<vmem>>, vector<12x16xbf16>
    %cst_11 = arith.constant dense<0.000000e+00> : vector<256x16xf32>
    %16 = tpu.matmul %14, %15, %cst_11 {dimension_numbers = #tpu.dot_dimension_numbers<[1], [0], [0], [1], [0, 0, 1, 1], [], []>} : vector<256x12xbf16>, vector<12x16xbf16>, vector<256x16xf32> -> vector<256x16xf32>
    %c0_12 = arith.constant 0 : index
    %c0_13 = arith.constant 0 : index
    %17 = vector.load %arg5[%c0_12, %c0_13] : memref<1x16xf32, #tpu.memory_space<vmem>>, vector<1x16xf32>
    %18 = vector.broadcast %17 : vector<1x16xf32> to vector<256x16xf32>
    %19 = arith.addf %16, %18 : vector<256x16xf32>
    %cst_14 = arith.constant 0.000000e+00 : f32
    %20 = vector.broadcast %cst_14 : f32 to vector<256x16xf32>
    %21 = arith.maximumf %19, %20 : vector<256x16xf32>
    %c0_15 = arith.constant 0 : index
    %c0_16 = arith.constant 0 : index
    %c0_17 = arith.constant 0 : index
    %22 = vector.load %arg6[%c0_15, %c0_16, %c0_17] : memref<1x256x16xf32, #tpu.memory_space<vmem>>, vector<1x256x16xf32>
    %23 = vector.shape_cast %22 : vector<1x256x16xf32> to vector<256x16xf32>
    %24 = vector.shape_cast %21 : vector<256x16xf32> to vector<1x256x16xf32>
    tpu.vector_store %arg6[%c0_15, %c0_16, %c0_17], %24 {strides = array<i32>} : memref<1x256x16xf32, #tpu.memory_space<vmem>>, vector<1x256x16xf32>,
    return
  }
  func.func @transform_0(%arg0: i32) -> (i32, i32, i32, i32) {
    %c0_i32 = arith.constant 0 : i32
    %c0_i32_0 = arith.constant 0 : i32
    %c0_i32_1 = arith.constant 0 : i32
    %c0_i32_2 = arith.constant 0 : i32
    return %arg0, %c0_i32, %c0_i32_0, %c0_i32_1 : i32, i32, i32, i32
  }
  func.func @transform_1(%arg0: i32) -> (i32, i32, i32) {
    %c0_i32 = arith.constant 0 : i32
    %c0_i32_0 = arith.constant 0 : i32
    %c0_i32_1 = arith.constant 0 : i32
    return %arg0, %c0_i32, %c0_i32_0 : i32, i32, i32
  }
  func.func @transform_2(%arg0: i32) -> (i32, i32) {
    %c0_i32 = arith.constant 0 : i32
    %c0_i32_0 = arith.constant 0 : i32
    %c0_i32_1 = arith.constant 0 : i32
    return %c0_i32, %c0_i32_0 : i32, i32
  }
  func.func @transform_3(%arg0: i32) -> (i32, i32) {
    %c0_i32 = arith.constant 0 : i32
    %c0_i32_0 = arith.constant 0 : i32
    %c0_i32_1 = arith.constant 0 : i32
    return %c0_i32, %c0_i32_0 : i32, i32
  }
  func.func @transform_4(%arg0: i32) -> (i32, i32) {
    %c0_i32 = arith.constant 0 : i32
    %c0_i32_0 = arith.constant 0 : i32
    %c0_i32_1 = arith.constant 0 : i32
    return %c0_i32, %c0_i32_0 : i32, i32
  }
  func.func @transform_5(%arg0: i32) -> (i32, i32, i32) {
    %c0_i32 = arith.constant 0 : i32
    %c0_i32_0 = arith.constant 0 : i32
    %c0_i32_1 = arith.constant 0 : i32
    return %arg0, %c0_i32, %c0_i32_0 : i32, i32, i32
  }
}

</mosaic_0001>

<bundles_post_ra>
// kernel: tile.9
= control target key start
LH: loop header
LB: loop body
LE: loop exit
PB: predicated region body
PF: predicated region fallthrough
CT: control target
= control target key end

     0   :  { %s37_s8 = smov 4   ;;  %s38_s9 = smov 8   ;;  %vm7_vm0 = vcmask 31744   ;;  %vm13_vm1 = vcmask 130144   ;;  %vm19_vm2 = vcmask 97344   ;;  %vm25_vm3 = vcmask 64544   ;;  %s55_s0 = inlined_call_operand.vmem [shape: f32[4,4], index: 0, kind: input, shape index: {}]   ;;  %s56_s1 = inlined_call_operand.vmem [shape: f32[1,16], index: 1, kind: output, shape index: {}]  }
   0x1   :  { %v4_v0 = vld [vmem:[%s55_s0] sm:$0xf]  ;;  %s36_s0 = smov 12  }
   0x2   :  { %5 = vst [vmem:[#allocation1] sm:$0xf] %v4_v0 }
   0x9   :  { %v10_v1 = vld [vmem:[#allocation1 + $0x3] sm:$0x1]   ;;  %v22_v2 = vld [vmem:[#allocation1 + $0x1] sm:$0x1]   ;;  %v16_v3 = vld [vmem:[#allocation1 + $0x2] sm:$0x1]  }
   0xa   :  { %11 = vrot.lane.b32.xlu0 %v10_v1, %s36_s0  ;;  %23 = vrot.lane.b32.xlu1 %v22_v2, %s37_s8  ;;  %v6_v4 = vld [vmem:[#allocation1] sm:$0x1]  }
   0xb   :  { %8 = vst.msk [vmem:[#allocation0] sm:$0x1] %vm7_vm0, %v6_v4  }
  0x12   :  { %17 = vrot.lane.b32.xlu0 %v16_v3, %s38_s9 }
  0x7c   :  { %v12_v5 = vpop.permute.xlu0 %11   ;;  %v24_v6 = vpop.permute.xlu1 %23  }
  0x7d   :  { %14 = vst.msk [vmem:[#allocation0] sm:$0x1] %vm13_vm1, %v12_v5  }
  0x84   :  { %v18_v7 = vpop.permute.xlu0 %17  }
  0x85   :  { %20 = vst.msk [vmem:[#allocation0] sm:$0x1] %vm19_vm2, %v18_v7  }
  0x86   :  { %26 = vst.msk [vmem:[#allocation0] sm:$0x1] %vm25_vm3, %v24_v6  }
  0x8d   :  { %v29_v8 = vld [vmem:[#allocation0] sm:$0x1] }
  0x8e   :  { %32 = vst [vmem:[%s56_s1] sm:$0x1] %v29_v8 }

// kernel: tile.8
= control target key start
LH: loop header
LB: loop body
LE: loop exit
PB: predicated region body
PF: predicated region fallthrough
CT: control target
= control target key end

     0   :  { %s22_s0 = inlined_call_operand.vmem [shape: f32[4], index: 0, kind: input, shape index: {}]   ;;  %s23_s1 = inlined_call_operand.vmem [shape: f32[4,4], index: 1, kind: output, shape index: {}]  }
   0x1   :  { %v4_v0 = vld [vmem:[%s22_s0] ss:$0 sm:$0xff] }
   0x2   :  { %5 = vst [vmem:[%s23_s1] sm:$0xf] %v4_v0 }

// kernel: resunet_mid_stage_block.5
= control target key start
LH: loop header
LB: loop body
LE: loop exit
PB: predicated region body
PF: predicated region fallthrough
CT: control target
= control target key end

     0   :  { %s1043_s18 = smov 0   ;;  %s1383_s0 = inlined_call_operand.vmem [shape: f32[2,16,16,4], index: 0, kind: input, shape index: {}]   ;;  %s1384_s1 = inlined_call_operand.vmem [shape: f32[2,256,8], index: 1, kind: input, shape index: {}]   ;;  %s1385_s2 = inlined_call_operand.vmem [shape: f32[2,8], index: 2, kind: input, shape index: {}]   ;;  %s1386_s3 = inlined_call_operand.vmem [shape: bf16[12,16], index: 3, kind: input, shape index: {}]   ;;  %s1387_s4 = inlined_call_operand.vmem [shape: f32[1,16], index: 4, kind: input, shape index: {}]   ;;  %s1388_s5 = inlined_call_operand.vmem [shape: f32[2,256,16], index: 5, kind: output, shape index: {}]  }
   0x1 LB: > { %s872_s19 = sadd.s32 4294967295, %s1010_s18   ;;  %p876_p0 = scmp.ge.s32.totalorder %s1010_s18, 1  ;;  %s1010_s18 = sphi %s1043_s18, %s15_s18  }
   0x2   : > { %p197_p1 = scmp.lt.s32.totalorder %s1010_s18, 3 }
   0x4   : > { %p198_p2 = pnand %p876_p0, %p197_p1 }
   0x5   : > { %p230_p3 = scmp.lt.s32.totalorder (!%p198_p2), %s872_s19, 1  ;;  %s1012_s28 = smov (!%p198_p2), 4  }
   0x6   : > { %201 = sbr.rel (%p198_p2) target bundleno = 344 (0x158), region = 40 }
   0xb   : > { %s1390_s19 = smov (!%p230_p3, %s872_s19), 1  ;;  %v1054_v0 = vld [vmem:[%s1385_s2] ss:$0 sm:$0xff]  ;;  %v1067_v1 = vld [vmem:[%s1385_s2 + $0x1] ss:$0 sm:$0xff]  ;;  %vm647_vm0 = vcmask 1045504  }
   0xc   : > { %s1056_s22 = sshll.u32 %s1390_s19, 8  ;;  %vm538_vm1 = vcmask 31744   ;;  %vm598_vm2 = vcmask 97280   ;;  %vm772_vm3 = vcmask 130048  }
   0xd   : > { %s1062_s25 = scalar_lea.vmem %s1384_s1, %s1056_s22  ;;  %s1191_s10 = scalar_lea.vmem %s1383_s0, %s1056_s22 }
   0xe   : > { %v262_v2 = vld [vmem:[%s1062_s25 + $0x80] sm:$0xff]  ;;  %v263_v3 = vld [vmem:[%s1062_s25 + $0x88] sm:$0xff]  ;;  %v248_v28 = vld [vmem:[%s1062_s25 + $0x10] sm:$0xff]  ;;  %s1283_s15 = scalar_lea.vmem %s1388_s5, %s1056_s22 }
   0xf   : > { %v246_v4 = vld [vmem:[%s1062_s25] sm:$0xff]  ;;  %v296_v5 = vmul.f32 %v1054_v0, %v262_v2  ;;  %v297_v6 = vmul.f32 %v1054_v0, %v263_v3  ;;  %v247_v7 = vld [vmem:[%s1062_s25 + $0x8] sm:$0xff]  ;;  %v249_v29 = vld [vmem:[%s1062_s25 + $0x18] sm:$0xff]  ;;  %v282_v37 = vmul.f32 %v1054_v0, %v248_v28 }
  0x10   : > { %v280_v8 = vmul.f32 %v1054_v0, %v246_v4  ;;  %v270_v9 = vld [vmem:[%s1062_s25 + $0xc0] sm:$0xff]  ;;  %v271_v10 = vld [vmem:[%s1062_s25 + $0xc8] sm:$0xff]  ;;  %v281_v11 = vmul.f32 %v1054_v0, %v247_v7  ;;  %v256_v33 = vld [vmem:[%s1062_s25 + $0x50] sm:$0xff]  ;;  %v283_v38 = vmul.f32 %v1054_v0, %v249_v29 }
  0x11   : > { %v304_v12 = vmul.f32 %v1054_v0, %v270_v9  ;;  %v305_v13 = vmul.f32 %v1054_v0, %v271_v10  ;;  %v254_v14 = vld [vmem:[%s1062_s25 + $0x40] sm:$0xff]  ;;  %v255_v15 = vld [vmem:[%s1062_s25 + $0x48] sm:$0xff]  ;;  %v330_v16 = vadd.f32 %v1067_v1, %v296_v5  ;;  %v331_v17 = vadd.f32 %v1067_v1, %v297_v6  ;;  %v257_v34 = vld [vmem:[%s1062_s25 + $0x58] sm:$0xff] }
  0x12   : > { %v314_v18 = vadd.f32 %v1067_v1, %v280_v8  ;;  %v288_v19 = vmul.f32 %v1054_v0, %v254_v14  ;;  %v315_v20 = vadd.f32 %v1067_v1, %v281_v11  ;;  %v289_v23 = vmul.f32 %v1054_v0, %v255_v15  ;;  %v264_v35 = vld [vmem:[%s1062_s25 + $0x90] sm:$0xff]  ;;  %v265_v43 = vld [vmem:[%s1062_s25 + $0x98] sm:$0xff]  ;;  %v250_v55 = vld [vmem:[%s1062_s25 + $0x20] sm:$0xff] }
  0x13   : > { %v338_v21 = vadd.f32 %v1067_v1, %v304_v12  ;;  %v339_v22 = vadd.f32 %v1067_v1, %v305_v13  ;;  %v362_v24 = vmax.f32 %v330_v16, 0.0  ;;  %v363_v25 = vmax.f32 %v331_v17, 0.0  ;;  %v272_v51 = vld [vmem:[%s1062_s25 + $0xd0] sm:$0xff]  ;;  %v273_v52 = vld [vmem:[%s1062_s25 + $0xd8] sm:$0xff]  ;;  %v274_v60 = vld [vmem:[%s1062_s25 + $0xe0] sm:$0xff] }
  0x14   : > { %v346_v26 = vmax.f32 %v314_v18, 0.0  ;;  %v322_v27 = vadd.f32 %v1067_v1, %v288_v19  ;;  %v347_v30 = vmax.f32 %v315_v20, 0.0  ;;  %v323_v31 = vadd.f32 %v1067_v1, %v289_v23  ;;  %v275_v61 = vld [vmem:[%s1062_s25 + $0xe8] sm:$0xff]  ;;  %v266_v11 = vld [vmem:[%s1062_s25 + $0xa0] sm:$0xff]  ;;  %v269_v28 = vld [vmem:[%s1062_s25 + $0xb8] sm:$0xff] }
  0x15   : > { %v921_v32 = vpack.i.bf16 %v363_v25, %v362_v24  ;;  %v370_v39 = vmax.f32 %v338_v21, 0.0  ;;  %v371_v40 = vmax.f32 %v339_v22, 0.0  ;;  %v290_v44 = vmul.f32 %v1054_v0, %v256_v33  ;;  %v251_v62 = vld [vmem:[%s1062_s25 + $0x28] sm:$0xff]  ;;  %v276_v29 = vld [vmem:[%s1062_s25 + $0xf0] sm:$0xff] }
  0x16   : > { %v931_v36 = vpack.i.bf16 %v347_v30, %v346_v26  ;;  %v354_v41 = vmax.f32 %v322_v27, 0.0  ;;  %v355_v42 = vmax.f32 %v323_v31, 0.0  ;;  %v291_v45 = vmul.f32 %v1054_v0, %v257_v34  ;;  %v267_v12 = vld [vmem:[%s1062_s25 + $0xa8] sm:$0xff]  ;;  %v268_v27 = vld [vmem:[%s1062_s25 + $0xb0] sm:$0xff]  ;;  %v277_v30 = vld [vmem:[%s1062_s25 + $0xf8] sm:$0xff] }
  0x17   : > { %922 = vrot.lane.b32.xlu0 %v921_v32, %s1012_s28  ;;  %v298_v46 = vmul.f32 %v1054_v0, %v264_v35  ;;  %v316_v47 = vadd.f32 %v1067_v1, %v282_v37  ;;  %v317_v48 = vadd.f32 %v1067_v1, %v283_v38  ;;  %v299_v49 = vmul.f32 %v1054_v0, %v265_v43  ;;  %v258_v38 = vld [vmem:[%s1062_s25 + $0x60] sm:$0xff] }
  0x18   : > { %932 = vrot.lane.b32.xlu1 %v931_v36, %s1012_s28  ;;  %v926_v53 = vpack.i.bf16 %v371_v40, %v370_v39  ;;  %v936_v54 = vpack.i.bf16 %v355_v42, %v354_v41  ;;  %v324_v56 = vadd.f32 %v1067_v1, %v290_v44  ;;  %v325_v57 = vadd.f32 %v1067_v1, %v291_v45  ;;  %v259_v39 = vld [vmem:[%s1062_s25 + $0x68] sm:$0xff] }
  0x19   : > { %v332_v50 = vadd.f32 %v1067_v1, %v298_v46  ;;  %v333_v58 = vadd.f32 %v1067_v1, %v299_v49  ;;  %v306_v63 = vmul.f32 %v1054_v0, %v272_v51  ;;  %v307_v2 = vmul.f32 %v1054_v0, %v273_v52  ;;  %v260_v52 = vld [vmem:[%s1062_s25 + $0x70] sm:$0xff] }
  0x1a   : > { %v348_v3 = vmax.f32 %v316_v47, 0.0  ;;  %v349_v4 = vmax.f32 %v317_v48, 0.0  ;;  %v284_v5 = vmul.f32 %v1054_v0, %v250_v55  ;;  %v308_v7 = vmul.f32 %v1054_v0, %v274_v60 }
  0x1b   : > { %v364_v59 = vmax.f32 %v332_v50, 0.0  ;;  %v365_v6 = vmax.f32 %v333_v58, 0.0  ;;  %v309_v8 = vmul.f32 %v1054_v0, %v275_v61  ;;  %v340_v9 = vadd.f32 %v1067_v1, %v306_v63  ;;  %v252_v63 = vld [vmem:[%s1062_s25 + $0x30] sm:$0xff] }
  0x1c   : > { %v341_v10 = vadd.f32 %v1067_v1, %v307_v2  ;;  %v356_v13 = vmax.f32 %v324_v56, 0.0  ;;  %v357_v14 = vmax.f32 %v325_v57, 0.0  ;;  %v285_v15 = vmul.f32 %v1054_v0, %v251_v62  ;;  %v253_v2 = vld [vmem:[%s1062_s25 + $0x38] sm:$0xff] }
  0x1d   : > { %v941_v16 = vpack.i.bf16 %v365_v6, %v364_v59  ;;  %v372_v17 = vmax.f32 %v340_v9, 0.0  ;;  %v300_v19 = vmul.f32 %v1054_v0, %v266_v11  ;;  %v301_v20 = vmul.f32 %v1054_v0, %v267_v12 }
  0x1e   : > { %v373_v18 = vmax.f32 %v341_v10, 0.0  ;;  %v951_v21 = vpack.i.bf16 %v349_v4, %v348_v3  ;;  %v342_v22 = vadd.f32 %v1067_v1, %v308_v7  ;;  %v343_v23 = vadd.f32 %v1067_v1, %v309_v8 }
  0x1f   : > { %927 = vrot.lane.b32.xlu0 %v926_v53, %s1012_s28  ;;  %942 = vrot.lane.b32.xlu2 %v941_v16, %s1012_s28  ;;  %v956_v24 = vpack.i.bf16 %v357_v14, %v356_v13  ;;  %v318_v25 = vadd.f32 %v1067_v1, %v284_v5  ;;  %v319_v26 = vadd.f32 %v1067_v1, %v285_v15  ;;  %v261_v53 = vld [vmem:[%s1062_s25 + $0x78] sm:$0xff] }
  0x20   : > { %937 = vrot.lane.b32.xlu1 %v936_v54, %s1012_s28  ;;  %v946_v31 = vpack.i.bf16 %v373_v18, %v372_v17  ;;  %v334_v32 = vadd.f32 %v1067_v1, %v300_v19  ;;  %v335_v33 = vadd.f32 %v1067_v1, %v301_v20  ;;  %v374_v34 = vmax.f32 %v342_v22, 0.0 }
  0x21   : > { %v375_v35 = vmax.f32 %v343_v23, 0.0  ;;  %v302_v36 = vmul.f32 %v1054_v0, %v268_v27  ;;  %v303_v37 = vmul.f32 %v1054_v0, %v269_v28  ;;  %v350_v40 = vmax.f32 %v318_v25, 0.0  ;;  %v394_v25 = vld [vmem:[%s1191_s10 + $0x80] sm:$0xff] }
  0x22   : > { %v351_v41 = vmax.f32 %v319_v26, 0.0  ;;  %v310_v42 = vmul.f32 %v1054_v0, %v276_v29  ;;  %v311_v43 = vmul.f32 %v1054_v0, %v277_v30  ;;  %v366_v44 = vmax.f32 %v334_v32, 0.0  ;;  %v395_v26 = vld [vmem:[%s1191_s10 + $0x88] sm:$0xff]  ;;  %v378_v30 = vld [vmem:[%s1191_s10] sm:$0xff] }
  0x23   : > { %v367_v45 = vmax.f32 %v335_v33, 0.0  ;;  %v292_v46 = vmul.f32 %v1054_v0, %v258_v38  ;;  %v293_v47 = vmul.f32 %v1054_v0, %v259_v39  ;;  %v966_v48 = vpack.i.bf16 %v375_v35, %v374_v34 }
  0x24   : > { %v336_v49 = vadd.f32 %v1067_v1, %v302_v36  ;;  %v337_v50 = vadd.f32 %v1067_v1, %v303_v37  ;;  %v971_v51 = vpack.i.bf16 %v351_v41, %v350_v40  ;;  %v344_v54 = vadd.f32 %v1067_v1, %v310_v42  ;;  %v402_v42 = vld [vmem:[%s1191_s10 + $0xc0] sm:$0xff] }
  0x25   : > { %v345_v55 = vadd.f32 %v1067_v1, %v311_v43  ;;  %v961_v56 = vpack.i.bf16 %v367_v45, %v366_v44  ;;  %v326_v57 = vadd.f32 %v1067_v1, %v292_v46  ;;  %v327_v58 = vadd.f32 %v1067_v1, %v293_v47  ;;  %v403_v43 = vld [vmem:[%s1191_s10 + $0xc8] sm:$0xff]  ;;  %v386_v47 = vld [vmem:[%s1191_s10 + $0x40] sm:$0xff] }
  0x26   : > { %v368_v59 = vmax.f32 %v336_v49, 0.0  ;;  %v369_v60 = vmax.f32 %v337_v50, 0.0  ;;  %v294_v61 = vmul.f32 %v1054_v0, %v260_v52  ;;  %v295_v62 = vmul.f32 %v1054_v0, %v261_v53 }
  0x27   : > { %952 = vrot.lane.b32.xlu0 %v951_v21, %s1012_s28  ;;  %947 = vrot.lane.b32.xlu2 %v946_v31, %s1012_s28  ;;  %v376_v3 = vmax.f32 %v344_v54, 0.0  ;;  %v377_v4 = vmax.f32 %v345_v55, 0.0  ;;  %v358_v5 = vmax.f32 %v326_v57, 0.0  ;;  %v359_v6 = vmax.f32 %v327_v58, 0.0  ;;  %v908_v21 = vld [vmem:[%s1386_s3] sm:$0x30] }
  0x28   : > { %957 = vrot.lane.b32.xlu1 %v956_v24, %s1012_s28  ;;  %v286_v7 = vmul.f32 %v1054_v0, %v252_v63  ;;  %v287_v8 = vmul.f32 %v1054_v0, %v253_v2  ;;  %v981_v9 = vpack.i.bf16 %v369_v60, %v368_v59  ;;  %v328_v10 = vadd.f32 %v1067_v1, %v294_v61  ;;  %v379_v31 = vld [vmem:[%s1191_s10 + $0x8] sm:$0xff]  ;;  %v396_v58 = vld [vmem:[%s1191_s10 + $0x90] sm:$0xff]  ;;  %v397_v59 = vld [vmem:[%s1191_s10 + $0x98] sm:$0xff] }
  0x29   : > { %v329_v11 = vadd.f32 %v1067_v1, %v295_v62  ;;  %v986_v12 = vpack.i.bf16 %v377_v4, %v376_v3  ;;  %v976_v13 = vpack.i.bf16 %v359_v6, %v358_v5  ;;  %v380_v3 = vld [vmem:[%s1191_s10 + $0x10] sm:$0xff]  ;;  %v381_v4 = vld [vmem:[%s1191_s10 + $0x18] sm:$0xff] }
  0x2a   : > { %v320_v14 = vadd.f32 %v1067_v1, %v286_v7  ;;  %v321_v15 = vadd.f32 %v1067_v1, %v287_v8  ;;  %v360_v16 = vmax.f32 %v328_v10, 0.0  ;;  %v885_v1 = vld [vmem:[%s1386_s3] sm:$0xf] }
  0x2b   : > { %v361_v17 = vmax.f32 %v329_v11, 0.0  ;;  %v886_v22 = vor.u32 %v908_v21, %v885_v1 }
  0x2c   : > { %v352_v0 = vmax.f32 %v320_v14, 0.0  ;;  %v353_v18 = vmax.f32 %v321_v15, 0.0 }
  0x2d   : > { %v996_v19 = vpack.i.bf16 %v361_v17, %v360_v16  ;;  %v649_v23 = vsel %vm647_vm0, %v886_v22, 0  ;;  %v404_v16 = vld [vmem:[%s1191_s10 + $0xd0] sm:$0xff]  ;;  %v405_v17 = vld [vmem:[%s1191_s10 + $0xd8] sm:$0xff] }
  0x2e   : > { %v991_v20 = vpack.i.bf16 %v353_v18, %v352_v0  ;;  %658 = vmatpush.bf16.msra.mxu0 %v649_v23  ;;  %910 = vmatpush.bf16.msra.mxu2 %v649_v23  ;;  %v388_v0 = vld [vmem:[%s1191_s10 + $0x50] sm:$0xff]  ;;  %v389_v18 = vld [vmem:[%s1191_s10 + $0x58] sm:$0xff] }
  0x2f   : > { %967 = vrot.lane.b32.xlu0 %v966_v48, %s1012_s28  ;;  %962 = vrot.lane.b32.xlu2 %v961_v56, %s1012_s28  ;;  %v387_v48 = vld [vmem:[%s1191_s10 + $0x48] sm:$0xff] }
  0x30   : > { %972 = vrot.lane.b32.xlu1 %v971_v51, %s1012_s28  ;;  %909 = vmatpush.bf16.msra.mxu1 %v649_v23 }
  0x31   : > { %911 = vmatpush.bf16.msra.mxu3 %v649_v23 }
  0x37   : > { %982 = vrot.lane.b32.xlu0 %v981_v9, %s1012_s28  ;;  %977 = vrot.lane.b32.xlu2 %v976_v13, %s1012_s28 }
  0x38   : > { %987 = vrot.lane.b32.xlu1 %v986_v12, %s1012_s28 }
  0x3f   : > { %997 = vrot.lane.b32.xlu0 %v996_v19, %s1012_s28  ;;  %992 = vrot.lane.b32.xlu2 %v991_v20, %s1012_s28 }
  0x79   : > { %v943_v36 = vpop.permute.xlu2 %942 }
  0x7a   : > { %v945_v53 = vunpack.i.h.bf16 %v943_v36  ;;  %v944_v54 = vunpack.i.l.bf16 %v943_v36 }
  0x7c   : > { %v557_v62 = vsel %vm538_vm1, %v396_v58, %v944_v54  ;;  %v558_v63 = vsel %vm538_vm1, %v397_v59, %v945_v53 }
  0x7d   : > { %v580_v8 = vpack.c.bf16 %v558_v63, %v557_v62  ;;  %v400_v62 = vld [vmem:[%s1191_s10 + $0xb0] sm:$0xff]  ;;  %v401_v63 = vld [vmem:[%s1191_s10 + $0xb8] sm:$0xff] }
  0x81   : > { %v948_v61 = vpop.permute.xlu2 %947 }
  0x82   : > { %v950_v9 = vunpack.i.h.bf16 %v948_v61  ;;  %v949_v10 = vunpack.i.l.bf16 %v948_v61 }
  0x84   : > { %v565_v19 = vsel %vm538_vm1, %v404_v16, %v949_v10  ;;  %v566_v20 = vsel %vm538_vm1, %v405_v17, %v950_v9  ;;  %v408_v16 = vld [vmem:[%s1191_s10 + $0xf0] sm:$0xff]  ;;  %v409_v17 = vld [vmem:[%s1191_s10 + $0xf8] sm:$0xff] }
  0x89   : > { %v923_v24 = vpop.permute.xlu0 %922  ;;  %v963_v1 = vpop.permute.xlu2 %962 }
  0x8a   : > { %v925_v27 = vunpack.i.h.bf16 %v923_v24  ;;  %v924_v28 = vunpack.i.l.bf16 %v923_v24  ;;  %v933_v29 = vpop.permute.xlu1 %932  ;;  %v584_v24 = vpack.c.bf16 %v566_v20, %v565_v19 }
  0x8b   : > { %v935_v32 = vunpack.i.h.bf16 %v933_v29  ;;  %v934_v33 = vunpack.i.l.bf16 %v933_v29 }
  0x8c   : > { %v555_v34 = vsel %vm538_vm1, %v394_v25, %v924_v28  ;;  %v556_v35 = vsel %vm538_vm1, %v395_v26, %v925_v27  ;;  %v965_v26 = vunpack.i.h.bf16 %v963_v1  ;;  %v964_v27 = vunpack.i.l.bf16 %v963_v1 }
  0x8d   : > { %v539_v37 = vsel %vm538_vm1, %v378_v30, %v934_v33  ;;  %v540_v38 = vsel %vm538_vm1, %v379_v31, %v935_v32  ;;  %v579_v39 = vpack.c.bf16 %v556_v35, %v555_v34  ;;  %v398_v30 = vld [vmem:[%s1191_s10 + $0xa0] sm:$0xff]  ;;  %v399_v31 = vld [vmem:[%s1191_s10 + $0xa8] sm:$0xff] }
  0x8e   : > { %v571_v40 = vpack.c.bf16 %v540_v38, %v539_v37  ;;  %v382_v33 = vld [vmem:[%s1191_s10 + $0x20] sm:$0xff]  ;;  %v383_v34 = vld [vmem:[%s1191_s10 + $0x28] sm:$0xff]  ;;  %v559_v35 = vsel %vm538_vm1, %v398_v30, %v964_v27  ;;  %v560_v36 = vsel %vm538_vm1, %v399_v31, %v965_v26 }
  0x8f   : > { %895 = vmatmul.msk.bf16.vlgmr.msra.gmra.mxu2 %vm598_vm2, %v579_v39 }
  0x90   : > { %887 = vmatmul.msk.bf16.vlgmr.msra.gmra.mxu0 %vm598_vm2, %v571_v40  ;;  %v581_v40 = vpack.c.bf16 %v560_v36, %v559_v35 }
  0x91   : > { %v928_v41 = vpop.permute.xlu0 %927  ;;  %v978_v39 = vpop.permute.xlu2 %977 }
  0x92   : > { %v930_v44 = vunpack.i.h.bf16 %v928_v41  ;;  %v929_v45 = vunpack.i.l.bf16 %v928_v41  ;;  %v938_v46 = vpop.permute.xlu1 %937 }
  0x93   : > { %v940_v49 = vunpack.i.h.bf16 %v938_v46  ;;  %v939_v50 = vunpack.i.l.bf16 %v938_v46  ;;  %v406_v46 = vld [vmem:[%s1191_s10 + $0xe0] sm:$0xff] }
  0x94   : > { %v563_v51 = vsel %vm538_vm1, %v402_v42, %v929_v45  ;;  %v564_v52 = vsel %vm538_vm1, %v403_v43, %v930_v44  ;;  %v980_v44 = vunpack.i.h.bf16 %v978_v39  ;;  %v979_v45 = vunpack.i.l.bf16 %v978_v39 }
  0x95   : > { %v547_v55 = vsel %vm538_vm1, %v386_v47, %v939_v50  ;;  %v548_v56 = vsel %vm538_vm1, %v387_v48, %v940_v49  ;;  %v583_v57 = vpack.c.bf16 %v564_v52, %v563_v51  ;;  %v407_v47 = vld [vmem:[%s1191_s10 + $0xe8] sm:$0xff]  ;;  %v390_v48 = vld [vmem:[%s1191_s10 + $0x60] sm:$0xff] }
  0x96   : > { %v575_v60 = vpack.c.bf16 %v548_v56, %v547_v55  ;;  %v391_v49 = vld [vmem:[%s1191_s10 + $0x68] sm:$0xff]  ;;  %v551_v53 = vsel %vm538_vm1, %v390_v48, %v979_v45 }
  0x97   : > { %899 = vmatmul.msk.bf16.vlgmr.msra.gmra.mxu3 %vm598_vm2, %v583_v57  ;;  %v552_v54 = vsel %vm538_vm1, %v391_v49, %v980_v44 }
  0x98   : > { %891 = vmatmul.msk.bf16.vlgmr.msra.gmra.mxu1 %vm598_vm2, %v575_v60  ;;  %v577_v57 = vpack.c.bf16 %v552_v54, %v551_v53 }
  0x99   : > { %v953_v2 = vpop.permute.xlu0 %952  ;;  %v993_v55 = vpop.permute.xlu2 %992 }
  0x9a   : > { %v955_v5 = vunpack.i.h.bf16 %v953_v2  ;;  %v954_v6 = vunpack.i.l.bf16 %v953_v2  ;;  %v958_v7 = vpop.permute.xlu1 %957  ;;  %v995_v60 = vunpack.i.h.bf16 %v993_v55  ;;  %v994_v61 = vunpack.i.l.bf16 %v993_v55  ;;  %v384_v2 = vld [vmem:[%s1191_s10 + $0x30] sm:$0xff] }
  0x9b   : > { %v960_v13 = vunpack.i.h.bf16 %v958_v7  ;;  %v959_v14 = vunpack.i.l.bf16 %v958_v7 }
  0x9c   : > { %v541_v11 = vsel %vm538_vm1, %v380_v3, %v954_v6  ;;  %v542_v12 = vsel %vm538_vm1, %v381_v4, %v955_v5  ;;  %v385_v3 = vld [vmem:[%s1191_s10 + $0x38] sm:$0xff]  ;;  %v545_v7 = vsel %vm538_vm1, %v384_v2, %v994_v61 }
  0x9d   : > { %v572_v15 = vpack.c.bf16 %v542_v12, %v541_v11  ;;  %v549_v21 = vsel %vm538_vm1, %v388_v0, %v959_v14  ;;  %v550_v22 = vsel %vm538_vm1, %v389_v18, %v960_v13  ;;  %v392_v0 = vld [vmem:[%s1191_s10 + $0x70] sm:$0xff]  ;;  %v393_v18 = vld [vmem:[%s1191_s10 + $0x78] sm:$0xff] }
  0x9e   : > { %v576_v25 = vpack.c.bf16 %v550_v22, %v549_v21 }
  0x9f   : > { %896 = vmatmul.msk.bf16.gmra.mxu2 %vm598_vm2, %v580_v8  ;;  %v546_v8 = vsel %vm538_vm1, %v385_v3, %v995_v60 }
  0xa0   : > { %888 = vmatmul.msk.bf16.gmra.mxu0 %vm598_vm2, %v572_v15  ;;  %v574_v13 = vpack.c.bf16 %v546_v8, %v545_v7 }
  0xa1   : > { %v968_v32 = vpop.permute.xlu0 %967 }
  0xa2   : > { %v973_v23 = vpop.permute.xlu1 %972  ;;  %v970_v41 = vunpack.i.h.bf16 %v968_v32  ;;  %v969_v42 = vunpack.i.l.bf16 %v968_v32 }
  0xa3   : > { %v975_v28 = vunpack.i.h.bf16 %v973_v23  ;;  %v974_v29 = vunpack.i.l.bf16 %v973_v23 }
  0xa4   : > { %v567_v50 = vsel %vm538_vm1, %v406_v46, %v969_v42  ;;  %v568_v51 = vsel %vm538_vm1, %v407_v47, %v970_v41 }
  0xa5   : > { %v543_v37 = vsel %vm538_vm1, %v382_v33, %v974_v29  ;;  %v544_v38 = vsel %vm538_vm1, %v383_v34, %v975_v28  ;;  %v585_v56 = vpack.c.bf16 %v568_v51, %v567_v50 }
  0xa6   : > { %v573_v43 = vpack.c.bf16 %v544_v38, %v543_v37 }
  0xa7   : > { %900 = vmatmul.msk.bf16.gmra.mxu3 %vm598_vm2, %v584_v24  ;;  %v1276_v24 = vld [vmem:[%s1387_s4] ss:$0 sm:$0xff] }
  0xa8   : > { %892 = vmatmul.msk.bf16.gmra.mxu1 %vm598_vm2, %v576_v25 }
  0xa9   : > { %v983_v52 = vpop.permute.xlu0 %982 }
  0xaa   : > { %v985_v58 = vunpack.i.h.bf16 %v983_v52  ;;  %v984_v59 = vunpack.i.l.bf16 %v983_v52  ;;  %v988_v6 = vpop.permute.xlu1 %987 }
  0xab   : > { %v990_v11 = vunpack.i.h.bf16 %v988_v6  ;;  %v989_v12 = vunpack.i.l.bf16 %v988_v6 }
  0xac   : > { %v561_v4 = vsel %vm538_vm1, %v400_v62, %v984_v59  ;;  %v562_v5 = vsel %vm538_vm1, %v401_v63, %v985_v58 }
  0xad   : > { %v582_v10 = vpack.c.bf16 %v562_v5, %v561_v4  ;;  %v569_v19 = vsel %vm538_vm1, %v408_v16, %v989_v12  ;;  %v570_v20 = vsel %vm538_vm1, %v409_v17, %v990_v11 }
  0xae   : > { %v586_v22 = vpack.c.bf16 %v570_v20, %v569_v19 }
  0xaf   : > { %897 = vmatmul.msk.bf16.gmra.mxu2 %vm598_vm2, %v581_v40 }
  0xb0   : > { %889 = vmatmul.msk.bf16.gmra.mxu0 %vm598_vm2, %v573_v43 }
  0xb1   : > { %v998_v9 = vpop.permute.xlu0 %997 }
  0xb2   : > { %v1000_v14 = vunpack.i.h.bf16 %v998_v9  ;;  %v999_v15 = vunpack.i.l.bf16 %v998_v9 }
  0xb4   : > { %v553_v1 = vsel %vm538_vm1, %v392_v0, %v999_v15  ;;  %v554_v21 = vsel %vm538_vm1, %v393_v18, %v1000_v14 }
  0xb5   : > { %v578_v23 = vpack.c.bf16 %v554_v21, %v553_v1 }
  0xb7   : > { %901 = vmatmul.msk.bf16.gmra.mxu3 %vm598_vm2, %v585_v56 }
  0xb8   : > { %893 = vmatmul.msk.bf16.gmra.mxu1 %vm598_vm2, %v577_v57 }
  0xbf   : > { %898 = vmatmul.msk.bf16.gmra.mxu2 %vm598_vm2, %v582_v10 }
  0xc0   : > { %890 = vmatmul.msk.bf16.gmra.mxu0 %vm598_vm2, %v574_v13 }
  0xc7   : > { %902 = vmatmul.msk.bf16.gmra.mxu3 %vm598_vm2, %v586_v22 }
  0xc8   : > { %894 = vmatmul.msk.bf16.gmra.mxu1 %vm598_vm2, %v578_v23 }
 0x10d   : > { %v660_v25 = vpop.f32.mrf.mxu0 }
 0x10e   : > { %v661_v26 = vadd.f32 %v1276_v24, %v660_v25 }
 0x110   : > { %v740_v27 = vmax.f32 %v661_v26, 0.0 }
 0x112   : > { %773 = vst.msk [vmem:[%s1283_s15] sm:$0xff] %vm772_vm3, %v740_v27  ;;  %v700_v28 = vpop.f32.mrf.mxu2 }
 0x113   : > { %v701_v29 = vadd.f32 %v1276_v24, %v700_v28 }
 0x115   : > { %v756_v30 = vmax.f32 %v701_v29, 0.0  ;;  %v662_v31 = vpop.f32.mrf.mxu0  ;;  %v680_v32 = vpop.f32.mrf.mxu1 }
 0x116   : > { %v663_v33 = vadd.f32 %v1276_v24, %v662_v31  ;;  %v681_v34 = vadd.f32 %v1276_v24, %v680_v32 }
 0x117   : > { %789 = vst.msk [vmem:[%s1283_s15 + $0x80] sm:$0xff] %vm772_vm3, %v756_v30 }
 0x118   : > { %v741_v35 = vmax.f32 %v663_v33, 0.0  ;;  %v748_v36 = vmax.f32 %v681_v34, 0.0 }
 0x11a   : > { %774 = vst.msk [vmem:[%s1283_s15 + $0x8] sm:$0xff] %vm772_vm3, %v741_v35  ;;  %v702_v37 = vpop.f32.mrf.mxu2  ;;  %v720_v38 = vpop.f32.mrf.mxu3 }
 0x11b   : > { %781 = vst.msk [vmem:[%s1283_s15 + $0x40] sm:$0xff] %vm772_vm3, %v748_v36  ;;  %v703_v39 = vadd.f32 %v1276_v24, %v702_v37  ;;  %v721_v40 = vadd.f32 %v1276_v24, %v720_v38 }
 0x11d   : > { %v757_v41 = vmax.f32 %v703_v39, 0.0  ;;  %v764_v42 = vmax.f32 %v721_v40, 0.0  ;;  %v682_v43 = vpop.f32.mrf.mxu1  ;;  %v665_v44 = vpop.f32.mrf.mxu0 }
 0x11e   : > { %v683_v45 = vadd.f32 %v1276_v24, %v682_v43  ;;  %v666_v46 = vadd.f32 %v1276_v24, %v665_v44 }
 0x11f   : > { %790 = vst.msk [vmem:[%s1283_s15 + $0x88] sm:$0xff] %vm772_vm3, %v757_v41 }
 0x120   : > { %797 = vst.msk [vmem:[%s1283_s15 + $0xc0] sm:$0xff] %vm772_vm3, %v764_v42  ;;  %v749_v47 = vmax.f32 %v683_v45, 0.0  ;;  %v742_v48 = vmax.f32 %v666_v46, 0.0 }
 0x122   : > { %782 = vst.msk [vmem:[%s1283_s15 + $0x48] sm:$0xff] %vm772_vm3, %v749_v47  ;;  %v705_v49 = vpop.f32.mrf.mxu2  ;;  %v722_v50 = vpop.f32.mrf.mxu3 }
 0x123   : > { %775 = vst.msk [vmem:[%s1283_s15 + $0x10] sm:$0xff] %vm772_vm3, %v742_v48  ;;  %v706_v51 = vadd.f32 %v1276_v24, %v705_v49  ;;  %v723_v52 = vadd.f32 %v1276_v24, %v722_v50 }
 0x125   : > { %v758_v53 = vmax.f32 %v706_v51, 0.0  ;;  %v765_v54 = vmax.f32 %v723_v52, 0.0  ;;  %v685_v55 = vpop.f32.mrf.mxu1  ;;  %v667_v56 = vpop.f32.mrf.mxu0 }
 0x126   : > { %v686_v57 = vadd.f32 %v1276_v24, %v685_v55  ;;  %v668_v58 = vadd.f32 %v1276_v24, %v667_v56 }
 0x127   : > { %791 = vst.msk [vmem:[%s1283_s15 + $0x90] sm:$0xff] %vm772_vm3, %v758_v53 }
 0x128   : > { %798 = vst.msk [vmem:[%s1283_s15 + $0xc8] sm:$0xff] %vm772_vm3, %v765_v54  ;;  %v750_v59 = vmax.f32 %v686_v57, 0.0  ;;  %v743_v60 = vmax.f32 %v668_v58, 0.0 }
 0x12a   : > { %783 = vst.msk [vmem:[%s1283_s15 + $0x50] sm:$0xff] %vm772_vm3, %v750_v59  ;;  %v707_v61 = vpop.f32.mrf.mxu2  ;;  %v725_v62 = vpop.f32.mrf.mxu3 }
 0x12b   : > { %776 = vst.msk [vmem:[%s1283_s15 + $0x18] sm:$0xff] %vm772_vm3, %v743_v60  ;;  %v708_v63 = vadd.f32 %v1276_v24, %v707_v61  ;;  %v726_v2 = vadd.f32 %v1276_v24, %v725_v62 }
 0x12d   : > { %v759_v3 = vmax.f32 %v708_v63, 0.0  ;;  %v766_v4 = vmax.f32 %v726_v2, 0.0  ;;  %v687_v5 = vpop.f32.mrf.mxu1  ;;  %v670_v6 = vpop.f32.mrf.mxu0 }
 0x12e   : > { %v688_v7 = vadd.f32 %v1276_v24, %v687_v5  ;;  %v671_v8 = vadd.f32 %v1276_v24, %v670_v6 }
 0x12f   : > { %792 = vst.msk [vmem:[%s1283_s15 + $0x98] sm:$0xff] %vm772_vm3, %v759_v3 }
 0x130   : > { %799 = vst.msk [vmem:[%s1283_s15 + $0xd0] sm:$0xff] %vm772_vm3, %v766_v4  ;;  %v751_v9 = vmax.f32 %v688_v7, 0.0  ;;  %v744_v10 = vmax.f32 %v671_v8, 0.0 }
 0x132   : > { %784 = vst.msk [vmem:[%s1283_s15 + $0x58] sm:$0xff] %vm772_vm3, %v751_v9  ;;  %v710_v11 = vpop.f32.mrf.mxu2  ;;  %v727_v12 = vpop.f32.mrf.mxu3 }
 0x133   : > { %777 = vst.msk [vmem:[%s1283_s15 + $0x20] sm:$0xff] %vm772_vm3, %v744_v10  ;;  %v711_v13 = vadd.f32 %v1276_v24, %v710_v11  ;;  %v728_v14 = vadd.f32 %v1276_v24, %v727_v12 }
 0x135   : > { %v760_v15 = vmax.f32 %v711_v13, 0.0  ;;  %v767_v16 = vmax.f32 %v728_v14, 0.0  ;;  %v690_v17 = vpop.f32.mrf.mxu1  ;;  %v672_v0 = vpop.f32.mrf.mxu0 }
 0x136   : > { %v691_v18 = vadd.f32 %v1276_v24, %v690_v17  ;;  %v673_v19 = vadd.f32 %v1276_v24, %v672_v0 }
 0x137   : > { %793 = vst.msk [vmem:[%s1283_s15 + $0xa0] sm:$0xff] %vm772_vm3, %v760_v15 }
 0x138   : > { %800 = vst.msk [vmem:[%s1283_s15 + $0xd8] sm:$0xff] %vm772_vm3, %v767_v16  ;;  %v752_v20 = vmax.f32 %v691_v18, 0.0  ;;  %v745_v1 = vmax.f32 %v673_v19, 0.0 }
 0x13a   : > { %785 = vst.msk [vmem:[%s1283_s15 + $0x60] sm:$0xff] %vm772_vm3, %v752_v20  ;;  %v712_v21 = vpop.f32.mrf.mxu2  ;;  %v730_v22 = vpop.f32.mrf.mxu3 }
 0x13b   : > { %778 = vst.msk [vmem:[%s1283_s15 + $0x28] sm:$0xff] %vm772_vm3, %v745_v1  ;;  %v713_v23 = vadd.f32 %v1276_v24, %v712_v21  ;;  %v731_v25 = vadd.f32 %v1276_v24, %v730_v22 }
 0x13d   : > { %v761_v26 = vmax.f32 %v713_v23, 0.0  ;;  %v768_v27 = vmax.f32 %v731_v25, 0.0  ;;  %v692_v28 = vpop.f32.mrf.mxu1  ;;  %v675_v29 = vpop.f32.mrf.mxu0 }
 0x13e   : > { %v693_v30 = vadd.f32 %v1276_v24, %v692_v28  ;;  %v676_v31 = vadd.f32 %v1276_v24, %v675_v29 }
 0x13f   : > { %794 = vst.msk [vmem:[%s1283_s15 + $0xa8] sm:$0xff] %vm772_vm3, %v761_v26 }
 0x140   : > { %801 = vst.msk [vmem:[%s1283_s15 + $0xe0] sm:$0xff] %vm772_vm3, %v768_v27  ;;  %v753_v32 = vmax.f32 %v693_v30, 0.0  ;;  %v746_v33 = vmax.f32 %v676_v31, 0.0 }
 0x142   : > { %786 = vst.msk [vmem:[%s1283_s15 + $0x68] sm:$0xff] %vm772_vm3, %v753_v32  ;;  %v715_v34 = vpop.f32.mrf.mxu2  ;;  %v732_v35 = vpop.f32.mrf.mxu3 }
 0x143   : > { %779 = vst.msk [vmem:[%s1283_s15 + $0x30] sm:$0xff] %vm772_vm3, %v746_v33  ;;  %v716_v36 = vadd.f32 %v1276_v24, %v715_v34  ;;  %v733_v37 = vadd.f32 %v1276_v24, %v732_v35 }
 0x145   : > { %v762_v38 = vmax.f32 %v716_v36, 0.0  ;;  %v769_v39 = vmax.f32 %v733_v37, 0.0  ;;  %v695_v40 = vpop.f32.mrf.mxu1  ;;  %v677_v41 = vpop.f32.mrf.mxu0 }
 0x146   : > { %v696_v42 = vadd.f32 %v1276_v24, %v695_v40  ;;  %v678_v43 = vadd.f32 %v1276_v24, %v677_v41 }
 0x147   : > { %795 = vst.msk [vmem:[%s1283_s15 + $0xb0] sm:$0xff] %vm772_vm3, %v762_v38 }
 0x148   : > { %802 = vst.msk [vmem:[%s1283_s15 + $0xe8] sm:$0xff] %vm772_vm3, %v769_v39  ;;  %v754_v44 = vmax.f32 %v696_v42, 0.0  ;;  %v747_v45 = vmax.f32 %v678_v43, 0.0 }
 0x14a   : > { %787 = vst.msk [vmem:[%s1283_s15 + $0x70] sm:$0xff] %vm772_vm3, %v754_v44  ;;  %v717_v46 = vpop.f32.mrf.mxu2  ;;  %v735_v47 = vpop.f32.mrf.mxu3 }
 0x14b   : > { %780 = vst.msk [vmem:[%s1283_s15 + $0x38] sm:$0xff] %vm772_vm3, %v747_v45  ;;  %v718_v48 = vadd.f32 %v1276_v24, %v717_v46  ;;  %v736_v49 = vadd.f32 %v1276_v24, %v735_v47 }
 0x14d   : > { %v763_v50 = vmax.f32 %v718_v48, 0.0  ;;  %v770_v51 = vmax.f32 %v736_v49, 0.0  ;;  %v697_v52 = vpop.f32.mrf.mxu1 }
 0x14e   : > { %v698_v53 = vadd.f32 %v1276_v24, %v697_v52 }
 0x14f   : > { %796 = vst.msk [vmem:[%s1283_s15 + $0xb8] sm:$0xff] %vm772_vm3, %v763_v50 }
 0x150   : > { %803 = vst.msk [vmem:[%s1283_s15 + $0xf0] sm:$0xff] %vm772_vm3, %v770_v51  ;;  %v755_v54 = vmax.f32 %v698_v53, 0.0 }
 0x152   : > { %788 = vst.msk [vmem:[%s1283_s15 + $0x78] sm:$0xff] %vm772_vm3, %v755_v54  ;;  %v737_v55 = vpop.f32.mrf.mxu3 }
 0x153   : > { %v738_v56 = vadd.f32 %v1276_v24, %v737_v55 }
 0x155   : > { %v771_v57 = vmax.f32 %v738_v56, 0.0 }
 0x157   : > { %804 = vst.msk [vmem:[%s1283_s15 + $0xf8] sm:$0xff] %vm772_vm3, %v771_v57 }
 0x158 PF: > { %s15_s18 = sadd.s32 1, %s1010_s18  }
 0x159   : > { %p12_p4 = scmp.ge.s32.totalorder %s15_s18, 4  }
 0x15b   :  { %14 = sbr.rel (!%p12_p4) target bundleno = 1 (0x1), region = 73 }

// kernel: resunet_mid_stage_block.3
= control target key start
LH: loop header
LB: loop body
LE: loop exit
PB: predicated region body
PF: predicated region fallthrough
CT: control target
= control target key end

     0   :  { %s3163_s12 = smov 0   ;;  %s4574_s0 = inlined_call_operand.vmem [shape: f32[2,18,18,4], index: 0, kind: input, shape index: {}]   ;;  %s4575_s1 = inlined_call_operand.vmem [shape: bf16[36,8], index: 1, kind: input, shape index: {}]   ;;  %s4576_s2 = inlined_call_operand.vmem [shape: f32[2,256,8], index: 2, kind: output, shape index: {0}]   ;;  %s4577_s3 = inlined_call_operand.vmem [shape: f32[2,2,8], index: 3, kind: output, shape index: {1}]  }
   0x1 LB: > { %s2231_s13 = sadd.s32 4294967295, %s3133_s12   ;;  %p2235_p0 = scmp.ge.s32.totalorder %s3133_s12, 1  ;;  %s3133_s12 = sphi %s3163_s12, %s14_s12  }
   0x2   : > { %p140_p1 = scmp.lt.s32.totalorder %s3133_s12, 3 }
   0x4   : > { %p141_p2 = pnand %p2235_p0, %p140_p1 }
   0x6   : > { %144 = sbr.rel (%p141_p2) target bundleno = 644 (0x284), region = 28 }
   0xb   : > { %p168_p3 = scmp.lt.s32.totalorder %s2231_s13, 1  ;;  %s3135_s18 = smov 4   ;;  %vm1497_vm0 = vcmask 31744   ;;  %vm1530_vm1 = vcmask 64512   ;;  %vm1563_vm2 = vcmask 97280   ;;  %vm1596_vm3 = vcmask 130048  }
   0xc   : > { %s3136_s19 = smov 8   ;;  %s3137_s20 = smov 12   ;;  %vm1629_vm4 = vcmask 162816   ;;  %vm1846_vm5 = vcmask 1041408   ;;  %vm1662_vm6 = vcmask 195584   ;;  %vm1695_vm7 = vcmask 228352  }
   0xd   : > { %s4627_s13 = smov (!%p168_p3, %s2231_s13), 1  ;;  %s3138_s21 = smov 16   ;;  %vm1728_vm8 = vcmask 261120   ;;  %vm1797_vm9 = vcmask 293888   ;;  %vm2141_vm10 = vcmask 1040384   ;;  %vm2143_vm11 = vcmask 58368  }
   0xe   : > { %s2470_s14 = smul.u32 432, %s4627_s13  ;;  %s3139_s22 = smov 20  }
   0xf   : > { %s3140_s23 = smov 24   ;;  %s3141_s24 = smov 32  }
  0x10   : > { %s3177_s17 = scalar_lea.vmem %s4574_s0, %s2470_s14  ;;  %s3142_s25 = smov 28  }
  0x11   : > { %v223_v0 = vld [vmem:[%s3177_s17 + $0x61] sm:$0xff]  ;;  %v224_v1 = vld [vmem:[%s3177_s17 + $0x69] sm:$0xff]  ;;  %v219_v2 = vld [vmem:[%s3177_s17 + $0x31] sm:$0xff]  ;;  %s2458_s5 = sshll.u32 %s4627_s13, 8  ;;  %s2239_s9 = sshll.u32 %s4627_s13, 1 }
  0x12   : > { %v3182_v3 = vpack.i.bf16 %v224_v1, %v223_v0  ;;  %v220_v4 = vld [vmem:[%s3177_s17 + $0x39] sm:$0xff]  ;;  %v215_v5 = vld [vmem:[%s3177_s17 + $0x1] sm:$0xff]  ;;  %v216_v6 = vld [vmem:[%s3177_s17 + $0x9] sm:$0xff]  ;;  %s4382_s8 = scalar_lea.vmem %s4576_s2, %s2458_s5  ;;  %s181_s14 = scalar_lea.vmem %s4577_s3, %s2239_s9 }
  0x13   : > { %v3187_v7 = vpack.i.bf16 %v220_v4, %v219_v2  ;;  %v2487_v8 = vpack.i.bf16 %v216_v6, %v215_v5  ;;  %v225_v9 = vld [vmem:[%s3177_s17 + $0x79] sm:$0xff]  ;;  %v226_v10 = vld [vmem:[%s3177_s17 + $0x81] sm:$0xff]  ;;  %v221_v11 = vld [vmem:[%s3177_s17 + $0x49] sm:$0xff] }
  0x14   : > { %2508 = vrot.lane.b32.xlu2 %v3182_v3, %s3135_s18  ;;  %v222_v12 = vld [vmem:[%s3177_s17 + $0x51] sm:$0xff]  ;;  %v217_v13 = vld [vmem:[%s3177_s17 + $0x19] sm:$0xff]  ;;  %v218_v14 = vld [vmem:[%s3177_s17 + $0x21] sm:$0xff]  ;;  %v3200_v15 = vpack.i.bf16 %v226_v10, %v225_v9 }
  0x15   : > { %2498 = vrot.lane.b32.xlu1 %v3187_v7, %s3135_s18  ;;  %2488 = vrot.lane.b32.xlu0 %v2487_v8, %s3135_s18  ;;  %v3202_v16 = vpack.i.bf16 %v222_v12, %v221_v11  ;;  %v3204_v17 = vpack.i.bf16 %v218_v14, %v217_v13  ;;  %v231_v18 = vld [vmem:[%s3177_s17 + $0xc1] sm:$0xff]  ;;  %v232_v19 = vld [vmem:[%s3177_s17 + $0xc9] sm:$0xff] }
  0x16   : > { %v229_v20 = vld [vmem:[%s3177_s17 + $0xa9] sm:$0xff]  ;;  %v230_v21 = vld [vmem:[%s3177_s17 + $0xb1] sm:$0xff]  ;;  %v228_v23 = vld [vmem:[%s3177_s17 + $0x99] sm:$0xff]  ;;  %v3218_v24 = vpack.i.bf16 %v232_v19, %v231_v18 }
  0x17   : > { %v227_v22 = vld [vmem:[%s3177_s17 + $0x91] sm:$0xff]  ;;  %v3220_v25 = vpack.i.bf16 %v230_v21, %v229_v20  ;;  %v237_v27 = vld [vmem:[%s3177_s17 + $0x109] sm:$0xff]  ;;  %v236_v30 = vld [vmem:[%s3177_s17 + $0xf9] sm:$0xff] }
  0x18   : > { %v3222_v26 = vpack.i.bf16 %v228_v23, %v227_v22  ;;  %v238_v28 = vld [vmem:[%s3177_s17 + $0x111] sm:$0xff]  ;;  %v233_v31 = vld [vmem:[%s3177_s17 + $0xd9] sm:$0xff]  ;;  %v234_v32 = vld [vmem:[%s3177_s17 + $0xe1] sm:$0xff] }
  0x19   : > { %v235_v29 = vld [vmem:[%s3177_s17 + $0xf1] sm:$0xff]  ;;  %v3236_v33 = vpack.i.bf16 %v238_v28, %v237_v27  ;;  %v3240_v35 = vpack.i.bf16 %v234_v32, %v233_v31  ;;  %v244_v37 = vld [vmem:[%s3177_s17 + $0x159] sm:$0xff]  ;;  %v242_v39 = vld [vmem:[%s3177_s17 + $0x141] sm:$0xff] }
  0x1a   : > { %v3238_v34 = vpack.i.bf16 %v236_v30, %v235_v29  ;;  %v243_v36 = vld [vmem:[%s3177_s17 + $0x151] sm:$0xff]  ;;  %v241_v38 = vld [vmem:[%s3177_s17 + $0x139] sm:$0xff]  ;;  %v239_v40 = vld [vmem:[%s3177_s17 + $0x121] sm:$0xff] }
  0x1b   : > { %v240_v41 = vld [vmem:[%s3177_s17 + $0x129] sm:$0xff]  ;;  %v3254_v42 = vpack.i.bf16 %v244_v37, %v243_v36  ;;  %v3256_v43 = vpack.i.bf16 %v242_v39, %v241_v38  ;;  %v249_v45 = vld [vmem:[%s3177_s17 + $0x1a] sm:$0xff]  ;;  %v246_v50 = vld [vmem:[%s3177_s17 + $0x171] sm:$0xff] }
  0x1c   : > { %2513 = vrot.lane.b32.xlu2 %v3200_v15, %s3135_s18  ;;  %v3258_v44 = vpack.i.bf16 %v240_v41, %v239_v40  ;;  %v250_v46 = vld [vmem:[%s3177_s17 + $0x22] sm:$0xff]  ;;  %v248_v48 = vld [vmem:[%s3177_s17 + $0xa] sm:$0xff]  ;;  %v254_v57 = vld [vmem:[%s3177_s17 + $0x52] sm:$0xff] }
  0x1d   : > { %2503 = vrot.lane.b32.xlu1 %v3202_v16, %s3135_s18  ;;  %2493 = vrot.lane.b32.xlu0 %v3204_v17, %s3135_s18  ;;  %v247_v47 = vld [vmem:[%s3177_s17 + $0x2] sm:$0xff]  ;;  %v3272_v51 = vpack.i.bf16 %v250_v46, %v249_v45  ;;  %v256_v55 = vld [vmem:[%s3177_s17 + $0x6a] sm:$0xff] }
  0x1e   : > { %v245_v49 = vld [vmem:[%s3177_s17 + $0x169] sm:$0xff]  ;;  %v2567_v52 = vpack.i.bf16 %v248_v48, %v247_v47  ;;  %v251_v58 = vld [vmem:[%s3177_s17 + $0x32] sm:$0xff]  ;;  %v252_v59 = vld [vmem:[%s3177_s17 + $0x3a] sm:$0xff] }
  0x1f   : > { %v3274_v53 = vpack.i.bf16 %v246_v50, %v245_v49  ;;  %v255_v54 = vld [vmem:[%s3177_s17 + $0x62] sm:$0xff]  ;;  %v253_v56 = vld [vmem:[%s3177_s17 + $0x4a] sm:$0xff]  ;;  %v3291_v62 = vpack.i.bf16 %v252_v59, %v251_v58  ;;  %v262_v0 = vld [vmem:[%s3177_s17 + $0xb2] sm:$0xff] }
  0x20   : > { %v3287_v60 = vpack.i.bf16 %v256_v55, %v255_v54  ;;  %v3289_v61 = vpack.i.bf16 %v254_v57, %v253_v56  ;;  %v261_v63 = vld [vmem:[%s3177_s17 + $0xaa] sm:$0xff]  ;;  %v259_v1 = vld [vmem:[%s3177_s17 + $0x92] sm:$0xff]  ;;  %v260_v2 = vld [vmem:[%s3177_s17 + $0x9a] sm:$0xff] }
  0x21   : > { %v257_v4 = vld [vmem:[%s3177_s17 + $0x7a] sm:$0xff]  ;;  %v258_v5 = vld [vmem:[%s3177_s17 + $0x82] sm:$0xff]  ;;  %v3305_v6 = vpack.i.bf16 %v262_v0, %v261_v63  ;;  %v3307_v8 = vpack.i.bf16 %v260_v2, %v259_v1  ;;  %v267_v10 = vld [vmem:[%s3177_s17 + $0xf2] sm:$0xff] }
  0x22   : > { %v3309_v9 = vpack.i.bf16 %v258_v5, %v257_v4  ;;  %v268_v11 = vld [vmem:[%s3177_s17 + $0xfa] sm:$0xff]  ;;  %v266_v13 = vld [vmem:[%s3177_s17 + $0xe2] sm:$0xff]  ;;  %v264_v18 = vld [vmem:[%s3177_s17 + $0xca] sm:$0xff] }
  0x23   : > { %4594 = vst [vmem:[#allocation2_spill] sm:$0xff] %v3305_v6  ;;  %v265_v12 = vld [vmem:[%s3177_s17 + $0xda] sm:$0xff]  ;;  %v263_v14 = vld [vmem:[%s3177_s17 + $0xc2] sm:$0xff]  ;;  %v3323_v19 = vpack.i.bf16 %v268_v11, %v267_v10  ;;  %v272_v28 = vld [vmem:[%s3177_s17 + $0x12a] sm:$0xff] }
  0x24   : > { %2528 = vrot.lane.b32.xlu2 %v3218_v24, %s3135_s18  ;;  %4595 = vst [vmem:[#allocation3_spill] sm:$0xff] %v3307_v8  ;;  %v3325_v20 = vpack.i.bf16 %v266_v13, %v265_v12  ;;  %v3327_v21 = vpack.i.bf16 %v264_v18, %v263_v14  ;;  %v273_v22 = vld [vmem:[%s3177_s17 + $0x13a] sm:$0xff]  ;;  %v274_v23 = vld [vmem:[%s3177_s17 + $0x142] sm:$0xff]  ;;  %v269_v29 = vld [vmem:[%s3177_s17 + $0x10a] sm:$0xff] }
  0x25   : > { %2523 = vrot.lane.b32.xlu1 %v3220_v25, %s3135_s18  ;;  %2518 = vrot.lane.b32.xlu0 %v3222_v26, %s3135_s18  ;;  %4596 = vst [vmem:[#allocation4_spill] sm:$0xff] %v3323_v19  ;;  %v271_v27 = vld [vmem:[%s3177_s17 + $0x122] sm:$0xff]  ;;  %v270_v30 = vld [vmem:[%s3177_s17 + $0x112] sm:$0xff]  ;;  %v3341_v31 = vpack.i.bf16 %v274_v23, %v273_v22 }
  0x26   : > { %4597 = vst [vmem:[#allocation5_spill] sm:$0xff] %v3325_v20  ;;  %v3343_v32 = vpack.i.bf16 %v272_v28, %v271_v27  ;;  %v3345_v36 = vpack.i.bf16 %v270_v30, %v269_v29  ;;  %v3350_v37 = vld [vmem:[%s3177_s17 + $0x18] sm:$0xff]  ;;  %v3357_v38 = vld [vmem:[%s3177_s17 + $0x20] sm:$0xff]  ;;  %v277_v39 = vld [vmem:[%s3177_s17 + $0x16a] sm:$0xff] }
  0x27   : > { %4598 = vst [vmem:[#allocation6_spill] sm:$0xff] %v3341_v31  ;;  %v278_v40 = vld [vmem:[%s3177_s17 + $0x172] sm:$0xff]  ;;  %v276_v45 = vld [vmem:[%s3177_s17 + $0x15a] sm:$0xff]  ;;  %v2647_v46 = vpack.i.bf16 %v3357_v38, %v3350_v37  ;;  %v2247_v50 = vld [vmem:[%s3177_s17 + $0x68] sm:$0xff] }
  0x28   : > { %4599 = vst [vmem:[#allocation7_spill] sm:$0xff] %v3343_v32  ;;  %v275_v41 = vld [vmem:[%s3177_s17 + $0x152] sm:$0xff]  ;;  %v3365_v47 = vpack.i.bf16 %v278_v40, %v277_v39  ;;  %v2246_v49 = vld [vmem:[%s3177_s17 + $0x60] sm:$0xff]  ;;  %v3398_v63 = vld [vmem:[%s3177_s17 + $0xa8] sm:$0xff] }
  0x29   : > { %4600 = vst [vmem:[#allocation8_spill] sm:$0xff] %v3345_v36  ;;  %v3367_v48 = vpack.i.bf16 %v276_v45, %v275_v41  ;;  %v3380_v54 = vld [vmem:[%s3177_s17 + $0x50] sm:$0xff]  ;;  %v3386_v56 = vld [vmem:[%s3177_s17 + $0x38] sm:$0xff]  ;;  %v2662_v57 = vpack.i.bf16 %v2247_v50, %v2246_v49  ;;  %v2249_v10 = vld [vmem:[%s3177_s17 + $0x80] sm:$0xff] }
  0x2a   : > { %4601 = vst [vmem:[#allocation9_spill] sm:$0xff] %v3365_v47  ;;  %v3383_v55 = vld [vmem:[%s3177_s17 + $0x30] sm:$0xff]  ;;  %v3411_v4 = vld [vmem:[%s3177_s17 + $0x98] sm:$0xff]  ;;  %v3441_v39 = vld [vmem:[%s3177_s17 + $0xe0] sm:$0xff] }
  0x2b   : > { %4602 = vst [vmem:[#allocation10_spill] sm:$0xff] %v3367_v48  ;;  %v3394_v59 = vpack.i.bf16 %v3386_v56, %v3383_v55  ;;  %v3405_v0 = vld [vmem:[%s3177_s17 + $0xb0] sm:$0xff]  ;;  %v2248_v5 = vld [vmem:[%s3177_s17 + $0x78] sm:$0xff]  ;;  %v2254_v40 = vld [vmem:[%s3177_s17 + $0xc0] sm:$0xff] }
  0x2c   : > { %2543 = vrot.lane.b32.xlu2 %v3236_v33, %s3135_s18  ;;  %v3408_v1 = vld [vmem:[%s3177_s17 + $0x90] sm:$0xff]  ;;  %v2677_v13 = vpack.i.bf16 %v3405_v0, %v3398_v63  ;;  %v2667_v23 = vpack.i.bf16 %v2249_v10, %v2248_v5  ;;  %v3435_v28 = vld [vmem:[%s3177_s17 + $0xf8] sm:$0xff]  ;;  %v2255_v41 = vld [vmem:[%s3177_s17 + $0xc8] sm:$0xff] }
  0x2d   : > { %2538 = vrot.lane.b32.xlu1 %v3238_v34, %s3135_s18  ;;  %2533 = vrot.lane.b32.xlu0 %v3240_v35, %s3135_s18  ;;  %4604 = vst [vmem:[#allocation12_spill] sm:$0xff] %v3394_v59  ;;  %v3425_v22 = vpack.i.bf16 %v3411_v4, %v3408_v1  ;;  %v3429_v27 = vld [vmem:[%s3177_s17 + $0xf0] sm:$0xff]  ;;  %v3438_v29 = vld [vmem:[%s3177_s17 + $0xd8] sm:$0xff] }
  0x2f   : > { %4605 = vst [vmem:[#allocation13_spill] sm:$0xff] %v3425_v22 }
  0x34   : > { %2558 = vrot.lane.b32.xlu2 %v3254_v42, %s3135_s18 }
  0x35   : > { %2553 = vrot.lane.b32.xlu1 %v3256_v43, %s3135_s18  ;;  %2548 = vrot.lane.b32.xlu0 %v3258_v44, %s3135_s18 }
  0x3c   : > { %2573 = vrot.lane.b32.xlu2 %v3272_v51, %s3136_s19 }
  0x3d   : > { %2568 = vrot.lane.b32.xlu1 %v2567_v52, %s3136_s19  ;;  %2563 = vrot.lane.b32.xlu0 %v3274_v53, %s3135_s18  ;;  %v3377_v52 = vld [vmem:[%s3177_s17 + $0x48] sm:$0xff] }
  0x3e   : > { %v3390_v58 = vpack.i.bf16 %v3380_v54, %v3377_v52 }
  0x40   : > { %4603 = vst [vmem:[#allocation11_spill] sm:$0xff] %v3390_v58 }
  0x44   : > { %2588 = vrot.lane.b32.xlu2 %v3287_v60, %s3136_s19 }
  0x45   : > { %2583 = vrot.lane.b32.xlu1 %v3289_v61, %s3136_s19  ;;  %2578 = vrot.lane.b32.xlu0 %v3291_v62, %s3136_s19 }
  0x4c   : > { %2603 = vrot.lane.b32.xlu2 %v3305_v6, %s3136_s19 }
  0x4d   : > { %2598 = vrot.lane.b32.xlu1 %v3307_v8, %s3136_s19  ;;  %2593 = vrot.lane.b32.xlu0 %v3309_v9, %s3136_s19 }
  0x54   : > { %2618 = vrot.lane.b32.xlu2 %v3323_v19, %s3136_s19 }
  0x55   : > { %2613 = vrot.lane.b32.xlu1 %v3325_v20, %s3136_s19  ;;  %2608 = vrot.lane.b32.xlu0 %v3327_v21, %s3136_s19 }
  0x5c   : > { %2633 = vrot.lane.b32.xlu2 %v3341_v31, %s3136_s19 }
  0x5d   : > { %2628 = vrot.lane.b32.xlu1 %v3343_v32, %s3136_s19  ;;  %2623 = vrot.lane.b32.xlu0 %v3345_v36, %s3136_s19  ;;  %v3494_v32 = vld [vmem:[%s3177_s17 + $0x168] sm:$0xff] }
  0x64   : > { %2648 = vrot.lane.b32.xlu2 %v2647_v46, %s3137_s20 }
  0x65   : > { %2643 = vrot.lane.b32.xlu1 %v3365_v47, %s3136_s19  ;;  %2638 = vrot.lane.b32.xlu0 %v3367_v48, %s3136_s19 }
  0x6c   : > { %2663 = vrot.lane.b32.xlu2 %v2662_v57, %s3137_s20 }
  0x6d   : > { %2658 = vrot.lane.b32.xlu1 %v3390_v58, %s3137_s20  ;;  %2653 = vrot.lane.b32.xlu0 %v3394_v59, %s3137_s20  ;;  %v2270_v59 = vld [vmem:[%s3177_s17 + $0x180] sm:$0xff] }
  0x6e   : > { %v2509_v2 = vpop.permute.xlu2 %2508 }
  0x6f   : > { %v2511_v11 = vunpack.i.h.bf16 %v2509_v2  ;;  %v2510_v12 = vunpack.i.l.bf16 %v2509_v2  ;;  %v2687_v2 = vpack.i.bf16 %v3441_v39, %v3438_v29 }
  0x71   : > { %v3418_v14 = vsel %vm1497_vm0, %v2246_v49, %v2510_v12  ;;  %v3421_v18 = vsel %vm1497_vm0, %v2247_v50, %v2511_v11  ;;  %v3447_v49 = vpack.i.bf16 %v3435_v28, %v3429_v27  ;;  %v2682_v11 = vpack.i.bf16 %v2255_v41, %v2254_v40  ;;  %v3460_v12 = vld [vmem:[%s3177_s17 + $0x138] sm:$0xff] }
  0x73   : > { %4606 = vst [vmem:[#allocation14_spill] sm:$0xff] %v3447_v49 }
  0x74   : > { %2678 = vrot.lane.b32.xlu2 %v2677_v13, %s3137_s20  ;;  %v3465_v13 = vld [vmem:[%s3177_s17 + $0x140] sm:$0xff] }
  0x75   : > { %2673 = vrot.lane.b32.xlu1 %v3425_v22, %s3137_s20  ;;  %2668 = vrot.lane.b32.xlu0 %v2667_v23, %s3137_s20  ;;  %v3471_v23 = vld [vmem:[%s3177_s17 + $0x128] sm:$0xff] }
  0x76   : > { %v2514_v30 = vpop.permute.xlu2 %2513  ;;  %4608 = vst [vmem:[#allocation16_spill] sm:$0xff] %v3471_v23 }
  0x77   : > { %v2516_v45 = vunpack.i.h.bf16 %v2514_v30  ;;  %v2515_v46 = vunpack.i.l.bf16 %v2514_v30  ;;  %v2260_v30 = vld [vmem:[%s3177_s17 + $0x108] sm:$0xff] }
  0x79   : > { %v3450_v50 = vsel %vm1497_vm0, %v2248_v5, %v2515_v46  ;;  %v3453_v57 = vsel %vm1497_vm0, %v2249_v10, %v2516_v45  ;;  %v3468_v5 = vld [vmem:[%s3177_s17 + $0x120] sm:$0xff]  ;;  %v2261_v45 = vld [vmem:[%s3177_s17 + $0x110] sm:$0xff] }
  0x7a   : > { %4607 = vst [vmem:[#allocation15_spill] sm:$0xff] %v3468_v5  ;;  %v2702_v58 = vpack.i.bf16 %v3471_v23, %v3468_v5  ;;  %v3485_v47 = vpack.i.bf16 %v2261_v45, %v2260_v30 }
  0x7c   : > { %2693 = vrot.lane.b32.xlu2 %v3447_v49, %s3137_s20  ;;  %4609 = vst [vmem:[#allocation17_spill] sm:$0xff] %v3485_v47 }
  0x7d   : > { %2688 = vrot.lane.b32.xlu1 %v2687_v2, %s3137_s20  ;;  %2683 = vrot.lane.b32.xlu0 %v2682_v11, %s3137_s20  ;;  %v2707_v2 = vpack.i.bf16 %v3465_v13, %v3460_v12 }
  0x7e   : > { %v2529_v10 = vpop.permute.xlu2 %2528 }
  0x7f   : > { %v2531_v46 = vunpack.i.h.bf16 %v2529_v10  ;;  %v2530_v49 = vunpack.i.l.bf16 %v2529_v10  ;;  %v2271_v10 = vld [vmem:[%s3177_s17 + $0x188] sm:$0xff] }
  0x80   : > { %v2722_v23 = vpack.i.bf16 %v2271_v10, %v2270_v59 }
  0x81   : > { %v3478_v11 = vsel %vm1497_vm0, %v2254_v40, %v2530_v49  ;;  %v3481_v22 = vsel %vm1497_vm0, %v2255_v41, %v2531_v46  ;;  %v3497_v49 = vld [vmem:[%s3177_s17 + $0x170] sm:$0xff]  ;;  %v2267_v46 = vld [vmem:[%s3177_s17 + $0x158] sm:$0xff] }
  0x82   : > { %v2266_v41 = vld [vmem:[%s3177_s17 + $0x150] sm:$0xff]  ;;  %v2717_v5 = vpack.i.bf16 %v3497_v49, %v3494_v32 }
  0x83   : > { %v2712_v8 = vpack.i.bf16 %v2267_v46, %v2266_v41 }
  0x84   : > { %2708 = vrot.lane.b32.xlu2 %v2707_v2, %s3137_s20 }
  0x85   : > { %2703 = vrot.lane.b32.xlu1 %v2702_v58, %s3137_s20  ;;  %2698 = vrot.lane.b32.xlu0 %v3485_v47, %s3137_s20 }
  0x86   : > { %v2544_v40 = vpop.permute.xlu2 %2543 }
  0x87   : > { %v2546_v31 = vunpack.i.h.bf16 %v2544_v40  ;;  %v2545_v48 = vunpack.i.l.bf16 %v2544_v40  ;;  %v2499_v20 = vpop.permute.xlu1 %2498  ;;  %v3501_v19 = vpop.permute.xlu0 %2488 }
  0x88   : > { %v2501_v2 = vunpack.i.h.bf16 %v2499_v20  ;;  %v2500_v36 = vunpack.i.l.bf16 %v2499_v20 }
  0x89   : > { %v3504_v58 = vsel %vm1497_vm0, %v2260_v30, %v2545_v48  ;;  %v3507_v47 = vsel %vm1497_vm0, %v2261_v45, %v2546_v31 }
  0x8a   : > { %v3513_v6 = vsel %vm1497_vm0, %v3383_v55, %v2500_v36  ;;  %v3517_v40 = vsel %vm1497_vm0, %v3386_v56, %v2501_v2 }
  0x8c   : > { %2723 = vrot.lane.b32.xlu2 %v2722_v23, %s3137_s20 }
  0x8d   : > { %2718 = vrot.lane.b32.xlu1 %v2717_v5, %s3137_s20  ;;  %2713 = vrot.lane.b32.xlu0 %v2712_v8, %s3137_s20 }
  0x8e   : > { %v2559_v20 = vpop.permute.xlu2 %2558 }
  0x8f   : > { %v2561_v31 = vunpack.i.h.bf16 %v2559_v20  ;;  %v2560_v48 = vunpack.i.l.bf16 %v2559_v20  ;;  %v3522_v59 = vpop.permute.xlu1 %2503  ;;  %v2494_v30 = vpop.permute.xlu0 %2493 }
  0x90   : > { %v2496_v55 = vunpack.i.h.bf16 %v2494_v30  ;;  %v2495_v56 = vunpack.i.l.bf16 %v2494_v30 }
  0x91   : > { %v3525_v45 = vsel %vm1497_vm0, %v2266_v41, %v2560_v48  ;;  %v3528_v36 = vsel %vm1497_vm0, %v2267_v46, %v2561_v31 }
  0x92   : > { %v1500_v46 = vsel %vm1497_vm0, %v3350_v37, %v2495_v56  ;;  %v1501_v2 = vsel %vm1497_vm0, %v3357_v38, %v2496_v55 }
  0x94   : > { %2738 = vrot.lane.b32.xlu2 %v3202_v16, %s3138_s21 }
  0x95   : > { %2733 = vrot.lane.b32.xlu1 %v3187_v7, %s3138_s21  ;;  %2728 = vrot.lane.b32.xlu0 %v3204_v17, %s3138_s21 }
  0x96   : > { %v2574_v8 = vpop.permute.xlu2 %2573 }
  0x97   : > { %v2576_v5 = vunpack.i.h.bf16 %v2574_v8  ;;  %v2575_v23 = vunpack.i.l.bf16 %v2574_v8  ;;  %v2524_v10 = vpop.permute.xlu1 %2523  ;;  %v3536_v41 = vpop.permute.xlu0 %2518 }
  0x98   : > { %v2525_v55 = vunpack.i.l.bf16 %v2524_v10 }
  0x99   : > { %v3543_v16 = vsel %vm1530_vm1, %v1500_v46, %v2575_v23  ;;  %v3546_v7 = vsel %vm1530_vm1, %v1501_v2, %v2576_v5  ;;  %v2490_v46 = vunpack.i.l.bf16 %v3501_v19 }
  0x9c   : > { %2753 = vrot.lane.b32.xlu2 %v3222_v26, %s3138_s21  ;;  %v2526_v26 = vunpack.i.h.bf16 %v2524_v10  ;;  %v2491_v10 = vunpack.i.h.bf16 %v3501_v19 }
  0x9d   : > { %2748 = vrot.lane.b32.xlu1 %v3200_v15, %s3138_s21  ;;  %2743 = vrot.lane.b32.xlu0 %v3182_v3, %s3138_s21 }
  0x9e   : > { %v2589_v17 = vpop.permute.xlu2 %2588 }
  0x9f   : > { %v2591_v37 = vunpack.i.h.bf16 %v2589_v17  ;;  %v2590_v20 = vunpack.i.l.bf16 %v2589_v17  ;;  %v2539_v31 = vpop.permute.xlu1 %2538  ;;  %v3554_v38 = vpop.permute.xlu0 %2533 }
  0xa0   : > { %v2540_v23 = vunpack.i.l.bf16 %v2539_v31 }
  0xa1   : > { %v3558_v48 = vsel %vm1530_vm1, %v3418_v14, %v2590_v20  ;;  %v3562_v30 = vsel %vm1530_vm1, %v3421_v18, %v2591_v37  ;;  %v1512_v18 = vsel %vm1497_vm0, %v3398_v63, %v2525_v55  ;;  %v183_v63 = vld [vmem:[%s3177_s17] sm:$0xff] }
  0xa4   : > { %2768 = vrot.lane.b32.xlu2 %v3240_v35, %s3138_s21  ;;  %v1513_v35 = vsel %vm1497_vm0, %v3405_v0, %v2526_v26  ;;  %v184_v0 = vld [vmem:[%s3177_s17 + $0x8] sm:$0xff] }
  0xa5   : > { %2763 = vrot.lane.b32.xlu1 %v3218_v24, %s3138_s21  ;;  %2758 = vrot.lane.b32.xlu0 %v3220_v25, %s3138_s21  ;;  %v2541_v25 = vunpack.i.h.bf16 %v2539_v31 }
  0xa6   : > { %v2604_v3 = vpop.permute.xlu2 %2603 }
  0xa7   : > { %v2606_v15 = vunpack.i.h.bf16 %v2604_v3  ;;  %v2605_v14 = vunpack.i.l.bf16 %v2604_v3  ;;  %v2554_v56 = vpop.permute.xlu1 %2553  ;;  %v3570_v8 = vpop.permute.xlu0 %2548  ;;  %v1519_v19 = vsel %vm1497_vm0, %v3435_v28, %v2541_v25  ;;  %v2506_v25 = vunpack.i.h.bf16 %v3522_v59 }
  0xa9   : > { %v3577_v5 = vsel %vm1530_vm1, %v1512_v18, %v2605_v14  ;;  %v3580_v24 = vsel %vm1530_vm1, %v1513_v35, %v2606_v15  ;;  %v2505_v14 = vunpack.i.l.bf16 %v3522_v59  ;;  %v2556_v18 = vunpack.i.h.bf16 %v2554_v56 }
  0xaa   : > { %v2555_v35 = vunpack.i.l.bf16 %v2554_v56 }
  0xac   : > { %2783 = vrot.lane.b32.xlu2 %v3258_v44, %s3138_s21  ;;  %v1518_v44 = vsel %vm1497_vm0, %v3429_v27, %v2540_v23  ;;  %v1504_v23 = vsel %vm1497_vm0, %v3377_v52, %v2505_v14  ;;  %v1524_v56 = vsel %vm1497_vm0, %v3460_v12, %v2555_v35  ;;  %v1505_v52 = vsel %vm1497_vm0, %v3380_v54, %v2506_v25 }
  0xad   : > { %2778 = vrot.lane.b32.xlu1 %v3236_v33, %s3138_s21  ;;  %2773 = vrot.lane.b32.xlu0 %v3238_v34, %s3138_s21  ;;  %v1498_v33 = vsel %vm1497_vm0, %v183_v63, %v2490_v46  ;;  %v1499_v34 = vsel %vm1497_vm0, %v184_v0, %v2491_v10  ;;  %v2302_v46 = vld [vmem:[%s3177_s17 + $0x181] sm:$0xff]  ;;  %v2303_v63 = vld [vmem:[%s3177_s17 + $0x189] sm:$0xff]  ;;  %v2521_v54 = vunpack.i.h.bf16 %v3536_v41 }
  0xae   : > { %v2619_v2 = vpop.permute.xlu2 %2618  ;;  %v3632_v12 = vpack.i.bf16 %v2303_v63, %v2302_v46 }
  0xaf   : > { %v2621_v17 = vunpack.i.h.bf16 %v2619_v2  ;;  %v2620_v37 = vunpack.i.l.bf16 %v2619_v2  ;;  %v2569_v20 = vpop.permute.xlu1 %2568  ;;  %v3592_v31 = vpop.permute.xlu0 %2563 }
  0xb0   : > { %v2571_v26 = vunpack.i.h.bf16 %v2569_v20  ;;  %v2570_v55 = vunpack.i.l.bf16 %v2569_v20 }
  0xb1   : > { %v3601_v3 = vsel %vm1530_vm1, %v1518_v44, %v2620_v37  ;;  %v3604_v15 = vsel %vm1530_vm1, %v1519_v19, %v2621_v17 }
  0xb2   : > { %v1531_v27 = vsel %vm1530_vm1, %v1498_v33, %v2570_v55  ;;  %v1532_v28 = vsel %vm1530_vm1, %v1499_v34, %v2571_v26  ;;  %v2520_v34 = vunpack.i.l.bf16 %v3536_v41  ;;  %v1511_v41 = vsel %vm1497_vm0, %v3411_v4, %v2521_v54 }
  0xb3   : > { %v2536_v4 = vunpack.i.h.bf16 %v3554_v38 }
  0xb4   : > { %2798 = vrot.lane.b32.xlu2 %v3274_v53, %s3138_s21  ;;  %v1525_v53 = vsel %vm1497_vm0, %v3465_v13, %v2556_v18  ;;  %v1510_v63 = vsel %vm1497_vm0, %v3408_v1, %v2520_v34 }
  0xb5   : > { %2793 = vrot.lane.b32.xlu1 %v3254_v42, %s3138_s21  ;;  %2788 = vrot.lane.b32.xlu0 %v3256_v43, %s3138_s21 }
  0xb6   : > { %v2634_v10 = vpop.permute.xlu2 %2633 }
  0xb7   : > { %v2636_v0 = vunpack.i.h.bf16 %v2634_v10  ;;  %v2635_v59 = vunpack.i.l.bf16 %v2634_v10  ;;  %v2584_v2 = vpop.permute.xlu1 %2583  ;;  %v2579_v17 = vpop.permute.xlu0 %2578 }
  0xb8   : > { %v2586_v42 = vunpack.i.h.bf16 %v2584_v2  ;;  %v2585_v37 = vunpack.i.l.bf16 %v2584_v2  ;;  %v2581_v20 = vunpack.i.h.bf16 %v2579_v17  ;;  %v2580_v43 = vunpack.i.l.bf16 %v2579_v17 }
  0xb9   : > { %v3627_v44 = vsel %vm1530_vm1, %v1524_v56, %v2635_v59  ;;  %v3630_v19 = vsel %vm1530_vm1, %v1525_v53, %v2636_v0 }
  0xba   : > { %v1537_v13 = vsel %vm1530_vm1, %v1504_v23, %v2585_v37  ;;  %v1538_v26 = vsel %vm1530_vm1, %v1505_v52, %v2586_v42  ;;  %v3638_v55 = vsel %vm1530_vm1, %v3513_v6, %v2580_v43  ;;  %v3642_v33 = vsel %vm1530_vm1, %v3517_v40, %v2581_v20 }
  0xbc   : > { %2813 = vrot.lane.b32.xlu2 %v3291_v62, %s3139_s22 }
  0xbd   : > { %2808 = vrot.lane.b32.xlu1 %v3272_v51, %s3139_s22  ;;  %2803 = vrot.lane.b32.xlu0 %v3632_v12, %s3138_s21 }
  0xbe   : > { %v2649_v6 = vpop.permute.xlu2 %2648 }
  0xbf   : > { %v2651_v14 = vunpack.i.h.bf16 %v2649_v6  ;;  %v2650_v18 = vunpack.i.l.bf16 %v2649_v6  ;;  %v2599_v40 = vpop.permute.xlu1 %2598  ;;  %v2594_v35 = vpop.permute.xlu0 %2593  ;;  %v4611_v6 = vld [vmem:[#allocation3_spill] sm:$0xff] }
  0xc0   : > { %v2601_v25 = vunpack.i.h.bf16 %v2599_v40  ;;  %v2600_v23 = vunpack.i.l.bf16 %v2599_v40  ;;  %v2596_v10 = vunpack.i.h.bf16 %v2594_v35  ;;  %v2595_v46 = vunpack.i.l.bf16 %v2594_v35 }
  0xc1   : > { %v3657_v51 = vsel %vm1563_vm2, %v1531_v27, %v2650_v18  ;;  %v3660_v56 = vsel %vm1563_vm2, %v1532_v28, %v2651_v14  ;;  %v2535_v27 = vunpack.i.l.bf16 %v3554_v38  ;;  %v1517_v38 = vsel %vm1497_vm0, %v3441_v39, %v2536_v4 }
  0xc2   : > { %v1543_v53 = vsel %vm1530_vm1, %v1510_v63, %v2600_v23  ;;  %v1544_v0 = vsel %vm1530_vm1, %v1511_v41, %v2601_v25  ;;  %v3666_v59 = vsel %vm1530_vm1, %v3450_v50, %v2595_v46  ;;  %v3670_v1 = vsel %vm1530_vm1, %v3453_v57, %v2596_v10  ;;  %v4613_v63 = vld [vmem:[#allocation16_spill] sm:$0xff] }
  0xc3   : > { %v2551_v39 = vunpack.i.h.bf16 %v3570_v8 }
  0xc4   : > { %2828 = vrot.lane.b32.xlu2 %v3309_v9, %s3139_s22  ;;  %v1516_v9 = vsel %vm1497_vm0, %v3438_v29, %v2535_v27 }
  0xc5   : > { %2823 = vrot.lane.b32.xlu1 %v3287_v60, %s3139_s22  ;;  %2818 = vrot.lane.b32.xlu0 %v3289_v61, %s3139_s22 }
  0xc6   : > { %v2664_v28 = vpop.permute.xlu2 %2663 }
  0xc7   : > { %v2666_v50 = vunpack.i.h.bf16 %v2664_v28  ;;  %v2665_v2 = vunpack.i.l.bf16 %v2664_v28  ;;  %v2614_v17 = vpop.permute.xlu1 %2613  ;;  %v2609_v42 = vpop.permute.xlu0 %2608 }
  0xc8   : > { %v2616_v57 = vunpack.i.h.bf16 %v2614_v17  ;;  %v2615_v37 = vunpack.i.l.bf16 %v2614_v17  ;;  %v2611_v20 = vunpack.i.h.bf16 %v2609_v42  ;;  %v2610_v43 = vunpack.i.l.bf16 %v2609_v42  ;;  %v4614_v17 = vld [vmem:[#allocation8_spill] sm:$0xff] }
  0xc9   : > { %v3685_v60 = vsel %vm1563_vm2, %v1537_v13, %v2665_v2  ;;  %v3688_v61 = vsel %vm1563_vm2, %v1538_v26, %v2666_v50  ;;  %v2550_v13 = vunpack.i.l.bf16 %v3570_v8  ;;  %v4610_v26 = vld [vmem:[#allocation2_spill] sm:$0xff]  ;;  %v1523_v8 = vsel %vm1497_vm0, %v4613_v63, %v2551_v39  ;;  %v4615_v42 = vld [vmem:[#allocation4_spill] sm:$0xff] }
  0xca   : > { %v1549_v52 = vsel %vm1530_vm1, %v1516_v9, %v2615_v37  ;;  %v1550_v54 = vsel %vm1530_vm1, %v1517_v38, %v2616_v57  ;;  %v3694_v34 = vsel %vm1530_vm1, %v3478_v11, %v2610_v43  ;;  %v3698_v29 = vsel %vm1530_vm1, %v3481_v22, %v2611_v20  ;;  %v4616_v57 = vld [vmem:[#allocation5_spill] sm:$0xff] }
  0xcc   : > { %2843 = vrot.lane.b32.xlu2 %v3327_v21, %s3139_s22  ;;  %v4612_v21 = vld [vmem:[#allocation15_spill] sm:$0xff] }
  0xcd   : > { %2838 = vrot.lane.b32.xlu1 %v4610_v26, %s3139_s22  ;;  %2833 = vrot.lane.b32.xlu0 %v4611_v6, %s3139_s22  ;;  %v1522_v46 = vsel %vm1497_vm0, %v4612_v21, %v2550_v13 }
  0xce   : > { %v2679_v14 = vpop.permute.xlu2 %2678 }
  0xcf   : > { %v2681_v11 = vunpack.i.h.bf16 %v2679_v14  ;;  %v2680_v18 = vunpack.i.l.bf16 %v2679_v14  ;;  %v2629_v40 = vpop.permute.xlu1 %2628  ;;  %v2624_v35 = vpop.permute.xlu0 %2623 }
  0xd0   : > { %v2631_v22 = vunpack.i.h.bf16 %v2629_v40  ;;  %v2630_v25 = vunpack.i.l.bf16 %v2629_v40  ;;  %v2626_v23 = vunpack.i.h.bf16 %v2624_v35  ;;  %v2625_v10 = vunpack.i.l.bf16 %v2624_v35 }
  0xd1   : > { %v3713_v41 = vsel %vm1563_vm2, %v1543_v53, %v2680_v18  ;;  %v3716_v4 = vsel %vm1563_vm2, %v1544_v0, %v2681_v11  ;;  %v2566_v53 = vunpack.i.h.bf16 %v3592_v31  ;;  %v2565_v0 = vunpack.i.l.bf16 %v3592_v31 }
  0xd2   : > { %v1555_v27 = vsel %vm1530_vm1, %v1522_v46, %v2630_v25  ;;  %v1556_v28 = vsel %vm1530_vm1, %v1523_v8, %v2631_v22  ;;  %v3722_v50 = vsel %vm1530_vm1, %v3504_v58, %v2625_v10  ;;  %v3726_v2 = vsel %vm1530_vm1, %v3507_v47, %v2626_v23  ;;  %v2334_v22 = vld [vmem:[%s3177_s17 + $0x182] sm:$0xff]  ;;  %v2335_v25 = vld [vmem:[%s3177_s17 + $0x18a] sm:$0xff] }
  0xd3   : > { %v1528_v31 = vsel %vm1497_vm0, %v3494_v32, %v2565_v0  ;;  %v1529_v26 = vsel %vm1497_vm0, %v3497_v49, %v2566_v53  ;;  %v4617_v49 = vld [vmem:[#allocation10_spill] sm:$0xff]  ;;  %v3770_v0 = vpack.i.bf16 %v2335_v25, %v2334_v22  ;;  %v4622_v22 = vld [vmem:[#allocation11_spill] sm:$0xff] }
  0xd4   : > { %2858 = vrot.lane.b32.xlu2 %v4614_v17, %s3139_s22  ;;  %v2377_v25 = vld [vmem:[%s3177_s17 + $0x99] sm:$0xff] }
  0xd5   : > { %2853 = vrot.lane.b32.xlu1 %v4615_v42, %s3139_s22  ;;  %2848 = vrot.lane.b32.xlu0 %v4616_v57, %s3139_s22 }
  0xd6   : > { %v2694_v37 = vpop.permute.xlu2 %2693 }
  0xd7   : > { %v2696_v58 = vunpack.i.h.bf16 %v2694_v37  ;;  %v2695_v20 = vunpack.i.l.bf16 %v2694_v37  ;;  %v2644_v43 = vpop.permute.xlu1 %2643  ;;  %v2639_v9 = vpop.permute.xlu0 %2638 }
  0xd8   : > { %v2646_v47 = vunpack.i.h.bf16 %v2644_v43  ;;  %v2645_v38 = vunpack.i.l.bf16 %v2644_v43  ;;  %v2641_v39 = vunpack.i.h.bf16 %v2639_v9  ;;  %v2640_v13 = vunpack.i.l.bf16 %v2639_v9 }
  0xd9   : > { %v3741_v6 = vsel %vm1563_vm2, %v1549_v52, %v2695_v20  ;;  %v3744_v14 = vsel %vm1563_vm2, %v1550_v54, %v2696_v58  ;;  %v4618_v52 = vld [vmem:[#allocation6_spill] sm:$0xff]  ;;  %v4619_v54 = vld [vmem:[#allocation7_spill] sm:$0xff] }
  0xda   : > { %v1561_v11 = vsel %vm1530_vm1, %v1528_v31, %v2645_v38  ;;  %v1562_v18 = vsel %vm1530_vm1, %v1529_v26, %v2646_v47  ;;  %v3750_v40 = vsel %vm1530_vm1, %v3525_v45, %v2640_v13  ;;  %v3754_v32 = vsel %vm1530_vm1, %v3528_v36, %v2641_v39  ;;  %v2369_v20 = vld [vmem:[%s3177_s17 + $0x39] sm:$0xff] }
  0xdc   : > { %2873 = vrot.lane.b32.xlu2 %v4617_v49, %s3139_s22 }
  0xdd   : > { %2868 = vrot.lane.b32.xlu1 %v4618_v52, %s3139_s22  ;;  %2863 = vrot.lane.b32.xlu0 %v4619_v54, %s3139_s22 }
  0xde   : > { %v2709_v35 = vpop.permute.xlu2 %2708 }
  0xdf   : > { %v2711_v23 = vunpack.i.h.bf16 %v2709_v35  ;;  %v2710_v10 = vunpack.i.l.bf16 %v2709_v35  ;;  %v2659_v45 = vpop.permute.xlu1 %2658  ;;  %v2654_v21 = vpop.permute.xlu0 %2653 }
  0xe0   : > { %v2661_v46 = vunpack.i.h.bf16 %v2659_v45  ;;  %v2660_v36 = vunpack.i.l.bf16 %v2659_v45  ;;  %v2656_v63 = vunpack.i.h.bf16 %v2654_v21  ;;  %v2655_v8 = vunpack.i.l.bf16 %v2654_v21 }
  0xe1   : > { %v3765_v17 = vsel %vm1563_vm2, %v1555_v27, %v2710_v10  ;;  %v3768_v53 = vsel %vm1563_vm2, %v1556_v28, %v2711_v23  ;;  %v4620_v27 = vld [vmem:[#allocation12_spill] sm:$0xff] }
  0xe2   : > { %v1568_v42 = vsel %vm1563_vm2, %v3638_v55, %v2660_v36  ;;  %v1569_v57 = vsel %vm1563_vm2, %v3642_v33, %v2661_v46  ;;  %v3778_v37 = vsel %vm1563_vm2, %v3543_v16, %v2655_v8  ;;  %v3782_v58 = vsel %vm1563_vm2, %v3546_v7, %v2656_v63  ;;  %v4621_v55 = vld [vmem:[#allocation9_spill] sm:$0xff] }
  0xe3   : > { %v2368_v33 = vld [vmem:[%s3177_s17 + $0x31] sm:$0xff] }
  0xe4   : > { %2888 = vrot.lane.b32.xlu2 %v4620_v27, %s3140_s23  ;;  %v2892_v49 = vpack.i.bf16 %v2369_v20, %v2368_v33 }
  0xe5   : > { %2883 = vrot.lane.b32.xlu1 %v3770_v0, %s3139_s22  ;;  %2878 = vrot.lane.b32.xlu0 %v4621_v55, %s3139_s22 }
  0xe6   : > { %v2724_v28 = vpop.permute.xlu2 %2723 }
  0xe7   : > { %v2726_v43 = vunpack.i.h.bf16 %v2724_v28  ;;  %v2725_v16 = vunpack.i.l.bf16 %v2724_v28  ;;  %v2674_v9 = vpop.permute.xlu1 %2673  ;;  %v2669_v7 = vpop.permute.xlu0 %2668 }
  0xe8   : > { %v2676_v47 = vunpack.i.h.bf16 %v2674_v9  ;;  %v2675_v38 = vunpack.i.l.bf16 %v2674_v9  ;;  %v2671_v39 = vunpack.i.h.bf16 %v2669_v7  ;;  %v2670_v13 = vunpack.i.l.bf16 %v2669_v7  ;;  %v2402_v9 = vld [vmem:[%s3177_s17 + $0x4a] sm:$0xff] }
  0xe9   : > { %v3793_v31 = vsel %vm1563_vm2, %v1561_v11, %v2725_v16  ;;  %v3796_v26 = vsel %vm1563_vm2, %v1562_v18, %v2726_v43  ;;  %v2376_v18 = vld [vmem:[%s3177_s17 + $0x91] sm:$0xff]  ;;  %v2409_v16 = vld [vmem:[%s3177_s17 + $0x9a] sm:$0xff] }
  0xea   : > { %v1574_v52 = vsel %vm1563_vm2, %v3666_v59, %v2675_v38  ;;  %v1575_v54 = vsel %vm1563_vm2, %v3670_v1, %v2676_v47  ;;  %v3804_v35 = vsel %vm1563_vm2, %v3558_v48, %v2670_v13  ;;  %v3808_v11 = vsel %vm1563_vm2, %v3562_v30, %v2671_v39  ;;  %v2370_v48 = vld [vmem:[%s3177_s17 + $0x49] sm:$0xff]  ;;  %v2371_v1 = vld [vmem:[%s3177_s17 + $0x51] sm:$0xff] }
  0xeb   : > { %v2917_v21 = vpack.i.bf16 %v2377_v25, %v2376_v18  ;;  %v2912_v55 = vpack.i.bf16 %v2371_v1, %v2370_v48 }
  0xec   : > { %2903 = vrot.lane.b32.xlu2 %v4622_v22, %s3140_s23 }
  0xed   : > { %2898 = vrot.lane.b32.xlu1 %v3291_v62, %s3141_s24  ;;  %2893 = vrot.lane.b32.xlu0 %v2892_v49, %s3142_s25 }
  0xee   : > { %v2739_v59 = vpop.permute.xlu2 %2738 }
  0xef   : > { %v2741_v23 = vunpack.i.h.bf16 %v2739_v59  ;;  %v2740_v10 = vunpack.i.l.bf16 %v2739_v59  ;;  %v2689_v30 = vpop.permute.xlu1 %2688  ;;  %v2684_v45 = vpop.permute.xlu0 %2683 }
  0xf0   : > { %v2691_v46 = vunpack.i.h.bf16 %v2689_v30  ;;  %v2690_v36 = vunpack.i.l.bf16 %v2689_v30  ;;  %v2686_v63 = vunpack.i.h.bf16 %v2684_v45  ;;  %v2685_v62 = vunpack.i.l.bf16 %v2684_v45  ;;  %v2341_v30 = vld [vmem:[%s3177_s17 + $0x68] sm:$0xff] }
  0xf1   : > { %v3820_v8 = vsel %vm1596_vm3, %v1568_v42, %v2740_v10  ;;  %v3823_v27 = vsel %vm1596_vm3, %v1569_v57, %v2741_v23  ;;  %v4623_v42 = vld [vmem:[#allocation13_spill] sm:$0xff]  ;;  %v2340_v10 = vld [vmem:[%s3177_s17 + $0x60] sm:$0xff] }
  0xf2   : > { %v1580_v28 = vsel %vm1563_vm2, %v3694_v34, %v2690_v36  ;;  %v1581_v33 = vsel %vm1563_vm2, %v3698_v29, %v2691_v46  ;;  %v3831_v20 = vsel %vm1563_vm2, %v3577_v5, %v2685_v62  ;;  %v3835_v43 = vsel %vm1563_vm2, %v3580_v24, %v2686_v63  ;;  %v2408_v57 = vld [vmem:[%s3177_s17 + $0x92] sm:$0xff] }
  0xf3   : > { %v2403_v29 = vld [vmem:[%s3177_s17 + $0x52] sm:$0xff]  ;;  %v2927_v25 = vpack.i.bf16 %v2409_v16, %v2408_v57  ;;  %v2947_v62 = vpack.i.bf16 %v2341_v30, %v2340_v10 }
  0xf4   : > { %2918 = vrot.lane.b32.xlu2 %v2917_v21, %s3142_s25  ;;  %v2922_v59 = vpack.i.bf16 %v2403_v29, %v2402_v9  ;;  %v2384_v21 = vld [vmem:[%s3177_s17 + $0xf1] sm:$0xff]  ;;  %v2385_v46 = vld [vmem:[%s3177_s17 + $0xf9] sm:$0xff] }
  0xf5   : > { %2913 = vrot.lane.b32.xlu1 %v2912_v55, %s3142_s25  ;;  %2908 = vrot.lane.b32.xlu0 %v4623_v42, %s3140_s23 }
  0xf6   : > { %v2754_v34 = vpop.permute.xlu2 %2753 }
  0xf7   : > { %v2756_v7 = vunpack.i.h.bf16 %v2754_v34  ;;  %v2755_v47 = vunpack.i.l.bf16 %v2754_v34  ;;  %v2704_v5 = vpop.permute.xlu1 %2703  ;;  %v2699_v38 = vpop.permute.xlu0 %2698 }
  0xf8   : > { %v2706_v24 = vunpack.i.h.bf16 %v2704_v5  ;;  %v2705_v39 = vunpack.i.l.bf16 %v2704_v5  ;;  %v2701_v13 = vunpack.i.h.bf16 %v2699_v38  ;;  %v2700_v49 = vunpack.i.l.bf16 %v2699_v38 }
  0xf9   : > { %v3846_v22 = vsel %vm1596_vm3, %v1574_v52, %v2755_v47  ;;  %v3849_v18 = vsel %vm1596_vm3, %v1575_v54, %v2756_v7  ;;  %v4624_v54 = vld [vmem:[#allocation14_spill] sm:$0xff]  ;;  %v2937_v7 = vpack.i.bf16 %v2385_v46, %v2384_v21 }
  0xfa   : > { %v1586_v48 = vsel %vm1563_vm2, %v3722_v50, %v2705_v39  ;;  %v1587_v1 = vsel %vm1563_vm2, %v3726_v2, %v2706_v24  ;;  %v3857_v23 = vsel %vm1563_vm2, %v3601_v3, %v2700_v49  ;;  %v3861_v52 = vsel %vm1563_vm2, %v3604_v15, %v2701_v13  ;;  %v2416_v50 = vld [vmem:[%s3177_s17 + $0xf2] sm:$0xff]  ;;  %v2417_v2 = vld [vmem:[%s3177_s17 + $0xfa] sm:$0xff]  ;;  %v2373_v13 = vld [vmem:[%s3177_s17 + $0x69] sm:$0xff] }
  0xfb   : > { %v2942_v29 = vpack.i.bf16 %v2417_v2, %v2416_v50  ;;  %v2379_v24 = vld [vmem:[%s3177_s17 + $0xb1] sm:$0xff] }
  0xfc   : > { %2933 = vrot.lane.b32.xlu2 %v4624_v54, %s3140_s23  ;;  %v2347_v49 = vld [vmem:[%s3177_s17 + $0xb0] sm:$0xff] }
  0xfd   : > { %2928 = vrot.lane.b32.xlu1 %v2927_v25, %s3141_s24  ;;  %2923 = vrot.lane.b32.xlu0 %v2922_v59, %s3141_s24 }
  0xfe   : > { %v2769_v45 = vpop.permute.xlu2 %2768 }
  0xff   : > { %v2771_v3 = vunpack.i.h.bf16 %v2769_v45  ;;  %v2770_v36 = vunpack.i.l.bf16 %v2769_v45  ;;  %v2719_v63 = vpop.permute.xlu1 %2718  ;;  %v2714_v15 = vpop.permute.xlu0 %2713 }
 0x100   : > { %v2721_v55 = vunpack.i.h.bf16 %v2719_v63  ;;  %v2720_v42 = vunpack.i.l.bf16 %v2719_v63  ;;  %v2716_v57 = vunpack.i.h.bf16 %v2714_v15  ;;  %v2715_v34 = vunpack.i.l.bf16 %v2714_v15 }
 0x101   : > { %v3874_v16 = vsel %vm1596_vm3, %v1580_v28, %v2770_v36  ;;  %v3877_v9 = vsel %vm1596_vm3, %v1581_v33, %v2771_v3  ;;  %v2378_v33 = vld [vmem:[%s3177_s17 + $0xa9] sm:$0xff] }
 0x102   : > { %v1592_v47 = vsel %vm1563_vm2, %v3750_v40, %v2720_v42  ;;  %v1593_v5 = vsel %vm1563_vm2, %v3754_v32, %v2721_v55  ;;  %v3885_v38 = vsel %vm1563_vm2, %v3627_v44, %v2715_v34  ;;  %v3889_v28 = vsel %vm1563_vm2, %v3630_v19, %v2716_v57  ;;  %v2372_v40 = vld [vmem:[%s3177_s17 + $0x61] sm:$0xff] }
 0x103   : > { %v2346_v32 = vld [vmem:[%s3177_s17 + $0xa8] sm:$0xff]  ;;  %v2962_v10 = vpack.i.bf16 %v2379_v24, %v2378_v33  ;;  %v2957_v46 = vpack.i.bf16 %v2373_v13, %v2372_v40 }
 0x104   : > { %2948 = vrot.lane.b32.xlu2 %v2947_v62, %s3140_s23  ;;  %v2952_v3 = vpack.i.bf16 %v2347_v49, %v2346_v32  ;;  %v2411_v62 = vld [vmem:[%s3177_s17 + $0xb2] sm:$0xff]  ;;  %v2404_v55 = vld [vmem:[%s3177_s17 + $0x62] sm:$0xff] }
 0x105   : > { %2943 = vrot.lane.b32.xlu1 %v2942_v29, %s3141_s24  ;;  %2938 = vrot.lane.b32.xlu0 %v2937_v7, %s3142_s25 }
 0x106   : > { %v2784_v39 = vpop.permute.xlu2 %2783 }
 0x107   : > { %v2786_v25 = vunpack.i.h.bf16 %v2784_v39  ;;  %v2785_v44 = vunpack.i.l.bf16 %v2784_v39  ;;  %v2734_v59 = vpop.permute.xlu1 %2733  ;;  %v2729_v54 = vpop.permute.xlu0 %2728 }
 0x108   : > { %v2736_v19 = vunpack.i.h.bf16 %v2734_v59  ;;  %v2735_v30 = vunpack.i.l.bf16 %v2734_v59  ;;  %v2731_v50 = vunpack.i.h.bf16 %v2729_v54  ;;  %v2730_v45 = vunpack.i.l.bf16 %v2729_v54  ;;  %v2393_v59 = vld [vmem:[%s3177_s17 + $0x159] sm:$0xff]  ;;  %v2387_v54 = vld [vmem:[%s3177_s17 + $0x111] sm:$0xff] }
 0x109   : > { %v3901_v2 = vsel %vm1596_vm3, %v1586_v48, %v2785_v44  ;;  %v3904_v21 = vsel %vm1596_vm3, %v1587_v1, %v2786_v25  ;;  %v2392_v44 = vld [vmem:[%s3177_s17 + $0x151] sm:$0xff] }
 0x10a   : > { %v3908_v36 = vsel %vm1596_vm3, %v3778_v37, %v2735_v30  ;;  %v3912_v63 = vsel %vm1596_vm3, %v3782_v58, %v2736_v19  ;;  %v3916_v15 = vsel %vm1596_vm3, %v3657_v51, %v2730_v45  ;;  %v3920_v48 = vsel %vm1596_vm3, %v3660_v56, %v2731_v50  ;;  %v2410_v37 = vld [vmem:[%s3177_s17 + $0xaa] sm:$0xff] }
 0x10b   : > { %v2405_v58 = vld [vmem:[%s3177_s17 + $0x6a] sm:$0xff]  ;;  %v2972_v39 = vpack.i.bf16 %v2411_v62, %v2410_v37  ;;  %v2992_v30 = vpack.i.bf16 %v2393_v59, %v2392_v44 }
 0x10c   : > { %2963 = vrot.lane.b32.xlu2 %v2962_v10, %s3142_s25  ;;  %v2967_v13 = vpack.i.bf16 %v2405_v58, %v2404_v55  ;;  %v2360_v10 = vld [vmem:[%s3177_s17 + $0x150] sm:$0xff] }
 0x10d   : > { %2958 = vrot.lane.b32.xlu1 %v2957_v46, %s3142_s25  ;;  %2953 = vrot.lane.b32.xlu0 %v2952_v3, %s3140_s23 }
 0x10e   : > { %v2799_v1 = vpop.permute.xlu2 %2798 }
 0x10f   : > { %v2801_v42 = vunpack.i.h.bf16 %v2799_v1  ;;  %v2800_v57 = vunpack.i.l.bf16 %v2799_v1  ;;  %v2749_v51 = vpop.permute.xlu1 %2748  ;;  %v2744_v34 = vpop.permute.xlu0 %2743 }
 0x110   : > { %v2751_v29 = vunpack.i.h.bf16 %v2749_v51  ;;  %v2750_v56 = vunpack.i.l.bf16 %v2749_v51  ;;  %v2746_v7 = vunpack.i.h.bf16 %v2744_v34  ;;  %v2745_v33 = vunpack.i.l.bf16 %v2744_v34  ;;  %v2343_v51 = vld [vmem:[%s3177_s17 + $0x80] sm:$0xff] }
 0x111   : > { %v3930_v24 = vsel %vm1596_vm3, %v1592_v47, %v2800_v57  ;;  %v3933_v40 = vsel %vm1596_vm3, %v1593_v5, %v2801_v42  ;;  %v4625_v5 = vld [vmem:[#allocation17_spill] sm:$0xff] }
 0x112   : > { %v3937_v32 = vsel %vm1596_vm3, %v3804_v35, %v2750_v56  ;;  %v3941_v49 = vsel %vm1596_vm3, %v3808_v11, %v2751_v29  ;;  %v3945_v25 = vsel %vm1596_vm3, %v3685_v60, %v2745_v33  ;;  %v3949_v47 = vsel %vm1596_vm3, %v3688_v61, %v2746_v7  ;;  %v2386_v35 = vld [vmem:[%s3177_s17 + $0x109] sm:$0xff]  ;;  %v2361_v60 = vld [vmem:[%s3177_s17 + $0x158] sm:$0xff] }
 0x113   : > { %v2987_v37 = vpack.i.bf16 %v2387_v54, %v2386_v35  ;;  %v2982_v1 = vpack.i.bf16 %v2361_v60, %v2360_v10  ;;  %v2342_v57 = vld [vmem:[%s3177_s17 + $0x78] sm:$0xff]  ;;  %v2418_v29 = vld [vmem:[%s3177_s17 + $0x10a] sm:$0xff] }
 0x114   : > { %2978 = vrot.lane.b32.xlu2 %v4625_v5, %s3140_s23 }
 0x115   : > { %2973 = vrot.lane.b32.xlu1 %v2972_v39, %s3141_s24  ;;  %2968 = vrot.lane.b32.xlu0 %v2967_v13, %s3141_s24 }
 0x116   : > { %v3958_v11 = vpop.permute.xlu2 %2813 }
 0x117   : > { %v2764_v19 = vpop.permute.xlu1 %2763  ;;  %v2759_v61 = vpop.permute.xlu0 %2758 }
 0x118   : > { %v2766_v50 = vunpack.i.h.bf16 %v2764_v19  ;;  %v2765_v45 = vunpack.i.l.bf16 %v2764_v19  ;;  %v2761_v46 = vunpack.i.h.bf16 %v2759_v61  ;;  %v2760_v3 = vunpack.i.l.bf16 %v2759_v61  ;;  %v2380_v19 = vld [vmem:[%s3177_s17 + $0xc1] sm:$0xff]  ;;  %v2381_v61 = vld [vmem:[%s3177_s17 + $0xc9] sm:$0xff] }
 0x11a   : > { %v1611_v62 = vsel %vm1596_vm3, %v3831_v20, %v2765_v45  ;;  %v1612_v55 = vsel %vm1596_vm3, %v3835_v43, %v2766_v50  ;;  %v3969_v58 = vsel %vm1596_vm3, %v3713_v41, %v2760_v3  ;;  %v3973_v42 = vsel %vm1596_vm3, %v3716_v4, %v2761_v46  ;;  %v2424_v20 = vld [vmem:[%s3177_s17 + $0x152] sm:$0xff]  ;;  %v2425_v43 = vld [vmem:[%s3177_s17 + $0x15a] sm:$0xff]  ;;  %v2349_v45 = vld [vmem:[%s3177_s17 + $0xc8] sm:$0xff] }
 0x11b   : > { %v2419_v41 = vld [vmem:[%s3177_s17 + $0x112] sm:$0xff]  ;;  %v3007_v4 = vpack.i.bf16 %v2343_v51, %v2342_v57  ;;  %v3002_v44 = vpack.i.bf16 %v2425_v43, %v2424_v20  ;;  %v2375_v50 = vld [vmem:[%s3177_s17 + $0x81] sm:$0xff] }
 0x11c   : > { %2993 = vrot.lane.b32.xlu2 %v2992_v30, %s3142_s25  ;;  %v2997_v59 = vpack.i.bf16 %v2419_v41, %v2418_v29 }
 0x11d   : > { %2988 = vrot.lane.b32.xlu1 %v2987_v37, %s3142_s25  ;;  %2983 = vrot.lane.b32.xlu0 %v2982_v1, %s3140_s23  ;;  %v3022_v37 = vpack.i.bf16 %v2381_v61, %v2380_v19 }
 0x11e   : > { %v3981_v34 = vpop.permute.xlu2 %2828 }
 0x11f   : > { %v2779_v56 = vpop.permute.xlu1 %2778  ;;  %v2774_v7 = vpop.permute.xlu0 %2773 }
 0x120   : > { %v2781_v33 = vunpack.i.h.bf16 %v2779_v56  ;;  %v2780_v39 = vunpack.i.l.bf16 %v2779_v56  ;;  %v2776_v13 = vunpack.i.h.bf16 %v2774_v7  ;;  %v2775_v5 = vunpack.i.l.bf16 %v2774_v7 }
 0x122   : > { %v1617_v35 = vsel %vm1596_vm3, %v3857_v23, %v2780_v39  ;;  %v1618_v54 = vsel %vm1596_vm3, %v3861_v52, %v2781_v33  ;;  %v3992_v10 = vsel %vm1596_vm3, %v3741_v6, %v2775_v5  ;;  %v3996_v60 = vsel %vm1596_vm3, %v3744_v14, %v2776_v13  ;;  %v2374_v23 = vld [vmem:[%s3177_s17 + $0x79] sm:$0xff]  ;;  %v2357_v39 = vld [vmem:[%s3177_s17 + $0x128] sm:$0xff] }
 0x123   : > { %v2348_v52 = vld [vmem:[%s3177_s17 + $0xc0] sm:$0xff]  ;;  %v3017_v41 = vpack.i.bf16 %v2375_v50, %v2374_v23  ;;  %v2413_v5 = vld [vmem:[%s3177_s17 + $0xca] sm:$0xff] }
 0x124   : > { %3008 = vrot.lane.b32.xlu2 %v3007_v4, %s3140_s23  ;;  %v3012_v56 = vpack.i.bf16 %v2349_v45, %v2348_v52 }
 0x125   : > { %3003 = vrot.lane.b32.xlu1 %v3002_v44, %s3141_s24  ;;  %2998 = vrot.lane.b32.xlu0 %v2997_v59, %s3141_s24 }
 0x126   : > { %v2844_v30 = vpop.permute.xlu2 %2843 }
 0x127   : > { %v2846_v6 = vunpack.i.h.bf16 %v2844_v30  ;;  %v2845_v46 = vunpack.i.l.bf16 %v2844_v30  ;;  %v2794_v3 = vpop.permute.xlu1 %2793  ;;  %v2789_v14 = vpop.permute.xlu0 %2788 }
 0x128   : > { %v2796_v1 = vunpack.i.h.bf16 %v2794_v3  ;;  %v2795_v57 = vunpack.i.l.bf16 %v2794_v3  ;;  %v2791_v51 = vunpack.i.h.bf16 %v2789_v14  ;;  %v2790_v20 = vunpack.i.l.bf16 %v2789_v14  ;;  %v2394_v14 = vld [vmem:[%s3177_s17 + $0x169] sm:$0xff] }
 0x129   : > { %v4008_v43 = vsel %vm1629_vm4, %v1611_v62, %v2845_v46  ;;  %v4011_v29 = vsel %vm1629_vm4, %v1612_v55, %v2846_v6  ;;  %v2356_v55 = vld [vmem:[%s3177_s17 + $0x120] sm:$0xff] }
 0x12a   : > { %v1623_v7 = vsel %vm1596_vm3, %v3885_v38, %v2795_v57  ;;  %v1624_v4 = vsel %vm1596_vm3, %v3889_v28, %v2796_v1  ;;  %v4019_v33 = vsel %vm1596_vm3, %v3765_v17, %v2790_v20  ;;  %v4023_v62 = vsel %vm1596_vm3, %v3768_v53, %v2791_v51  ;;  %v2412_v38 = vld [vmem:[%s3177_s17 + $0xc2] sm:$0xff]  ;;  %v2406_v28 = vld [vmem:[%s3177_s17 + $0x7a] sm:$0xff]  ;;  %v2363_v51 = vld [vmem:[%s3177_s17 + $0x170] sm:$0xff] }
 0x12b   : > { %v2407_v17 = vld [vmem:[%s3177_s17 + $0x82] sm:$0xff]  ;;  %v3037_v30 = vpack.i.bf16 %v2357_v39, %v2356_v55  ;;  %v3032_v45 = vpack.i.bf16 %v2413_v5, %v2412_v38 }
 0x12c   : > { %3023 = vrot.lane.b32.xlu2 %v3022_v37, %s3142_s25  ;;  %v3027_v6 = vpack.i.bf16 %v2407_v17, %v2406_v28  ;;  %v2395_v37 = vld [vmem:[%s3177_s17 + $0x171] sm:$0xff]  ;;  %v2388_v1 = vld [vmem:[%s3177_s17 + $0x121] sm:$0xff] }
 0x12d   : > { %3018 = vrot.lane.b32.xlu1 %v3017_v41, %s3142_s25  ;;  %3013 = vrot.lane.b32.xlu0 %v3012_v56, %s3140_s23  ;;  %v2362_v57 = vld [vmem:[%s3177_s17 + $0x168] sm:$0xff]  ;;  %v3052_v20 = vpack.i.bf16 %v2395_v37, %v2394_v14  ;;  %v2351_v14 = vld [vmem:[%s3177_s17 + $0xe0] sm:$0xff] }
 0x12e   : > { %v2859_v13 = vpop.permute.xlu2 %2858  ;;  %v2427_v37 = vld [vmem:[%s3177_s17 + $0x172] sm:$0xff] }
 0x12f   : > { %v2861_v44 = vunpack.i.h.bf16 %v2859_v13  ;;  %v2860_v59 = vunpack.i.l.bf16 %v2859_v13  ;;  %v4034_v53 = vpop.permute.xlu1 %2808  ;;  %v2804_v19 = vpop.permute.xlu0 %2803  ;;  %v3042_v13 = vpack.i.bf16 %v2363_v51, %v2362_v57 }
 0x130   : > { %v2806_v61 = vunpack.i.h.bf16 %v2804_v19  ;;  %v2805_v23 = vunpack.i.l.bf16 %v2804_v19 }
 0x131   : > { %v4037_v50 = vsel %vm1629_vm4, %v1617_v35, %v2860_v59  ;;  %v4040_v52 = vsel %vm1629_vm4, %v1618_v54, %v2861_v44  ;;  %v2389_v35 = vld [vmem:[%s3177_s17 + $0x129] sm:$0xff] }
 0x132   : > { %v4044_v46 = vsel %vm1596_vm3, %v3793_v31, %v2805_v23  ;;  %v4048_v3 = vsel %vm1596_vm3, %v3796_v26, %v2806_v61  ;;  %v1781_v31 = vld [vmem:[%s4575_s1 + $0x10] sm:$0x3]  ;;  %v3047_v38 = vpack.i.bf16 %v2389_v35, %v2388_v1 }
 0x133   : > { %v1791_v26 = vunpack.c.l.b16 %v1781_v31  ;;  %v2421_v1 = vld [vmem:[%s3177_s17 + $0x12a] sm:$0xff] }
 0x134   : > { %3038 = vrot.lane.b32.xlu2 %v3037_v30, %s3140_s23 }
 0x135   : > { %3033 = vrot.lane.b32.xlu1 %v3032_v45, %s3141_s24  ;;  %3028 = vrot.lane.b32.xlu0 %v3027_v6, %s3141_s24  ;;  %v1794_v61 = vpack.c.b16 %v1791_v26, %v1791_v26  ;;  %v2350_v6 = vld [vmem:[%s3177_s17 + $0xd8] sm:$0xff] }
 0x136   : > { %v2874_v54 = vpop.permute.xlu2 %2873  ;;  %v3067_v51 = vpack.i.bf16 %v2351_v14, %v2350_v6 }
 0x137   : > { %v2876_v41 = vunpack.i.h.bf16 %v2874_v54  ;;  %v2875_v56 = vunpack.i.l.bf16 %v2874_v54  ;;  %v2824_v55 = vpop.permute.xlu1 %2823  ;;  %v2819_v39 = vpop.permute.xlu0 %2818  ;;  %v1848_v45 = vsel %vm1846_vm5, %v1794_v61, 0  ;;  %v2383_v61 = vld [vmem:[%s3177_s17 + $0xe1] sm:$0xff] }
 0x138   : > { %v2826_v5 = vunpack.i.h.bf16 %v2824_v55  ;;  %v2825_v28 = vunpack.i.l.bf16 %v2824_v55  ;;  %v2821_v17 = vunpack.i.h.bf16 %v2819_v39  ;;  %v2820_v44 = vunpack.i.l.bf16 %v2819_v39  ;;  %1855 = vmatpush.bf16.msra.mxu0 %v1848_v45  ;;  %2461 = vmatpush.bf16.msra.mxu1 %v1848_v45  ;;  %v2459_v55 = vld [vmem:[%s4575_s1] sm:$0xff] }
 0x139   : > { %v4063_v59 = vsel %vm1629_vm4, %v1623_v7, %v2875_v56  ;;  %v4066_v19 = vsel %vm1629_vm4, %v1624_v4, %v2876_v41  ;;  %2462 = vmatpush.bf16.msra.mxu2 %v1848_v45  ;;  %2463 = vmatpush.bf16.msra.mxu3 %v1848_v45 }
 0x13a   : > { %v4070_v23 = vsel %vm1629_vm4, %v3945_v25, %v2825_v28  ;;  %v4074_v30 = vsel %vm1629_vm4, %v3949_v47, %v2826_v5  ;;  %v4078_v7 = vsel %vm1629_vm4, %v3820_v8, %v2820_v44  ;;  %v4082_v4 = vsel %vm1629_vm4, %v3823_v27, %v2821_v17  ;;  %v2426_v25 = vld [vmem:[%s3177_s17 + $0x16a] sm:$0xff]  ;;  %v2420_v27 = vld [vmem:[%s3177_s17 + $0x122] sm:$0xff]  ;;  %v2414_v28 = vld [vmem:[%s3177_s17 + $0xda] sm:$0xff] }
 0x13b   : > { %v2460_v8 = vld [vmem:[%s4575_s1 + $0x8] sm:$0xff]  ;;  %v3062_v41 = vpack.i.bf16 %v2427_v37, %v2426_v25  ;;  %v3057_v56 = vpack.i.bf16 %v2421_v1, %v2420_v27  ;;  %v2382_v44 = vld [vmem:[%s3177_s17 + $0xd9] sm:$0xff] }
 0x13c   : > { %3053 = vrot.lane.b32.xlu2 %v3052_v20, %s3142_s25  ;;  %1856 = vmatpush.bf16.msra.mxu0 %v2460_v8  ;;  %v3072_v37 = vpack.i.bf16 %v2383_v61, %v2382_v44  ;;  %v2366_v61 = vld [vmem:[%s3177_s17 + $0x198] sm:$0xff] }
 0x13d   : > { %3048 = vrot.lane.b32.xlu1 %v3047_v38, %s3142_s25  ;;  %3043 = vrot.lane.b32.xlu0 %v3042_v13, %s3140_s23 }
 0x13e   : > { %v4093_v47 = vpop.permute.xlu2 %2888  ;;  %2464 = vmatpush.bf16.msra.mxu1 %v2460_v8  ;;  %2465 = vmatpush.bf16.msra.mxu2 %v2460_v8 }
 0x13f   : > { %v2839_v35 = vpop.permute.xlu1 %2838  ;;  %v2834_v57 = vpop.permute.xlu0 %2833  ;;  %2466 = vmatpush.bf16.msra.mxu3 %v2460_v8 }
 0x140   : > { %v2841_v31 = vunpack.i.h.bf16 %v2839_v35  ;;  %v2840_v54 = vunpack.i.l.bf16 %v2839_v35  ;;  %v2836_v20 = vunpack.i.h.bf16 %v2834_v57  ;;  %v2835_v26 = vunpack.i.l.bf16 %v2834_v57  ;;  %1857 = vmatpush.bf16.msra.mxu0 %v2459_v55  ;;  %v2390_v35 = vld [vmem:[%s3177_s17 + $0x139] sm:$0xff]  ;;  %v2391_v57 = vld [vmem:[%s3177_s17 + $0x141] sm:$0xff] }
 0x142   : > { %v4103_v39 = vsel %vm1629_vm4, %v3969_v58, %v2840_v54  ;;  %v4107_v38 = vsel %vm1629_vm4, %v3973_v42, %v2841_v31  ;;  %v4111_v13 = vsel %vm1629_vm4, %v3846_v22, %v2835_v26  ;;  %v4115_v5 = vsel %vm1629_vm4, %v3849_v18, %v2836_v20  ;;  %v2358_v58 = vld [vmem:[%s3177_s17 + $0x138] sm:$0xff]  ;;  %v2359_v42 = vld [vmem:[%s3177_s17 + $0x140] sm:$0xff]  ;;  %2467 = vmatpush.bf16.msra.mxu1 %v2459_v55  ;;  %v2365_v31 = vld [vmem:[%s3177_s17 + $0x188] sm:$0xff] }
 0x143   : > { %v2415_v22 = vld [vmem:[%s3177_s17 + $0xe2] sm:$0xff]  ;;  %2468 = vmatpush.bf16.msra.mxu2 %v2459_v55  ;;  %2469 = vmatpush.bf16.msra.mxu3 %v2459_v55  ;;  %v3082_v25 = vpack.i.bf16 %v2359_v42, %v2358_v58  ;;  %v3092_v55 = vpack.i.bf16 %v2391_v57, %v2390_v35 }
 0x144   : > { %3068 = vrot.lane.b32.xlu2 %v3067_v51, %s3140_s23  ;;  %v3077_v8 = vpack.i.bf16 %v2415_v22, %v2414_v28  ;;  %v2364_v51 = vld [vmem:[%s3177_s17 + $0x180] sm:$0xff] }
 0x145   : > { %3063 = vrot.lane.b32.xlu1 %v3062_v41, %s3141_s24  ;;  %3058 = vrot.lane.b32.xlu0 %v3057_v56, %s3141_s24  ;;  %v3087_v58 = vpack.i.bf16 %v2365_v31, %v2364_v51 }
 0x146   : > { %v4123_v17 = vpop.permute.xlu2 %2903 }
 0x147   : > { %v2854_v18 = vpop.permute.xlu1 %2853  ;;  %v4128_v45 = vpop.permute.xlu0 %2848 }
 0x148   : > { %v2856_v6 = vunpack.i.h.bf16 %v2854_v18  ;;  %v2855_v14 = vunpack.i.l.bf16 %v2854_v18  ;;  %v2367_v18 = vld [vmem:[%s3177_s17 + $0x1a0] sm:$0xff] }
 0x14a   : > { %v4132_v27 = vsel %vm1629_vm4, %v3992_v10, %v2855_v14  ;;  %v4136_v1 = vsel %vm1629_vm4, %v3996_v60, %v2856_v6 }
 0x14c   : > { %3083 = vrot.lane.b32.xlu2 %v3082_v25, %s3140_s23  ;;  %v3112_v25 = vpack.i.bf16 %v2367_v18, %v2366_v61 }
 0x14d   : > { %3078 = vrot.lane.b32.xlu1 %v3077_v8, %s3141_s24  ;;  %3073 = vrot.lane.b32.xlu0 %v3072_v37, %s3142_s25 }
 0x14e   : > { %v4145_v10 = vpop.permute.xlu2 %2918 }
 0x14f   : > { %v2869_v54 = vpop.permute.xlu1 %2868  ;;  %v2864_v20 = vpop.permute.xlu0 %2863 }
 0x150   : > { %v2871_v26 = vunpack.i.h.bf16 %v2869_v54  ;;  %v2870_v60 = vunpack.i.l.bf16 %v2869_v54  ;;  %v2866_v41 = vunpack.i.h.bf16 %v2864_v20  ;;  %v2865_v56 = vunpack.i.l.bf16 %v2864_v20 }
 0x151   : > { %v2811_v20 = vunpack.i.h.bf16 %v4034_v53 }
 0x152   : > { %v4149_v42 = vsel %vm1629_vm4, %v4019_v33, %v2870_v60  ;;  %v4153_v28 = vsel %vm1629_vm4, %v4023_v62, %v2871_v26  ;;  %v4157_v22 = vsel %vm1629_vm4, %v3901_v2, %v2865_v56  ;;  %v4161_v44 = vsel %vm1629_vm4, %v3904_v21, %v2866_v41  ;;  %v2422_v33 = vld [vmem:[%s3177_s17 + $0x13a] sm:$0xff]  ;;  %v2423_v62 = vld [vmem:[%s3177_s17 + $0x142] sm:$0xff] }
 0x153   : > { %v3102_v35 = vpack.i.bf16 %v2423_v62, %v2422_v33  ;;  %v2810_v26 = vunpack.i.l.bf16 %v4034_v53  ;;  %v2890_v60 = vunpack.i.l.bf16 %v4093_v47  ;;  %v2431_v41 = vld [vmem:[%s3177_s17 + $0x1a2] sm:$0xff]  ;;  %v1631_v53 = vsel %vm1629_vm4, %v3920_v48, %v2811_v20 }
 0x154   : > { %3098 = vrot.lane.b32.xlu2 %v3632_v12, %s3142_s25  ;;  %v2831_v20 = vunpack.i.h.bf16 %v3981_v34 }
 0x155   : > { %3093 = vrot.lane.b32.xlu1 %v3092_v55, %s3142_s25  ;;  %3088 = vrot.lane.b32.xlu0 %v3087_v58, %s3140_s23  ;;  %v1630_v56 = vsel %vm1629_vm4, %v3916_v15, %v2810_v26  ;;  %v2830_v26 = vunpack.i.l.bf16 %v3981_v34  ;;  %v2920_v34 = vunpack.i.l.bf16 %v4145_v10 }
 0x156   : > { %v4171_v12 = vpop.permute.xlu2 %2933  ;;  %v1663_v33 = vsel %vm1662_vm6, %v1630_v56, %v2890_v60  ;;  %v2815_v60 = vunpack.i.l.bf16 %v3958_v11 }
 0x157   : > { %v2884_v6 = vpop.permute.xlu1 %2883  ;;  %v2879_v14 = vpop.permute.xlu0 %2878  ;;  %v1638_v56 = vsel %vm1629_vm4, %v3937_v32, %v2830_v26  ;;  %v2850_v26 = vunpack.i.l.bf16 %v4128_v45 }
 0x158   : > { %v2886_v2 = vunpack.i.h.bf16 %v2884_v6  ;;  %v2885_v8 = vunpack.i.l.bf16 %v2884_v6  ;;  %v2881_v37 = vunpack.i.h.bf16 %v2879_v14  ;;  %v2880_v21 = vunpack.i.l.bf16 %v2879_v14 }
 0x15a   : > { %v4175_v57 = vsel %vm1629_vm4, %v4044_v46, %v2885_v8  ;;  %v4179_v51 = vsel %vm1629_vm4, %v4048_v3, %v2886_v2  ;;  %v4183_v31 = vsel %vm1629_vm4, %v3930_v24, %v2880_v21  ;;  %v4187_v54 = vsel %vm1629_vm4, %v3933_v40, %v2881_v37  ;;  %v2398_v24 = vld [vmem:[%s3177_s17 + $0x199] sm:$0xff]  ;;  %v2399_v3 = vld [vmem:[%s3177_s17 + $0x1a1] sm:$0xff] }
 0x15b   : > { %v2891_v46 = vunpack.i.h.bf16 %v4093_v47  ;;  %v2430_v40 = vld [vmem:[%s3177_s17 + $0x19a] sm:$0xff]  ;;  %v3117_v6 = vpack.i.bf16 %v2399_v3, %v2398_v24 }
 0x15c   : > { %3113 = vrot.lane.b32.xlu2 %v3112_v25, %s3140_s23  ;;  %v3122_v14 = vpack.i.bf16 %v2431_v41, %v2430_v40  ;;  %v2906_v40 = vunpack.i.h.bf16 %v4123_v17  ;;  %v2905_v41 = vunpack.i.l.bf16 %v4123_v17 }
 0x15d   : > { %3108 = vrot.lane.b32.xlu1 %v3770_v0, %s3141_s24  ;;  %3103 = vrot.lane.b32.xlu0 %v3102_v35, %s3141_s24  ;;  %v1664_v62 = vsel %vm1662_vm6, %v1631_v53, %v2891_v46  ;;  %v2816_v46 = vunpack.i.h.bf16 %v3958_v11  ;;  %v1639_v53 = vsel %vm1629_vm4, %v3941_v49, %v2831_v20  ;;  %v1632_v11 = vsel %vm1629_vm4, %v3908_v36, %v2815_v60 }
 0x15e   : > { %v4211_v8 = vpop.permute.xlu2 %2948  ;;  %v1665_v49 = vsel %vm1662_vm6, %v1632_v11, %v2905_v41  ;;  %v2851_v20 = vunpack.i.h.bf16 %v4128_v45 }
 0x15f   : > { %v2899_v55 = vpop.permute.xlu1 %2898  ;;  %v2894_v58 = vpop.permute.xlu0 %2893 }
 0x160   : > { %v2901_v47 = vunpack.i.h.bf16 %v2899_v55  ;;  %v2900_v61 = vunpack.i.l.bf16 %v2899_v55  ;;  %v2896_v0 = vunpack.i.h.bf16 %v2894_v58  ;;  %v2895_v18 = vunpack.i.l.bf16 %v2894_v58 }
 0x161   : > { %v2921_v55 = vunpack.i.h.bf16 %v4145_v10  ;;  %v1647_v41 = vsel %vm1629_vm4, %v3877_v9, %v2851_v20 }
 0x162   : > { %v1696_v25 = vsel %vm1695_vm7, %v1663_v33, %v2895_v18  ;;  %v1697_v15 = vsel %vm1695_vm7, %v1664_v62, %v2896_v0 }
 0x163   : > { %v1729_v48 = vsel %vm1728_vm8, %v1696_v25, %v2900_v61  ;;  %v1730_v2 = vsel %vm1728_vm8, %v1697_v15, %v2901_v47  ;;  %v1633_v61 = vsel %vm1629_vm4, %v3912_v63, %v2816_v46 }
 0x164   : > { %v1761_v37 = vpack.c.bf16 %v1730_v2, %v1729_v48  ;;  %v1666_v18 = vsel %vm1662_vm6, %v1633_v61, %v2906_v40  ;;  %v1646_v40 = vsel %vm1629_vm4, %v3874_v16, %v2850_v26 }
 0x165   : > { %3118 = vrot.lane.b32.xlu0 %v3117_v6, %s3142_s25  ;;  %3123 = vrot.lane.b32.xlu1 %v3122_v14, %s3141_s24 }
 0x166   : > { %2440 = vmatmul.msk.bf16.vlgmr.msra.gmra.mxu0 %vm1797_vm9, %v1761_v37  ;;  %v4232_v0 = vpop.permute.xlu2 %2963 }
 0x167   : > { %v2914_v21 = vpop.permute.xlu1 %2913  ;;  %v2909_v35 = vpop.permute.xlu0 %2908 }
 0x168   : > { %v2911_v24 = vunpack.i.h.bf16 %v2909_v35  ;;  %v2910_v3 = vunpack.i.l.bf16 %v2909_v35  ;;  %v2916_v58 = vunpack.i.h.bf16 %v2914_v21  ;;  %v2915_v47 = vunpack.i.l.bf16 %v2914_v21 }
 0x16a   : > { %v1671_v17 = vsel %vm1662_vm6, %v1638_v56, %v2910_v3  ;;  %v1672_v32 = vsel %vm1662_vm6, %v1639_v53, %v2911_v24  ;;  %v1698_v36 = vsel %vm1695_vm7, %v1665_v49, %v2915_v47  ;;  %v1699_v63 = vsel %vm1695_vm7, %v1666_v18, %v2916_v58 }
 0x16b   : > { %v1704_v15 = vsel %vm1695_vm7, %v1671_v17, %v2920_v34  ;;  %v1705_v48 = vsel %vm1695_vm7, %v1672_v32, %v2921_v55  ;;  %v2936_v24 = vunpack.i.h.bf16 %v4171_v12  ;;  %v2935_v3 = vunpack.i.l.bf16 %v4171_v12 }
 0x16d   : > { %v1679_v12 = vsel %vm1662_vm6, %v1646_v40, %v2935_v3  ;;  %v1680_v11 = vsel %vm1662_vm6, %v1647_v41, %v2936_v24 }
 0x16e   : > { %v4256_v55 = vpop.permute.xlu2 %2978 }
 0x16f   : > { %v2929_v33 = vpop.permute.xlu1 %2928  ;;  %v2924_v10 = vpop.permute.xlu0 %2923 }
 0x170   : > { %v2931_v62 = vunpack.i.h.bf16 %v2929_v33  ;;  %v2930_v6 = vunpack.i.l.bf16 %v2929_v33  ;;  %v2926_v14 = vunpack.i.h.bf16 %v2924_v10  ;;  %v2925_v25 = vunpack.i.l.bf16 %v2924_v10 }
 0x172   : > { %v1737_v2 = vsel %vm1728_vm8, %v1704_v15, %v2930_v6  ;;  %v1738_v37 = vsel %vm1728_vm8, %v1705_v48, %v2931_v62  ;;  %v1731_v21 = vsel %vm1728_vm8, %v1698_v36, %v2925_v25  ;;  %v1732_v35 = vsel %vm1728_vm8, %v1699_v63, %v2926_v14 }
 0x173   : > { %v1765_v46 = vpack.c.bf16 %v1738_v37, %v1737_v2  ;;  %v1762_v60 = vpack.c.bf16 %v1732_v35, %v1731_v21  ;;  %v2951_v6 = vunpack.i.h.bf16 %v4211_v8  ;;  %v2950_v14 = vunpack.i.l.bf16 %v4211_v8 }
 0x174   : > { %v2966_v25 = vunpack.i.h.bf16 %v4232_v0  ;;  %v2965_v36 = vunpack.i.l.bf16 %v4232_v0 }
 0x175   : > { %2444 = vmatmul.msk.bf16.vlgmr.msra.gmra.mxu1 %vm1797_vm9, %v1765_v46  ;;  %v1667_v37 = vsel %vm1662_vm6, %v4078_v7, %v2950_v14  ;;  %v1668_v21 = vsel %vm1662_vm6, %v4082_v4, %v2951_v6 }
 0x176   : > { %2441 = vmatmul.msk.bf16.gmra.mxu0 %vm1797_vm9, %v1762_v60  ;;  %v2994_v33 = vpop.permute.xlu2 %2993 }
 0x177   : > { %v2944_v56 = vpop.permute.xlu1 %2943  ;;  %v2939_v53 = vpop.permute.xlu0 %2938 }
 0x178   : > { %v2946_v45 = vunpack.i.h.bf16 %v2944_v56  ;;  %v2945_v34 = vunpack.i.l.bf16 %v2944_v56  ;;  %v2941_v58 = vunpack.i.h.bf16 %v2939_v53  ;;  %v2940_v47 = vunpack.i.l.bf16 %v2939_v53 }
 0x17a   : > { %v1712_v61 = vsel %vm1695_vm7, %v1679_v12, %v2940_v47  ;;  %v1713_v17 = vsel %vm1695_vm7, %v1680_v11, %v2941_v58  ;;  %v2981_v12 = vunpack.i.h.bf16 %v4256_v55  ;;  %v2980_v11 = vunpack.i.l.bf16 %v4256_v55 }
 0x17b   : > { %v1745_v16 = vsel %vm1728_vm8, %v1712_v61, %v2945_v34  ;;  %v1746_v9 = vsel %vm1728_vm8, %v1713_v17, %v2946_v45  ;;  %v2996_v61 = vunpack.i.h.bf16 %v2994_v33  ;;  %v2995_v17 = vunpack.i.l.bf16 %v2994_v33 }
 0x17c   : > { %v1769_v32 = vpack.c.bf16 %v1746_v9, %v1745_v16 }
 0x17e   : > { %2448 = vmatmul.msk.bf16.vlgmr.msra.gmra.mxu2 %vm1797_vm9, %v1769_v32  ;;  %v3009_v53 = vpop.permute.xlu2 %3008 }
 0x17f   : > { %v2959_v49 = vpop.permute.xlu1 %2958  ;;  %v2954_v18 = vpop.permute.xlu0 %2953 }
 0x180   : > { %v2956_v10 = vunpack.i.h.bf16 %v2954_v18  ;;  %v2955_v62 = vunpack.i.l.bf16 %v2954_v18  ;;  %v2961_v63 = vunpack.i.h.bf16 %v2959_v49  ;;  %v2960_v15 = vunpack.i.l.bf16 %v2959_v49 }
 0x182   : > { %v1673_v48 = vsel %vm1662_vm6, %v4111_v13, %v2955_v62  ;;  %v1674_v2 = vsel %vm1662_vm6, %v4115_v5, %v2956_v10  ;;  %v1700_v60 = vsel %vm1695_vm7, %v1667_v37, %v2960_v15  ;;  %v1701_v24 = vsel %vm1695_vm7, %v1668_v21, %v2961_v63 }
 0x183   : > { %v1706_v13 = vsel %vm1695_vm7, %v1673_v48, %v2965_v36  ;;  %v1707_v5 = vsel %vm1695_vm7, %v1674_v2, %v2966_v25  ;;  %v1681_v10 = vsel %vm1662_vm6, %v4132_v27, %v2980_v11  ;;  %v1682_v62 = vsel %vm1662_vm6, %v4136_v1, %v2981_v12 }
 0x186   : > { %v3024_v32 = vpop.permute.xlu2 %3023 }
 0x187   : > { %v2974_v35 = vpop.permute.xlu1 %2973  ;;  %v2969_v8 = vpop.permute.xlu0 %2968 }
 0x188   : > { %v2976_v20 = vunpack.i.h.bf16 %v2974_v35  ;;  %v2975_v26 = vunpack.i.l.bf16 %v2974_v35  ;;  %v2971_v46 = vunpack.i.h.bf16 %v2969_v8  ;;  %v2970_v0 = vunpack.i.l.bf16 %v2969_v8 }
 0x18a   : > { %v1733_v3 = vsel %vm1728_vm8, %v1700_v60, %v2970_v0  ;;  %v1734_v7 = vsel %vm1728_vm8, %v1701_v24, %v2971_v46  ;;  %v1739_v4 = vsel %vm1728_vm8, %v1706_v13, %v2975_v26  ;;  %v1740_v40 = vsel %vm1728_vm8, %v1707_v5, %v2976_v20 }
 0x18b   : > { %v1763_v41 = vpack.c.bf16 %v1734_v7, %v1733_v3  ;;  %v1766_v56 = vpack.c.bf16 %v1740_v40, %v1739_v4  ;;  %v3011_v0 = vunpack.i.h.bf16 %v3009_v53  ;;  %v3010_v60 = vunpack.i.l.bf16 %v3009_v53 }
 0x18c   : > { %v3026_v24 = vunpack.i.h.bf16 %v3024_v32  ;;  %v3025_v13 = vunpack.i.l.bf16 %v3024_v32 }
 0x18d   : > { %2442 = vmatmul.msk.bf16.gmra.mxu0 %vm1797_vm9, %v1763_v41  ;;  %2445 = vmatmul.msk.bf16.gmra.mxu1 %vm1797_vm9, %v1766_v56  ;;  %v1669_v40 = vsel %vm1662_vm6, %v4070_v23, %v3010_v60  ;;  %v1670_v41 = vsel %vm1662_vm6, %v4074_v30, %v3011_v0 }
 0x18e   : > { %v3039_v20 = vpop.permute.xlu2 %3038 }
 0x18f   : > { %v2989_v45 = vpop.permute.xlu1 %2988  ;;  %v2984_v34 = vpop.permute.xlu0 %2983 }
 0x190   : > { %v2986_v58 = vunpack.i.h.bf16 %v2984_v34  ;;  %v2985_v47 = vunpack.i.l.bf16 %v2984_v34  ;;  %v2991_v16 = vunpack.i.h.bf16 %v2989_v45  ;;  %v2990_v9 = vunpack.i.l.bf16 %v2989_v45 }
 0x192   : > { %v1687_v49 = vsel %vm1662_vm6, %v4149_v42, %v2985_v47  ;;  %v1688_v18 = vsel %vm1662_vm6, %v4153_v28, %v2986_v58  ;;  %v1714_v63 = vsel %vm1695_vm7, %v1681_v10, %v2990_v9  ;;  %v1715_v15 = vsel %vm1695_vm7, %v1682_v62, %v2991_v16 }
 0x193   : > { %v1720_v42 = vsel %vm1695_vm7, %v1687_v49, %v2995_v17  ;;  %v1721_v28 = vsel %vm1695_vm7, %v1688_v18, %v2996_v61 }
 0x196   : > { %v3054_v61 = vpop.permute.xlu2 %3053 }
 0x197   : > { %v3004_v6 = vpop.permute.xlu1 %3003  ;;  %v2999_v14 = vpop.permute.xlu0 %2998 }
 0x198   : > { %v3006_v55 = vunpack.i.h.bf16 %v3004_v6  ;;  %v3005_v25 = vunpack.i.l.bf16 %v3004_v6  ;;  %v3001_v33 = vunpack.i.h.bf16 %v2999_v14  ;;  %v3000_v36 = vunpack.i.l.bf16 %v2999_v14 }
 0x199   : > { %v3041_v6 = vunpack.i.h.bf16 %v3039_v20  ;;  %v3040_v14 = vunpack.i.l.bf16 %v3039_v20 }
 0x19a   : > { %v1747_v48 = vsel %vm1728_vm8, %v1714_v63, %v3000_v36  ;;  %v1748_v27 = vsel %vm1728_vm8, %v1715_v15, %v3001_v33  ;;  %v1753_v1 = vsel %vm1728_vm8, %v1720_v42, %v3005_v25  ;;  %v1754_v2 = vsel %vm1728_vm8, %v1721_v28, %v3006_v55 }
 0x19b   : > { %v1770_v37 = vpack.c.bf16 %v1748_v27, %v1747_v48  ;;  %v1773_v21 = vpack.c.bf16 %v1754_v2, %v1753_v1  ;;  %v3056_v25 = vunpack.i.h.bf16 %v3054_v61  ;;  %v3055_v33 = vunpack.i.l.bf16 %v3054_v61 }
 0x19c   : > { %v1683_v28 = vsel %vm1662_vm6, %v4037_v50, %v3040_v14  ;;  %v1684_v48 = vsel %vm1662_vm6, %v4040_v52, %v3041_v6 }
 0x19d   : > { %2449 = vmatmul.msk.bf16.gmra.mxu2 %vm1797_vm9, %v1770_v37  ;;  %2452 = vmatmul.msk.bf16.vlgmr.msra.gmra.mxu3 %vm1797_vm9, %v1773_v21 }
 0x19e   : > { %v3069_v55 = vpop.permute.xlu2 %3068 }
 0x19f   : > { %v3019_v35 = vpop.permute.xlu1 %3018  ;;  %v3014_v8 = vpop.permute.xlu0 %3013 }
 0x1a0   : > { %v3016_v26 = vunpack.i.h.bf16 %v3014_v8  ;;  %v3015_v46 = vunpack.i.l.bf16 %v3014_v8  ;;  %v3021_v5 = vunpack.i.h.bf16 %v3019_v35  ;;  %v3020_v3 = vunpack.i.l.bf16 %v3019_v35 }
 0x1a2   : > { %v1675_v7 = vsel %vm1662_vm6, %v4103_v39, %v3015_v46  ;;  %v1676_v4 = vsel %vm1662_vm6, %v4107_v38, %v3016_v26  ;;  %v1702_v12 = vsel %vm1695_vm7, %v1669_v40, %v3020_v3  ;;  %v1703_v11 = vsel %vm1695_vm7, %v1670_v41, %v3021_v5 }
 0x1a3   : > { %v1708_v39 = vsel %vm1695_vm7, %v1675_v7, %v3025_v13  ;;  %v1709_v38 = vsel %vm1695_vm7, %v1676_v4, %v3026_v24  ;;  %v3071_v24 = vunpack.i.h.bf16 %v3069_v55  ;;  %v3070_v13 = vunpack.i.l.bf16 %v3069_v55 }
 0x1a6   : > { %v3084_v5 = vpop.permute.xlu2 %3083 }
 0x1a7   : > { %v3034_v56 = vpop.permute.xlu1 %3033  ;;  %v3029_v45 = vpop.permute.xlu0 %3028 }
 0x1a8   : > { %v3036_v34 = vunpack.i.h.bf16 %v3034_v56  ;;  %v3035_v53 = vunpack.i.l.bf16 %v3034_v56  ;;  %v3031_v58 = vunpack.i.h.bf16 %v3029_v45  ;;  %v3030_v47 = vunpack.i.l.bf16 %v3029_v45 }
 0x1a9   : > { %v1677_v45 = vsel %vm1662_vm6, %v4008_v43, %v3070_v13  ;;  %v3086_v43 = vunpack.i.h.bf16 %v3084_v5 }
 0x1aa   : > { %v1735_v23 = vsel %vm1728_vm8, %v1702_v12, %v3030_v47  ;;  %v1736_v17 = vsel %vm1728_vm8, %v1703_v11, %v3031_v58  ;;  %v1741_v30 = vsel %vm1728_vm8, %v1708_v39, %v3035_v53  ;;  %v1742_v16 = vsel %vm1728_vm8, %v1709_v38, %v3036_v34 }
 0x1ab   : > { %v1764_v9 = vpack.c.bf16 %v1736_v17, %v1735_v23  ;;  %v1767_v32 = vpack.c.bf16 %v1742_v16, %v1741_v30  ;;  %v1678_v34 = vsel %vm1662_vm6, %v4011_v29, %v3071_v24  ;;  %v3085_v30 = vunpack.i.l.bf16 %v3084_v5 }
 0x1ad   : > { %2443 = vmatmul.msk.bf16.gmra.mxu0 %vm1797_vm9, %v1764_v9  ;;  %2446 = vmatmul.msk.bf16.gmra.mxu1 %vm1797_vm9, %v1767_v32 }
 0x1ae   : > { %v3099_v61 = vpop.permute.xlu2 %3098 }
 0x1af   : > { %v3049_v49 = vpop.permute.xlu1 %3048  ;;  %v3044_v18 = vpop.permute.xlu0 %3043  ;;  %v3101_v16 = vunpack.i.h.bf16 %v3099_v61  ;;  %v3100_v29 = vunpack.i.l.bf16 %v3099_v61 }
 0x1b0   : > { %v3046_v10 = vunpack.i.h.bf16 %v3044_v18  ;;  %v3045_v62 = vunpack.i.l.bf16 %v3044_v18  ;;  %v3051_v36 = vunpack.i.h.bf16 %v3049_v49  ;;  %v3050_v63 = vunpack.i.l.bf16 %v3049_v49 }
 0x1b2   : > { %v1689_v15 = vsel %vm1662_vm6, %v4063_v59, %v3045_v62  ;;  %v1690_v42 = vsel %vm1662_vm6, %v4066_v19, %v3046_v10  ;;  %v1716_v8 = vsel %vm1695_vm7, %v1683_v28, %v3050_v63  ;;  %v1717_v20 = vsel %vm1695_vm7, %v1684_v48, %v3051_v36 }
 0x1b3   : > { %v1722_v59 = vsel %vm1695_vm7, %v1689_v15, %v3055_v33  ;;  %v1723_v19 = vsel %vm1695_vm7, %v1690_v42, %v3056_v25  ;;  %v1685_v10 = vsel %vm1662_vm6, %v4157_v22, %v3085_v30  ;;  %v1686_v62 = vsel %vm1662_vm6, %v4161_v44, %v3086_v43 }
 0x1b6   : > { %v3114_v42 = vpop.permute.xlu2 %3113 }
 0x1b7   : > { %v3064_v27 = vpop.permute.xlu1 %3063  ;;  %v3059_v1 = vpop.permute.xlu0 %3058 }
 0x1b8   : > { %v3066_v2 = vunpack.i.h.bf16 %v3064_v27  ;;  %v3065_v37 = vunpack.i.l.bf16 %v3064_v27  ;;  %v3061_v21 = vunpack.i.h.bf16 %v3059_v1  ;;  %v3060_v35 = vunpack.i.l.bf16 %v3059_v1 }
 0x1ba   : > { %v1749_v26 = vsel %vm1728_vm8, %v1716_v8, %v3060_v35  ;;  %v1750_v50 = vsel %vm1728_vm8, %v1717_v20, %v3061_v21  ;;  %v1755_v52 = vsel %vm1728_vm8, %v1722_v59, %v3065_v37  ;;  %v1756_v46 = vsel %vm1728_vm8, %v1723_v19, %v3066_v2 }
 0x1bb   : > { %v1771_v0 = vpack.c.bf16 %v1750_v50, %v1749_v26  ;;  %v1774_v60 = vpack.c.bf16 %v1756_v46, %v1755_v52  ;;  %v3116_v2 = vunpack.i.h.bf16 %v3114_v42  ;;  %v3115_v37 = vunpack.i.l.bf16 %v3114_v42 }
 0x1bd   : > { %2450 = vmatmul.msk.bf16.gmra.mxu2 %vm1797_vm9, %v1771_v0  ;;  %2453 = vmatmul.msk.bf16.gmra.mxu3 %vm1797_vm9, %v1774_v60  ;;  %v1693_v26 = vsel %vm1662_vm6, %v4175_v57, %v3115_v37  ;;  %v1694_v50 = vsel %vm1662_vm6, %v4179_v51, %v3116_v2 }
 0x1bf   : > { %v3079_v3 = vpop.permute.xlu1 %3078  ;;  %v3074_v7 = vpop.permute.xlu0 %3073 }
 0x1c0   : > { %v3081_v4 = vunpack.i.h.bf16 %v3079_v3  ;;  %v3080_v40 = vunpack.i.l.bf16 %v3079_v3  ;;  %v3076_v41 = vunpack.i.h.bf16 %v3074_v7  ;;  %v3075_v56 = vunpack.i.l.bf16 %v3074_v7 }
 0x1c2   : > { %v1710_v53 = vsel %vm1695_vm7, %v1677_v45, %v3075_v56  ;;  %v1711_v58 = vsel %vm1695_vm7, %v1678_v34, %v3076_v41 }
 0x1c3   : > { %v1743_v47 = vsel %vm1728_vm8, %v1710_v53, %v3080_v40  ;;  %v1744_v12 = vsel %vm1728_vm8, %v1711_v58, %v3081_v4 }
 0x1c4   : > { %v1768_v11 = vpack.c.bf16 %v1744_v12, %v1743_v47 }
 0x1c6   : > { %2447 = vmatmul.msk.bf16.gmra.mxu1 %vm1797_vm9, %v1768_v11 }
 0x1c7   : > { %v3094_v39 = vpop.permute.xlu1 %3093  ;;  %v3089_v38 = vpop.permute.xlu0 %3088 }
 0x1c8   : > { %v3091_v23 = vunpack.i.h.bf16 %v3089_v38  ;;  %v3090_v17 = vunpack.i.l.bf16 %v3089_v38  ;;  %v3096_v9 = vunpack.i.h.bf16 %v3094_v39  ;;  %v3095_v32 = vunpack.i.l.bf16 %v3094_v39 }
 0x1ca   : > { %v1691_v49 = vsel %vm1662_vm6, %v4183_v31, %v3090_v17  ;;  %v1692_v18 = vsel %vm1662_vm6, %v4187_v54, %v3091_v23  ;;  %v1718_v63 = vsel %vm1695_vm7, %v1685_v10, %v3095_v32  ;;  %v1719_v15 = vsel %vm1695_vm7, %v1686_v62, %v3096_v9 }
 0x1cb   : > { %v1724_v31 = vsel %vm1695_vm7, %v1691_v49, %v3100_v29  ;;  %v1725_v54 = vsel %vm1695_vm7, %v1692_v18, %v3101_v16 }
 0x1cf   : > { %v3109_v6 = vpop.permute.xlu1 %3108  ;;  %v3104_v14 = vpop.permute.xlu0 %3103 }
 0x1d0   : > { %v3111_v55 = vunpack.i.h.bf16 %v3109_v6  ;;  %v3110_v25 = vunpack.i.l.bf16 %v3109_v6  ;;  %v3106_v33 = vunpack.i.h.bf16 %v3104_v14  ;;  %v3105_v36 = vunpack.i.l.bf16 %v3104_v14 }
 0x1d2   : > { %v1751_v22 = vsel %vm1728_vm8, %v1718_v63, %v3105_v36  ;;  %v1752_v28 = vsel %vm1728_vm8, %v1719_v15, %v3106_v33  ;;  %v1757_v44 = vsel %vm1728_vm8, %v1724_v31, %v3110_v25  ;;  %v1758_v48 = vsel %vm1728_vm8, %v1725_v54, %v3111_v55 }
 0x1d3   : > { %v1772_v27 = vpack.c.bf16 %v1752_v28, %v1751_v22  ;;  %v1775_v1 = vpack.c.bf16 %v1758_v48, %v1757_v44 }
 0x1d5   : > { %2451 = vmatmul.msk.bf16.gmra.mxu2 %vm1797_vm9, %v1772_v27  ;;  %2454 = vmatmul.msk.bf16.gmra.mxu3 %vm1797_vm9, %v1775_v1 }
 0x1d7   : > { %v3119_v21 = vpop.permute.xlu0 %3118  ;;  %v3124_v35 = vpop.permute.xlu1 %3123 }
 0x1d8   : > { %v3121_v8 = vunpack.i.h.bf16 %v3119_v21  ;;  %v3120_v20 = vunpack.i.l.bf16 %v3119_v21  ;;  %v3126_v59 = vunpack.i.h.bf16 %v3124_v35  ;;  %v3125_v19 = vunpack.i.l.bf16 %v3124_v35 }
 0x1da   : > { %v1726_v52 = vsel %vm1695_vm7, %v1693_v26, %v3120_v20  ;;  %v1727_v46 = vsel %vm1695_vm7, %v1694_v50, %v3121_v8 }
 0x1db   : > { %v1759_v0 = vsel %vm1728_vm8, %v1726_v52, %v3125_v19  ;;  %v1760_v60 = vsel %vm1728_vm8, %v1727_v46, %v3126_v59 }
 0x1dc   : > { %v1776_v24 = vpack.c.bf16 %v1760_v60, %v1759_v0 }
 0x1e3   : > { %v1859_v57 = vpop.f32.mrf.mxu0 }
 0x1e4   : > { %1939 = vst.msk [vmem:[%s4382_s8] sm:$0xff] %vm1530_vm1, %v1859_v57  ;;  %v2040_v51 = vmul.f32 %v1859_v57, %v1859_v57  ;;  %v1971_v5 = vsel %vm1530_vm1, %v1859_v57, 0.0 }
 0x1e5   : > { %2455 = vmatmul.msk.bf16.gmra.mxu3 %vm1797_vm9, %v1776_v24 }
 0x1e6   : > { %v2072_v40 = vsel %vm1530_vm1, %v2040_v51, 0.0 }
 0x1eb   : > { %v1861_v13 = vpop.f32.mrf.mxu0 }
 0x1ec   : > { %1940 = vst.msk [vmem:[%s4382_s8 + $0x8] sm:$0xff] %vm1530_vm1, %v1861_v13  ;;  %v1972_v3 = vsel %vm1530_vm1, %v1861_v13, 0.0  ;;  %v2041_v7 = vmul.f32 %v1861_v13, %v1861_v13 }
 0x1ed   : > { %v1973_v4 = vadd.f32 %v1972_v3, %v1971_v5 }
 0x1ee   : > { %v2073_v41 = vsel %vm1530_vm1, %v2041_v7, 0.0 }
 0x1ef   : > { %v2074_v56 = vadd.f32 %v2073_v41, %v2072_v40 }
 0x1f2   : > { %v4393_v45 = vpop.f32.mrf.mxu1 }
 0x1f3   : > { %1947 = vst.msk [vmem:[%s4382_s8 + $0x40] sm:$0xff] %vm1530_vm1, %v4393_v45  ;;  %v1864_v34 = vpop.f32.mrf.mxu0  ;;  %v2048_v35 = vmul.f32 %v4393_v45, %v4393_v45  ;;  %v1986_v26 = vsel %vm1530_vm1, %v4393_v45, 0.0 }
 0x1f4   : > { %1941 = vst.msk [vmem:[%s4382_s8 + $0x10] sm:$0xff] %vm1530_vm1, %v1864_v34  ;;  %v1974_v53 = vsel %vm1530_vm1, %v1864_v34, 0.0  ;;  %v2042_v58 = vmul.f32 %v1864_v34, %v1864_v34 }
 0x1f5   : > { %v1975_v47 = vadd.f32 %v1974_v53, %v1973_v4  ;;  %v2087_v60 = vsel %vm1530_vm1, %v2048_v35, 0.0 }
 0x1f6   : > { %v2075_v12 = vsel %vm1530_vm1, %v2042_v58, 0.0 }
 0x1f7   : > { %v2076_v11 = vadd.f32 %v2075_v12, %v2074_v56 }
 0x1fa   : > { %v1881_v39 = vpop.f32.mrf.mxu1 }
 0x1fb   : > { %1948 = vst.msk [vmem:[%s4382_s8 + $0x48] sm:$0xff] %vm1530_vm1, %v1881_v39  ;;  %v1866_v38 = vpop.f32.mrf.mxu0  ;;  %v2049_v50 = vmul.f32 %v1881_v39, %v1881_v39  ;;  %v1988_v24 = vsel %vm1530_vm1, %v1881_v39, 0.0 }
 0x1fc   : > { %1942 = vst.msk [vmem:[%s4382_s8 + $0x18] sm:$0xff] %vm1530_vm1, %v1866_v38  ;;  %v2043_v32 = vmul.f32 %v1866_v38, %v1866_v38  ;;  %v1976_v10 = vsel %vm1530_vm1, %v1866_v38, 0.0 }
 0x1fd   : > { %v1977_v36 = vadd.f32 %v1976_v10, %v1975_v47  ;;  %v2089_v13 = vsel %vm1530_vm1, %v2049_v50, 0.0 }
 0x1fe   : > { %v2077_v55 = vsel %vm1530_vm1, %v2043_v32, 0.0 }
 0x1ff   : > { %v2078_v54 = vadd.f32 %v2077_v55, %v2076_v11 }
 0x201   : > { %v4406_v61 = vpop.f32.mrf.mxu2 }
 0x202   : > { %1955 = vst.msk [vmem:[%s4382_s8 + $0x80] sm:$0xff] %vm1530_vm1, %v4406_v61 }
 0x209   : > { %v4411_v23 = vpop.f32.mrf.mxu2 }
 0x20a   : > { %1956 = vst.msk [vmem:[%s4382_s8 + $0x88] sm:$0xff] %vm1530_vm1, %v4411_v23  ;;  %v1869_v17 = vpop.f32.mrf.mxu0  ;;  %v1884_v43 = vpop.f32.mrf.mxu1 }
 0x20b   : > { %1943 = vst.msk [vmem:[%s4382_s8 + $0x20] sm:$0xff] %vm1530_vm1, %v1869_v17  ;;  %v2044_v62 = vmul.f32 %v1869_v17, %v1869_v17  ;;  %v1978_v25 = vsel %vm1530_vm1, %v1869_v17, 0.0  ;;  %v2050_v5 = vmul.f32 %v1884_v43, %v1884_v43  ;;  %v1990_v7 = vsel %vm1530_vm1, %v1884_v43, 0.0 }
 0x20c   : > { %1949 = vst.msk [vmem:[%s4382_s8 + $0x50] sm:$0xff] %vm1530_vm1, %v1884_v43  ;;  %v1979_v42 = vadd.f32 %v1978_v25, %v1977_v36 }
 0x20d   : > { %v2079_v63 = vsel %vm1530_vm1, %v2044_v62, 0.0  ;;  %v2091_v40 = vsel %vm1530_vm1, %v2050_v5, 0.0 }
 0x20e   : > { %v2080_v44 = vadd.f32 %v2079_v63, %v2078_v54 }
 0x212   : > { %v1871_v30 = vpop.f32.mrf.mxu0  ;;  %v1886_v16 = vpop.f32.mrf.mxu1 }
 0x213   : > { %1944 = vst.msk [vmem:[%s4382_s8 + $0x28] sm:$0xff] %vm1530_vm1, %v1871_v30  ;;  %v2045_v33 = vmul.f32 %v1871_v30, %v1871_v30  ;;  %v1980_v15 = vsel %vm1530_vm1, %v1871_v30, 0.0  ;;  %v2051_v41 = vmul.f32 %v1886_v16, %v1886_v16  ;;  %v1992_v45 = vsel %vm1530_vm1, %v1886_v16, 0.0 }
 0x214   : > { %1950 = vst.msk [vmem:[%s4382_s8 + $0x58] sm:$0xff] %vm1530_vm1, %v1886_v16  ;;  %v1981_v48 = vadd.f32 %v1980_v15, %v1979_v42 }
 0x215   : > { %v2081_v22 = vsel %vm1530_vm1, %v2045_v33, 0.0  ;;  %v2093_v47 = vsel %vm1530_vm1, %v2051_v41, 0.0 }
 0x216   : > { %v2082_v1 = vadd.f32 %v2081_v22, %v2080_v44  ;;  %v2002_v44 = vsel %vm1530_vm1, %v4406_v61, 0.0 }
 0x220   : > { %v4424_v29 = vpop.f32.mrf.mxu2  ;;  %v4426_v9 = vpop.f32.mrf.mxu3 }
 0x221   : > { %1957 = vst.msk [vmem:[%s4382_s8 + $0x90] sm:$0xff] %vm1530_vm1, %v4424_v29  ;;  %v2058_v35 = vmul.f32 %v4424_v29, %v4424_v29 }
 0x222   : > { %1963 = vst.msk [vmem:[%s4382_s8 + $0xc0] sm:$0xff] %vm1530_vm1, %v4426_v9 }
 0x228   : > { %v4434_v49 = vpop.f32.mrf.mxu2  ;;  %v4436_v18 = vpop.f32.mrf.mxu3 }
 0x229   : > { %1958 = vst.msk [vmem:[%s4382_s8 + $0x98] sm:$0xff] %vm1530_vm1, %v4434_v49 }
 0x22a   : > { %1964 = vst.msk [vmem:[%s4382_s8 + $0xc8] sm:$0xff] %vm1530_vm1, %v4436_v18  ;;  %v1874_v6 = vpop.f32.mrf.mxu0  ;;  %v1889_v14 = vpop.f32.mrf.mxu1 }
 0x22b   : > { %1945 = vst.msk [vmem:[%s4382_s8 + $0x30] sm:$0xff] %vm1530_vm1, %v1874_v6  ;;  %v2046_v31 = vmul.f32 %v1874_v6, %v1874_v6  ;;  %v1982_v28 = vsel %vm1530_vm1, %v1874_v6, 0.0  ;;  %v2052_v12 = vmul.f32 %v1889_v14, %v1889_v14  ;;  %v1994_v38 = vsel %vm1530_vm1, %v1889_v14, 0.0 }
 0x22c   : > { %1951 = vst.msk [vmem:[%s4382_s8 + $0x60] sm:$0xff] %vm1530_vm1, %v1889_v14  ;;  %v1983_v2 = vadd.f32 %v1982_v28, %v1981_v48  ;;  %v2057_v48 = vmul.f32 %v4411_v23, %v4411_v23 }
 0x22d   : > { %v2083_v27 = vsel %vm1530_vm1, %v2046_v31, 0.0  ;;  %v2095_v43 = vsel %vm1530_vm1, %v2052_v12, 0.0  ;;  %v2056_v31 = vmul.f32 %v4406_v61, %v4406_v61  ;;  %v2006_v61 = vsel %vm1530_vm1, %v4424_v29, 0.0 }
 0x22e   : > { %v2084_v59 = vadd.f32 %v2083_v27, %v2082_v1 }
 0x232   : > { %v1876_v37 = vpop.f32.mrf.mxu0  ;;  %v1891_v21 = vpop.f32.mrf.mxu1 }
 0x233   : > { %1946 = vst.msk [vmem:[%s4382_s8 + $0x38] sm:$0xff] %vm1530_vm1, %v1876_v37  ;;  %v1984_v8 = vsel %vm1530_vm1, %v1876_v37, 0.0  ;;  %v2047_v20 = vmul.f32 %v1876_v37, %v1876_v37  ;;  %v2053_v30 = vmul.f32 %v1891_v21, %v1891_v21  ;;  %v1996_v10 = vsel %vm1530_vm1, %v1891_v21, 0.0 }
 0x234   : > { %v1985_v19 = vadd.f32 %v1984_v8, %v1983_v2  ;;  %1952 = vst.msk [vmem:[%s4382_s8 + $0x68] sm:$0xff] %vm1530_vm1, %v1891_v21  ;;  %v2103_v37 = vsel %vm1530_vm1, %v2056_v31, 0.0  ;;  %v2004_v21 = vsel %vm1530_vm1, %v4411_v23, 0.0  ;;  %v2008_v23 = vsel %vm1530_vm1, %v4434_v49, 0.0 }
 0x235   : > { %v2085_v52 = vsel %vm1530_vm1, %v2047_v20, 0.0  ;;  %v2097_v14 = vsel %vm1530_vm1, %v2053_v30, 0.0 }
 0x236   : > { %v1987_v46 = vadd.f32 %v1986_v26, %v1985_v19  ;;  %v2086_v0 = vadd.f32 %v2085_v52, %v2084_v59  ;;  %v2105_v59 = vsel %vm1530_vm1, %v2057_v48, 0.0  ;;  %v2059_v19 = vmul.f32 %v4434_v49, %v4434_v49 }
 0x237   : > { %v2107_v52 = vsel %vm1530_vm1, %v2058_v35, 0.0 }
 0x238   : > { %v1989_v57 = vadd.f32 %v1988_v24, %v1987_v46  ;;  %v2088_v51 = vadd.f32 %v2087_v60, %v2086_v0  ;;  %v2109_v24 = vsel %vm1530_vm1, %v2059_v19, 0.0 }
 0x23a   : > { %v2090_v3 = vadd.f32 %v2089_v13, %v2088_v51  ;;  %v1991_v4 = vadd.f32 %v1990_v7, %v1989_v57 }
 0x23c   : > { %v2092_v56 = vadd.f32 %v2091_v40, %v2090_v3  ;;  %v1993_v58 = vadd.f32 %v1992_v45, %v1991_v4 }
 0x23e   : > { %v2094_v11 = vadd.f32 %v2093_v47, %v2092_v56  ;;  %v1995_v17 = vadd.f32 %v1994_v38, %v1993_v58 }
 0x240   : > { %v1909_v34 = vpop.f32.mrf.mxu2  ;;  %v4472_v53 = vpop.f32.mrf.mxu3  ;;  %v2096_v32 = vadd.f32 %v2095_v43, %v2094_v11  ;;  %v1997_v25 = vadd.f32 %v1996_v10, %v1995_v17 }
 0x241   : > { %1959 = vst.msk [vmem:[%s4382_s8 + $0xa0] sm:$0xff] %vm1530_vm1, %v1909_v34  ;;  %v2060_v46 = vmul.f32 %v1909_v34, %v1909_v34  ;;  %v2010_v57 = vsel %vm1530_vm1, %v1909_v34, 0.0 }
 0x242   : > { %1965 = vst.msk [vmem:[%s4382_s8 + $0xd0] sm:$0xff] %vm1530_vm1, %v4472_v53  ;;  %v2098_v36 = vadd.f32 %v2097_v14, %v2096_v32  ;;  %v2065_v32 = vmul.f32 %v4436_v18, %v4436_v18  ;;  %v2020_v14 = vsel %vm1530_vm1, %v4436_v18, 0.0 }
 0x243   : > { %v1894_v39 = vpop.f32.mrf.mxu1  ;;  %v2111_v3 = vsel %vm1530_vm1, %v2060_v46, 0.0 }
 0x244   : > { %1953 = vst.msk [vmem:[%s4382_s8 + $0x70] sm:$0xff] %vm1530_vm1, %v1894_v39  ;;  %v2054_v16 = vmul.f32 %v1894_v39, %v1894_v39  ;;  %v1998_v62 = vsel %vm1530_vm1, %v1894_v39, 0.0  ;;  %v2064_v39 = vmul.f32 %v4426_v9, %v4426_v9 }
 0x245   : > { %v1999_v63 = vadd.f32 %v1998_v62, %v1997_v25 }
 0x246   : > { %v2099_v33 = vsel %vm1530_vm1, %v2054_v16, 0.0  ;;  %v2018_v16 = vsel %vm1530_vm1, %v4426_v9, 0.0  ;;  %v2119_v25 = vsel %vm1530_vm1, %v2064_v39, 0.0  ;;  %v2121_v9 = vsel %vm1530_vm1, %v2065_v32, 0.0 }
 0x247   : > { %v2100_v22 = vadd.f32 %v2099_v33, %v2098_v36  ;;  %v2066_v33 = vmul.f32 %v4472_v53, %v4472_v53 }
 0x248   : > { %v1911_v6 = vpop.f32.mrf.mxu2  ;;  %v4486_v55 = vpop.f32.mrf.mxu3 }
 0x249   : > { %1960 = vst.msk [vmem:[%s4382_s8 + $0xa8] sm:$0xff] %vm1530_vm1, %v1911_v6  ;;  %v2061_v7 = vmul.f32 %v1911_v6, %v1911_v6  ;;  %v2012_v49 = vsel %vm1530_vm1, %v1911_v6, 0.0  ;;  %v2067_v31 = vmul.f32 %v4486_v55, %v4486_v55  ;;  %v2024_v18 = vsel %vm1530_vm1, %v4486_v55, 0.0 }
 0x24a   : > { %1966 = vst.msk [vmem:[%s4382_s8 + $0xd8] sm:$0xff] %vm1530_vm1, %v4486_v55 }
 0x24b   : > { %v1896_v15 = vpop.f32.mrf.mxu1  ;;  %v2113_v56 = vsel %vm1530_vm1, %v2061_v7, 0.0 }
 0x24c   : > { %1954 = vst.msk [vmem:[%s4382_s8 + $0x78] sm:$0xff] %vm1530_vm1, %v1896_v15  ;;  %v2000_v54 = vsel %vm1530_vm1, %v1896_v15, 0.0  ;;  %v2055_v42 = vmul.f32 %v1896_v15, %v1896_v15  ;;  %v2022_v15 = vsel %vm1530_vm1, %v4472_v53, 0.0 }
 0x24d   : > { %v2001_v28 = vadd.f32 %v2000_v54, %v1999_v63 }
 0x24e   : > { %v2101_v27 = vsel %vm1530_vm1, %v2055_v42, 0.0 }
 0x24f   : > { %v2003_v1 = vadd.f32 %v2002_v44, %v2001_v28  ;;  %v2102_v2 = vadd.f32 %v2101_v27, %v2100_v22  ;;  %v2123_v28 = vsel %vm1530_vm1, %v2066_v33, 0.0 }
 0x251   : > { %v2005_v8 = vadd.f32 %v2004_v21, %v2003_v1  ;;  %v2104_v20 = vadd.f32 %v2103_v37, %v2102_v2  ;;  %v2125_v1 = vsel %vm1530_vm1, %v2067_v31, 0.0 }
 0x253   : > { %v2007_v26 = vadd.f32 %v2006_v61, %v2005_v8  ;;  %v2106_v50 = vadd.f32 %v2105_v59, %v2104_v20 }
 0x255   : > { %v2108_v0 = vadd.f32 %v2107_v52, %v2106_v50  ;;  %v2009_v60 = vadd.f32 %v2008_v23, %v2007_v26 }
 0x257   : > { %v2110_v29 = vadd.f32 %v2109_v24, %v2108_v0  ;;  %v2011_v13 = vadd.f32 %v2010_v57, %v2009_v60 }
 0x258   : > { %v1914_v51 = vpop.f32.mrf.mxu2  ;;  %v1929_v5 = vpop.f32.mrf.mxu3 }
 0x259   : > { %1961 = vst.msk [vmem:[%s4382_s8 + $0xb0] sm:$0xff] %vm1530_vm1, %v1914_v51  ;;  %v2112_v4 = vadd.f32 %v2111_v3, %v2110_v29  ;;  %v2062_v40 = vmul.f32 %v1914_v51, %v1914_v51  ;;  %v2013_v41 = vadd.f32 %v2012_v49, %v2011_v13  ;;  %v2014_v45 = vsel %vm1530_vm1, %v1914_v51, 0.0 }
 0x25a   : > { %1967 = vst.msk [vmem:[%s4382_s8 + $0xe0] sm:$0xff] %vm1530_vm1, %v1929_v5  ;;  %v2068_v44 = vmul.f32 %v1929_v5, %v1929_v5  ;;  %v2026_v53 = vsel %vm1530_vm1, %v1929_v5, 0.0 }
 0x25b   : > { %v2114_v34 = vadd.f32 %v2113_v56, %v2112_v4  ;;  %v2115_v58 = vsel %vm1530_vm1, %v2062_v40, 0.0  ;;  %v2015_v47 = vadd.f32 %v2014_v45, %v2013_v41 }
 0x25c   : > { %v2127_v35 = vsel %vm1530_vm1, %v2068_v44, 0.0 }
 0x25d   : > { %v2116_v43 = vadd.f32 %v2115_v58, %v2114_v34 }
 0x260   : > { %v1916_v12 = vpop.f32.mrf.mxu2  ;;  %v1931_v11 = vpop.f32.mrf.mxu3 }
 0x261   : > { %1962 = vst.msk [vmem:[%s4382_s8 + $0xb8] sm:$0xff] %vm1530_vm1, %v1916_v12  ;;  %v2016_v38 = vsel %vm1530_vm1, %v1916_v12, 0.0  ;;  %v2063_v17 = vmul.f32 %v1916_v12, %v1916_v12  ;;  %v2069_v2 = vmul.f32 %v1931_v11, %v1931_v11  ;;  %v2028_v8 = vsel %vm1530_vm1, %v1931_v11, 0.0 }
 0x262   : > { %v2017_v30 = vadd.f32 %v2016_v38, %v2015_v47  ;;  %1968 = vst.msk [vmem:[%s4382_s8 + $0xe8] sm:$0xff] %vm1530_vm1, %v1931_v11 }
 0x263   : > { %v2117_v10 = vsel %vm1530_vm1, %v2063_v17, 0.0  ;;  %v2129_v61 = vsel %vm1530_vm1, %v2069_v2, 0.0 }
 0x264   : > { %v2019_v62 = vadd.f32 %v2018_v16, %v2017_v30  ;;  %v2118_v6 = vadd.f32 %v2117_v10, %v2116_v43 }
 0x266   : > { %v2021_v36 = vadd.f32 %v2020_v14, %v2019_v62  ;;  %v2120_v63 = vadd.f32 %v2119_v25, %v2118_v6 }
 0x268   : > { %v2023_v54 = vadd.f32 %v2022_v15, %v2021_v36  ;;  %v2122_v42 = vadd.f32 %v2121_v9, %v2120_v63  ;;  %v1934_v22 = vpop.f32.mrf.mxu3 }
 0x269   : > { %1969 = vst.msk [vmem:[%s4382_s8 + $0xf0] sm:$0xff] %vm1530_vm1, %v1934_v22  ;;  %v2070_v20 = vmul.f32 %v1934_v22, %v1934_v22  ;;  %v2030_v19 = vsel %vm1530_vm1, %v1934_v22, 0.0 }
 0x26a   : > { %v2124_v48 = vadd.f32 %v2123_v28, %v2122_v42  ;;  %v2025_v27 = vadd.f32 %v2024_v18, %v2023_v54 }
 0x26b   : > { %v2131_v23 = vsel %vm1530_vm1, %v2070_v20, 0.0 }
 0x26c   : > { %v2027_v37 = vadd.f32 %v2026_v53, %v2025_v27  ;;  %v2126_v21 = vadd.f32 %v2125_v1, %v2124_v48 }
 0x26e   : > { %v2029_v59 = vadd.f32 %v2028_v8, %v2027_v37  ;;  %v2128_v55 = vadd.f32 %v2127_v35, %v2126_v21 }
 0x270   : > { %v2130_v26 = vadd.f32 %v2129_v61, %v2128_v55  ;;  %v2031_v50 = vadd.f32 %v2030_v19, %v2029_v59  ;;  %v1936_v52 = vpop.f32.mrf.mxu3 }
 0x271   : > { %1970 = vst.msk [vmem:[%s4382_s8 + $0xf8] sm:$0xff] %vm1530_vm1, %v1936_v52  ;;  %v2032_v46 = vsel %vm1530_vm1, %v1936_v52, 0.0  ;;  %v2071_v0 = vmul.f32 %v1936_v52, %v1936_v52 }
 0x272   : > { %v2132_v60 = vadd.f32 %v2131_v23, %v2130_v26  ;;  %v2033_v24 = vadd.f32 %v2032_v46, %v2031_v50 }
 0x273   : > { %v2133_v57 = vsel %vm1530_vm1, %v2071_v0, 0.0 }
 0x274   : > { %v2034_v29 = vrot.slane %v2033_v24, 4  ;;  %v2134_v51 = vadd.f32 %v2133_v57, %v2132_v60 }
 0x276   : > { %v2035_v13 = vadd.f32 %v2034_v29, %v2033_v24  ;;  %v2135_v5 = vrot.slane %v2134_v51, 4 }
 0x278   : > { %v2036_v3 = vrot.slane %v2035_v13, 2  ;;  %v2136_v7 = vadd.f32 %v2135_v5, %v2134_v51 }
 0x27a   : > { %v2037_v4 = vadd.f32 %v2036_v3, %v2035_v13  ;;  %v2137_v49 = vrot.slane %v2136_v7, 2 }
 0x27c   : > { %v2038_v40 = vrot.slane %v2037_v4, 1  ;;  %v2138_v41 = vadd.f32 %v2137_v49, %v2136_v7 }
 0x27e   : > { %v2139_v56 = vrot.slane %v2138_v41, 1  ;;  %v2039_v45 = vadd.f32 %v2038_v40, %v2037_v4 }
 0x280   : > { %v2140_v34 = vadd.f32 %v2139_v56, %v2138_v41 }
 0x282   : > { %v2142_v58 = vsel %vm2141_vm10, %v2039_v45, %v2140_v34 }
 0x283   : > { %2144 = vst.msk [vmem:[%s181_s14] sm:$0x3] %vm2143_vm11, %v2142_v58 }
 0x284 PF: > { %s14_s12 = sadd.s32 1, %s3133_s12  }
 0x285   : > { %p11_p4 = scmp.ge.s32.totalorder %s14_s12, 4  }
 0x287   :  { %13 = sbr.rel (!%p11_p4) target bundleno = 1 (0x1), region = 72 }

// kernel: resunet_mid_stage_block.4
= control target key start
LH: loop header
LB: loop body
LE: loop exit
PB: predicated region body
PF: predicated region fallthrough
CT: control target
= control target key end

     0   :  { %s3258_s15 = smov 0   ;;  %s4734_s0 = inlined_call_operand.vmem [shape: f32[2,256,8], index: 0, kind: input, shape index: {}]   ;;  %s4735_s1 = inlined_call_operand.vmem [shape: f32[2,8], index: 1, kind: input, shape index: {}]   ;;  %s4736_s2 = inlined_call_operand.vmem [shape: bf16[72,8], index: 2, kind: input, shape index: {}]   ;;  %s4737_s3 = inlined_call_operand.vmem [shape: f32[2,256,8], index: 3, kind: output, shape index: {0}]   ;;  %s4738_s4 = inlined_call_operand.vmem [shape: f32[2,2,8], index: 4, kind: output, shape index: {1}]  }
   0x1 LB: > { %s2492_s16 = sadd.s32 4294967295, %s3222_s15   ;;  %p2496_p0 = scmp.ge.s32.totalorder %s3222_s15, 1  ;;  %s3222_s15 = sphi %s3258_s15, %s15_s15  }
   0x2   : > { %p165_p1 = scmp.lt.s32.totalorder %s3222_s15, 3 }
   0x4   : > { %p166_p2 = pnand %p2496_p0, %p165_p1 }
   0x6   : > { %169 = sbr.rel (%p166_p2) target bundleno = 702 (0x2be), region = 32 }
   0xb   : > { %vm342_vm0 = vcmask 64512   ;;  %vm345_vm1 = vcmask 58368   ;;  %v3224_v0 = vmov 0.0   ;;  %s3225_s17 = smov 8   ;;  %p195_p3 = scmp.lt.s32.totalorder %s2492_s16, 1  ;;  %vm1776_vm2 = vcmask 130048  }
   0xc   : > { %343 = vst.msk [vmem:[#allocation2] sm:$0xff] %vm342_vm0, %v3224_v0  ;;  %v3362_v4 = vld [vmem:[%s4735_s1] ss:$0 sm:$0xff]  ;;  %v3379_v9 = vld [vmem:[%s4735_s1 + $0x1] ss:$0 sm:$0xff]  ;;  %s3226_s26 = smov 16  }
   0xd   : > { %344 = vst.msk [vmem:[#allocation2 + $0x8] sm:$0xff] %vm342_vm0, %v3224_v0  ;;  %s4782_s16 = smov (!%p195_p3, %s2492_s16), 1  ;;  %s3227_s27 = smov 24   ;;  %vm1809_vm3 = vcmask 195584   ;;  %vm1842_vm4 = vcmask 261120   ;;  %vm1875_vm5 = vcmask 326656  }
   0xe   : > { %346 = vst.msk [vmem:[#allocation2 + $0x10] sm:$0x3] %vm345_vm1, %v3224_v0  ;;  %s2536_s18 = sshll.u32 %s4782_s16, 8  ;;  %s3228_s28 = smov 32   ;;  %vm2108_vm6 = vcmask 1043456   ;;  %vm1908_vm7 = vcmask 392192  }
   0xf   : > { %347 = vst.msk [vmem:[#allocation2 + $0x18] sm:$0xff] %vm342_vm0, %v3224_v0  ;;  %s3353_s21 = scalar_lea.vmem %s4734_s0, %s2536_s18  ;;  %s3229_s29 = smov 40   ;;  %vm1941_vm8 = vcmask 457728   ;;  %vm1974_vm9 = vcmask 523264   ;;  %vm2059_vm10 = vcmask 588800   ;;  %vm2403_vm11 = vcmask 1040384  }
  0x10   : > { %348 = vst.msk [vmem:[#allocation2 + $0x20] sm:$0xff] %vm342_vm0, %v3224_v0  ;;  %v216_v5 = vld [vmem:[%s3353_s21 + $0x30] sm:$0xff]  ;;  %v217_v6 = vld [vmem:[%s3353_s21 + $0x38] sm:$0xff]  ;;  %v210_v12 = vld [vmem:[%s3353_s21] sm:$0xff]  ;;  %s3230_s30 = smov 48   ;;  %s3231_s5 = smov 56  }
  0x11   : > { %349 = vst.msk [vmem:[#allocation2 + $0x28] sm:$0x3] %vm345_vm1, %v3224_v0  ;;  %v212_v7 = vld [vmem:[%s3353_s21 + $0x10] sm:$0xff]  ;;  %v250_v8 = vmul.f32 %v3362_v4, %v216_v5  ;;  %v213_v10 = vld [vmem:[%s3353_s21 + $0x18] sm:$0xff]  ;;  %v251_v11 = vmul.f32 %v3362_v4, %v217_v6  ;;  %v211_v14 = vld [vmem:[%s3353_s21 + $0x8] sm:$0xff]  ;;  %v244_v18 = vmul.f32 %v3362_v4, %v210_v12  ;;  %s3232_s6 = smov 64   ;;  %s4541_s22 = scalar_lea.vmem %s4737_s3, %s2536_s18 }
  0x12   : > { %350 = vst.msk [vmem:[#allocation2 + $0x30] sm:$0xff] %vm342_vm0, %v3224_v0  ;;  %v246_v13 = vmul.f32 %v3362_v4, %v212_v7  ;;  %v247_v15 = vmul.f32 %v3362_v4, %v213_v10  ;;  %v218_v16 = vld [vmem:[%s3353_s21 + $0x40] sm:$0xff]  ;;  %v219_v19 = vld [vmem:[%s3353_s21 + $0x48] sm:$0xff]  ;;  %v245_v21 = vmul.f32 %v3362_v4, %v211_v14  ;;  %v220_v28 = vld [vmem:[%s3353_s21 + $0x50] sm:$0xff]  ;;  %s2501_s18 = sshll.u32 %s4782_s16, 1 }
  0x13   : > { %351 = vst.msk [vmem:[#allocation2 + $0x38] sm:$0xff] %vm342_vm0, %v3224_v0  ;;  %v284_v17 = vadd.f32 %v3379_v9, %v250_v8  ;;  %v285_v20 = vadd.f32 %v3379_v9, %v251_v11  ;;  %v214_v22 = vld [vmem:[%s3353_s21 + $0x20] sm:$0xff]  ;;  %v252_v24 = vmul.f32 %v3362_v4, %v218_v16  ;;  %v215_v25 = vld [vmem:[%s3353_s21 + $0x28] sm:$0xff]  ;;  %v253_v27 = vmul.f32 %v3362_v4, %v219_v19  ;;  %v221_v32 = vld [vmem:[%s3353_s21 + $0x58] sm:$0xff]  ;;  %s208_s25 = scalar_lea.vmem %s4738_s4, %s2501_s18 }
  0x14   : > { %v463_v1 = vld [vmem:[#allocation2 + $0x1] sm:$0xff]  ;;  %352 = vst.msk [vmem:[#allocation2 + $0x40] sm:$0x3] %vm345_vm1, %v3224_v0  ;;  %v280_v23 = vadd.f32 %v3379_v9, %v246_v13  ;;  %v281_v26 = vadd.f32 %v3379_v9, %v247_v15  ;;  %v278_v30 = vadd.f32 %v3379_v9, %v244_v18  ;;  %v248_v31 = vmul.f32 %v3362_v4, %v214_v22  ;;  %v224_v36 = vld [vmem:[%s3353_s21 + $0x70] sm:$0xff]  ;;  %v225_v40 = vld [vmem:[%s3353_s21 + $0x78] sm:$0xff] }
  0x15   : > { %v464_v2 = vld [vmem:[#allocation2 + $0x9] sm:$0xff]  ;;  %353 = vst.msk [vmem:[#allocation2 + $0x48] sm:$0xff] %vm342_vm0, %v3224_v0  ;;  %v316_v29 = vmax.f32 %v284_v17, 0.0  ;;  %v317_v33 = vmax.f32 %v285_v20, 0.0  ;;  %v279_v34 = vadd.f32 %v3379_v9, %v245_v21  ;;  %v249_v35 = vmul.f32 %v3362_v4, %v215_v25  ;;  %v222_v44 = vld [vmem:[%s3353_s21 + $0x60] sm:$0xff]  ;;  %v229_v10 = vld [vmem:[%s3353_s21 + $0x98] sm:$0xff] }
  0x16   : > { %v2574_v3 = vpack.i.bf16 %v464_v2, %v463_v1  ;;  %354 = vst.msk [vmem:[#allocation2 + $0x50] sm:$0xff] %vm342_vm0, %v3224_v0  ;;  %v312_v37 = vmax.f32 %v280_v23, 0.0  ;;  %v286_v38 = vadd.f32 %v3379_v9, %v252_v24  ;;  %v254_v39 = vmul.f32 %v3362_v4, %v220_v28  ;;  %v223_v48 = vld [vmem:[%s3353_s21 + $0x68] sm:$0xff]  ;;  %v226_v52 = vld [vmem:[%s3353_s21 + $0x80] sm:$0xff]  ;;  %v228_v5 = vld [vmem:[%s3353_s21 + $0x90] sm:$0xff] }
  0x17   : > { %355 = vst.msk [vmem:[#allocation2 + $0x58] sm:$0x3] %vm345_vm1, %v3224_v0  ;;  %v313_v41 = vmax.f32 %v281_v26, 0.0  ;;  %v287_v42 = vadd.f32 %v3379_v9, %v253_v27  ;;  %v255_v43 = vmul.f32 %v3362_v4, %v221_v32  ;;  %v310_v45 = vmax.f32 %v278_v30, 0.0  ;;  %v227_v56 = vld [vmem:[%s3353_s21 + $0x88] sm:$0xff]  ;;  %v230_v60 = vld [vmem:[%s3353_s21 + $0xa0] sm:$0xff] }
  0x18   : > { %2575 = vrot.lane.b32.xlu0 %v2574_v3, %s3225_s17  ;;  %356 = vst.msk [vmem:[#allocation2 + $0x60] sm:$0xff] %vm342_vm0, %v3224_v0  ;;  %v282_v46 = vadd.f32 %v3379_v9, %v248_v31  ;;  %v258_v47 = vmul.f32 %v3362_v4, %v224_v36  ;;  %v311_v49 = vmax.f32 %v279_v34, 0.0  ;;  %v283_v50 = vadd.f32 %v3379_v9, %v249_v35  ;;  %v232_v15 = vld [vmem:[%s3353_s21 + $0xb0] sm:$0xff]  ;;  %v233_v20 = vld [vmem:[%s3353_s21 + $0xb8] sm:$0xff] }
  0x19   : > { %357 = vst.msk [vmem:[#allocation2 + $0x68] sm:$0xff] %vm342_vm0, %v3224_v0  ;;  %v259_v51 = vmul.f32 %v3362_v4, %v225_v40  ;;  %v318_v53 = vmax.f32 %v286_v38, 0.0  ;;  %v288_v54 = vadd.f32 %v3379_v9, %v254_v39  ;;  %v256_v55 = vmul.f32 %v3362_v4, %v222_v44  ;;  %v236_v26 = vld [vmem:[%s3353_s21 + $0xd0] sm:$0xff]  ;;  %v237_v31 = vld [vmem:[%s3353_s21 + $0xd8] sm:$0xff] }
  0x1a   : > { %358 = vst.msk [vmem:[#allocation2 + $0x70] sm:$0x3] %vm345_vm1, %v3224_v0  ;;  %v319_v57 = vmax.f32 %v287_v42, 0.0  ;;  %v289_v58 = vadd.f32 %v3379_v9, %v255_v43  ;;  %v257_v59 = vmul.f32 %v3362_v4, %v223_v48  ;;  %v314_v61 = vmax.f32 %v282_v46, 0.0  ;;  %v235_v42 = vld [vmem:[%s3353_s21 + $0xc8] sm:$0xff]  ;;  %v238_v48 = vld [vmem:[%s3353_s21 + $0xe0] sm:$0xff] }
  0x1b   : > { %359 = vst.msk [vmem:[#allocation2 + $0x78] sm:$0xff] %vm342_vm0, %v3224_v0  ;;  %v292_v62 = vadd.f32 %v3379_v9, %v258_v47  ;;  %v260_v63 = vmul.f32 %v3362_v4, %v226_v52  ;;  %v315_v1 = vmax.f32 %v283_v50, 0.0  ;;  %v293_v2 = vadd.f32 %v3379_v9, %v259_v51 }
  0x1c   : > { %360 = vst.msk [vmem:[#allocation2 + $0x80] sm:$0xff] %vm342_vm0, %v3224_v0  ;;  %v261_v3 = vmul.f32 %v3362_v4, %v227_v56  ;;  %v320_v6 = vmax.f32 %v288_v54, 0.0  ;;  %v290_v7 = vadd.f32 %v3379_v9, %v256_v55  ;;  %v264_v8 = vmul.f32 %v3362_v4, %v230_v60 }
  0x1d   : > { %361 = vst.msk [vmem:[#allocation2 + $0x88] sm:$0x3] %vm345_vm1, %v3224_v0  ;;  %v321_v12 = vmax.f32 %v289_v58, 0.0  ;;  %v291_v13 = vadd.f32 %v3379_v9, %v257_v59  ;;  %v324_v17 = vmax.f32 %v292_v62, 0.0  ;;  %v294_v18 = vadd.f32 %v3379_v9, %v260_v63 }
  0x1e   : > { %362 = vst.msk [vmem:[#allocation2 + $0x90] sm:$0xff] %vm342_vm0, %v3224_v0  ;;  %v262_v19 = vmul.f32 %v3362_v4, %v228_v5  ;;  %v325_v23 = vmax.f32 %v293_v2, 0.0  ;;  %v295_v24 = vadd.f32 %v3379_v9, %v261_v3  ;;  %v263_v25 = vmul.f32 %v3362_v4, %v229_v10 }
  0x1f   : > { %363 = vst.msk [vmem:[#allocation2 + $0x98] sm:$0xff] %vm342_vm0, %v3224_v0  ;;  %v322_v28 = vmax.f32 %v290_v7, 0.0  ;;  %v266_v30 = vmul.f32 %v3362_v4, %v232_v15  ;;  %v323_v34 = vmax.f32 %v291_v13, 0.0  ;;  %v267_v36 = vmul.f32 %v3362_v4, %v233_v20 }
  0x20   : > { %364 = vst.msk [vmem:[#allocation2 + $0xa0] sm:$0x3] %vm345_vm1, %v3224_v0  ;;  %v326_v39 = vmax.f32 %v294_v18, 0.0  ;;  %v296_v40 = vadd.f32 %v3379_v9, %v262_v19  ;;  %v297_v46 = vadd.f32 %v3379_v9, %v263_v25  ;;  %v271_v47 = vmul.f32 %v3362_v4, %v237_v31 }
  0x21   : > { %365 = vst.msk [vmem:[#allocation2 + $0xa8] sm:$0xff] %vm342_vm0, %v3224_v0  ;;  %v300_v51 = vadd.f32 %v3379_v9, %v266_v30  ;;  %v269_v58 = vmul.f32 %v3362_v4, %v235_v42  ;;  %v272_v62 = vmul.f32 %v3362_v4, %v238_v48 }
  0x22   : > { %366 = vst.msk [vmem:[#allocation2 + $0xb0] sm:$0xff] %vm342_vm0, %v3224_v0  ;;  %v328_v60 = vmax.f32 %v296_v40, 0.0  ;;  %v305_v2 = vadd.f32 %v3379_v9, %v271_v47 }
  0x23   : > { %367 = vst.msk [vmem:[#allocation2 + $0xb8] sm:$0x3] %vm345_vm1, %v3224_v0  ;;  %v306_v15 = vadd.f32 %v3379_v9, %v272_v62 }
  0x24   : > { %368 = vst.msk [vmem:[#allocation2 + $0xc0] sm:$0xff] %vm342_vm0, %v3224_v0 }
  0x25   : > { %369 = vst.msk [vmem:[#allocation2 + $0xc8] sm:$0xff] %vm342_vm0, %v3224_v0 }
  0x26   : > { %370 = vst.msk [vmem:[#allocation2 + $0xd0] sm:$0x3] %vm345_vm1, %v3224_v0 }
  0x27   : > { %371 = vst.msk [vmem:[#allocation2 + $0xd8] sm:$0xff] %vm342_vm0, %v3224_v0 }
  0x28   : > { %372 = vst.msk [vmem:[#allocation2 + $0xe0] sm:$0xff] %vm342_vm0, %v3224_v0 }
  0x29   : > { %373 = vst.msk [vmem:[#allocation2 + $0xe8] sm:$0x3] %vm345_vm1, %v3224_v0 }
  0x2a   : > { %374 = vst.msk [vmem:[#allocation2 + $0xf0] sm:$0xff] %vm342_vm0, %v3224_v0 }
  0x2b   : > { %375 = vst.msk [vmem:[#allocation2 + $0xf8] sm:$0xff] %vm342_vm0, %v3224_v0 }
  0x2c   : > { %376 = vst.msk [vmem:[#allocation2 + $0x100] sm:$0x3] %vm345_vm1, %v3224_v0 }
  0x2d   : > { %377 = vst.msk [vmem:[#allocation2 + $0x108] sm:$0xff] %vm342_vm0, %v3224_v0 }
  0x2e   : > { %378 = vst.msk [vmem:[#allocation2 + $0x110] sm:$0xff] %vm342_vm0, %v3224_v0 }
  0x2f   : > { %379 = vst.msk [vmem:[#allocation2 + $0x118] sm:$0x3] %vm345_vm1, %v3224_v0 }
  0x30   : > { %380 = vst.msk [vmem:[#allocation2 + $0x120] sm:$0xff] %vm342_vm0, %v3224_v0 }
  0x31   : > { %381 = vst.msk [vmem:[#allocation2 + $0x128] sm:$0xff] %vm342_vm0, %v3224_v0 }
  0x32   : > { %382 = vst.msk [vmem:[#allocation2 + $0x130] sm:$0x3] %vm345_vm1, %v3224_v0 }
  0x33   : > { %383 = vst.msk [vmem:[#allocation2 + $0x138] sm:$0xff] %vm342_vm0, %v3224_v0 }
  0x34   : > { %384 = vst.msk [vmem:[#allocation2 + $0x140] sm:$0xff] %vm342_vm0, %v3224_v0 }
  0x35   : > { %385 = vst.msk [vmem:[#allocation2 + $0x148] sm:$0x3] %vm345_vm1, %v3224_v0 }
  0x36   : > { %386 = vst.msk [vmem:[#allocation2 + $0x150] sm:$0xff] %vm342_vm0, %v3224_v0 }
  0x37   : > { %387 = vst.msk [vmem:[#allocation2 + $0x158] sm:$0xff] %vm342_vm0, %v3224_v0 }
  0x38   : > { %388 = vst.msk [vmem:[#allocation2 + $0x160] sm:$0x3] %vm345_vm1, %v3224_v0 }
  0x39   : > { %389 = vst.msk [vmem:[#allocation2 + $0x168] sm:$0xff] %vm342_vm0, %v3224_v0 }
  0x3a   : > { %390 = vst.msk [vmem:[#allocation2 + $0x170] sm:$0xff] %vm342_vm0, %v3224_v0 }
  0x3b   : > { %391 = vst.msk [vmem:[#allocation2 + $0x178] sm:$0x3] %vm345_vm1, %v3224_v0 }
  0x3c   : > { %392 = vst.msk [vmem:[#allocation2 + $0x180] sm:$0xff] %vm342_vm0, %v3224_v0 }
  0x3d   : > { %393 = vst.msk [vmem:[#allocation2 + $0x188] sm:$0xff] %vm342_vm0, %v3224_v0 }
  0x3e   : > { %394 = vst.msk [vmem:[#allocation2 + $0x190] sm:$0x3] %vm345_vm1, %v3224_v0 }
  0x3f   : > { %395 = vst.msk [vmem:[#allocation2 + $0x198] sm:$0xff] %vm342_vm0, %v3224_v0 }
  0x40   : > { %396 = vst.msk [vmem:[#allocation2 + $0x1a0] sm:$0xff] %vm342_vm0, %v3224_v0 }
  0x41   : > { %397 = vst.msk [vmem:[#allocation2 + $0x1a8] sm:$0x3] %vm345_vm1, %v3224_v0  ;;  %v231_v0 = vld [vmem:[%s3353_s21 + $0xa8] sm:$0xff] }
  0x42   : > { %405 = vst.msk [vmem:[#allocation2 + $0x61] sm:$0xff] %vm342_vm0, %v316_v29  ;;  %v265_v14 = vmul.f32 %v3362_v4, %v231_v0  ;;  %v298_v29 = vadd.f32 %v3379_v9, %v264_v8 }
  0x43   : > { %406 = vst.msk [vmem:[#allocation2 + $0x69] sm:$0xff] %vm342_vm0, %v317_v33 }
  0x44   : > { %401 = vst.msk [vmem:[#allocation2 + $0x31] sm:$0xff] %vm342_vm0, %v312_v37  ;;  %v299_v35 = vadd.f32 %v3379_v9, %v265_v14  ;;  %v234_v37 = vld [vmem:[%s3353_s21 + $0xc0] sm:$0xff]  ;;  %v330_v50 = vmax.f32 %v298_v29, 0.0 }
  0x45   : > { %402 = vst.msk [vmem:[#allocation2 + $0x39] sm:$0xff] %vm342_vm0, %v313_v41  ;;  %v270_v41 = vmul.f32 %v3362_v4, %v236_v26  ;;  %v268_v52 = vmul.f32 %v3362_v4, %v234_v37  ;;  %v338_v26 = vmax.f32 %v306_v15, 0.0 }
  0x46   : > { %399 = vst.msk [vmem:[#allocation2 + $0x19] sm:$0xff] %vm342_vm0, %v310_v45  ;;  %v327_v45 = vmax.f32 %v295_v24, 0.0  ;;  %v331_v56 = vmax.f32 %v299_v35, 0.0 }
  0x47   : > { %400 = vst.msk [vmem:[#allocation2 + $0x21] sm:$0xff] %vm342_vm0, %v311_v49  ;;  %v302_v7 = vadd.f32 %v3379_v9, %v268_v52  ;;  %v495_v52 = vld [vmem:[#allocation2 + $0x2] sm:$0xff] }
  0x48   : > { %407 = vst.msk [vmem:[#allocation2 + $0x79] sm:$0xff] %vm342_vm0, %v318_v53  ;;  %v239_v53 = vld [vmem:[%s3353_s21 + $0xe8] sm:$0xff] }
  0x49   : > { %v471_v11 = vld [vmem:[#allocation2 + $0x61] sm:$0xff]  ;;  %408 = vst.msk [vmem:[#allocation2 + $0x81] sm:$0xff] %vm342_vm0, %v319_v57  ;;  %v301_v57 = vadd.f32 %v3379_v9, %v267_v36  ;;  %v273_v3 = vmul.f32 %v3362_v4, %v239_v53  ;;  %v334_v20 = vmax.f32 %v302_v7, 0.0  ;;  %v496_v53 = vld [vmem:[#allocation2 + $0xa] sm:$0xff] }
  0x4a   : > { %v472_v16 = vld [vmem:[#allocation2 + $0x69] sm:$0xff]  ;;  %403 = vst.msk [vmem:[#allocation2 + $0x49] sm:$0xff] %vm342_vm0, %v314_v61  ;;  %v304_v61 = vadd.f32 %v3379_v9, %v270_v41 }
  0x4b   : > { %v3470_v21 = vpack.i.bf16 %v472_v16, %v471_v11  ;;  %v467_v22 = vld [vmem:[#allocation2 + $0x31] sm:$0xff]  ;;  %404 = vst.msk [vmem:[#allocation2 + $0x51] sm:$0xff] %vm342_vm0, %v315_v1  ;;  %v329_v1 = vmax.f32 %v297_v46, 0.0  ;;  %v333_v10 = vmax.f32 %v301_v57, 0.0  ;;  %v303_v11 = vadd.f32 %v3379_v9, %v269_v58 }
  0x4c   : > { %v468_v27 = vld [vmem:[#allocation2 + $0x39] sm:$0xff]  ;;  %409 = vst.msk [vmem:[#allocation2 + $0x91] sm:$0xff] %vm342_vm0, %v320_v6  ;;  %v332_v6 = vmax.f32 %v300_v51, 0.0  ;;  %v336_v14 = vmax.f32 %v304_v61, 0.0  ;;  %v337_v16 = vmax.f32 %v305_v2, 0.0  ;;  %v2654_v58 = vpack.i.bf16 %v496_v53, %v495_v52  ;;  %v504_v61 = vld [vmem:[#allocation2 + $0x6a] sm:$0xff] }
  0x4d   : > { %2595 = vrot.lane.b32.xlu2 %v3470_v21, %s3225_s17  ;;  %v3482_v32 = vpack.i.bf16 %v468_v27, %v467_v22  ;;  %v465_v33 = vld [vmem:[#allocation2 + $0x19] sm:$0xff]  ;;  %410 = vst.msk [vmem:[#allocation2 + $0x99] sm:$0xff] %vm342_vm0, %v321_v12  ;;  %v240_v52 = vld [vmem:[%s3353_s21 + $0xf0] sm:$0xff] }
  0x4e   : > { %v466_v38 = vld [vmem:[#allocation2 + $0x21] sm:$0xff]  ;;  %413 = vst.msk [vmem:[#allocation2 + $0xc1] sm:$0xff] %vm342_vm0, %v324_v17  ;;  %v307_v17 = vadd.f32 %v3379_v9, %v273_v3  ;;  %v241_v53 = vld [vmem:[%s3353_s21 + $0xf8] sm:$0xff] }
  0x4f   : > { %2585 = vrot.lane.b32.xlu1 %v3482_v32, %s3225_s17  ;;  %v3494_v43 = vpack.i.bf16 %v466_v38, %v465_v33  ;;  %v473_v44 = vld [vmem:[#allocation2 + $0x79] sm:$0xff]  ;;  %414 = vst.msk [vmem:[#allocation2 + $0xc9] sm:$0xff] %vm342_vm0, %v325_v23  ;;  %v335_v23 = vmax.f32 %v303_v11, 0.0  ;;  %v498_v51 = vld [vmem:[#allocation2 + $0x22] sm:$0xff] }
  0x50   : > { %v474_v49 = vld [vmem:[#allocation2 + $0x81] sm:$0xff]  ;;  %411 = vst.msk [vmem:[#allocation2 + $0xa9] sm:$0xff] %vm342_vm0, %v322_v28  ;;  %v339_v28 = vmax.f32 %v307_v17, 0.0 }
  0x51   : > { %2580 = vrot.lane.b32.xlu0 %v3494_v43, %s3225_s17  ;;  %v3506_v54 = vpack.i.bf16 %v474_v49, %v473_v44  ;;  %v469_v55 = vld [vmem:[#allocation2 + $0x49] sm:$0xff]  ;;  %412 = vst.msk [vmem:[#allocation2 + $0xb1] sm:$0xff] %vm342_vm0, %v323_v34  ;;  %v500_v57 = vld [vmem:[#allocation2 + $0x3a] sm:$0xff] }
  0x52   : > { %v470_v59 = vld [vmem:[#allocation2 + $0x51] sm:$0xff]  ;;  %415 = vst.msk [vmem:[#allocation2 + $0xd9] sm:$0xff] %vm342_vm0, %v326_v39  ;;  %v505_v2 = vld [vmem:[#allocation2 + $0x7a] sm:$0xff]  ;;  %v506_v3 = vld [vmem:[#allocation2 + $0x82] sm:$0xff] }
  0x53   : > { %v3514_v63 = vpack.i.bf16 %v470_v59, %v469_v55  ;;  %v475_v0 = vld [vmem:[#allocation2 + $0x91] sm:$0xff]  ;;  %416 = vst.msk [vmem:[#allocation2 + $0xe1] sm:$0xff] %vm342_vm0, %v327_v45 }
  0x54   : > { %v476_v5 = vld [vmem:[#allocation2 + $0x99] sm:$0xff]  ;;  %419 = vst.msk [vmem:[#allocation2 + $0x109] sm:$0xff] %vm342_vm0, %v330_v50  ;;  %v501_v62 = vld [vmem:[#allocation2 + $0x4a] sm:$0xff] }
  0x55   : > { %2600 = vrot.lane.b32.xlu2 %v3506_v54, %s3225_s17  ;;  %v3523_v8 = vpack.i.bf16 %v476_v5, %v475_v0  ;;  %420 = vst.msk [vmem:[#allocation2 + $0x111] sm:$0xff] %vm342_vm0, %v331_v56  ;;  %v479_v12 = vld [vmem:[#allocation2 + $0xc1] sm:$0xff]  ;;  %v499_v56 = vld [vmem:[#allocation2 + $0x32] sm:$0xff] }
  0x56   : > { %v480_v13 = vld [vmem:[#allocation2 + $0xc9] sm:$0xff]  ;;  %417 = vst.msk [vmem:[#allocation2 + $0xf1] sm:$0xff] %vm342_vm0, %v328_v60  ;;  %v497_v50 = vld [vmem:[#allocation2 + $0x1a] sm:$0xff]  ;;  %v3583_v59 = vpack.i.bf16 %v500_v57, %v499_v56  ;;  %v502_v0 = vld [vmem:[#allocation2 + $0x52] sm:$0xff]  ;;  %v274_v57 = vmul.f32 %v3362_v4, %v240_v52 }
  0x57   : > { %2590 = vrot.lane.b32.xlu1 %v3514_v63, %s3225_s17  ;;  %418 = vst.msk [vmem:[#allocation2 + $0xf9] sm:$0xff] %vm342_vm0, %v329_v1  ;;  %v477_v18 = vld [vmem:[#allocation2 + $0xa9] sm:$0xff]  ;;  %v3536_v22 = vpack.i.bf16 %v480_v13, %v479_v12  ;;  %v3579_v55 = vpack.i.bf16 %v498_v51, %v497_v50  ;;  %v3590_v5 = vpack.i.bf16 %v502_v0, %v501_v62  ;;  %v507_v11 = vld [vmem:[#allocation2 + $0x92] sm:$0xff]  ;;  %v508_v12 = vld [vmem:[#allocation2 + $0x9a] sm:$0xff] }
  0x58   : > { %v478_v19 = vld [vmem:[#allocation2 + $0xb1] sm:$0xff]  ;;  %421 = vst.msk [vmem:[#allocation2 + $0x121] sm:$0xff] %vm342_vm0, %v332_v6  ;;  %v503_v60 = vld [vmem:[#allocation2 + $0x62] sm:$0xff]  ;;  %v3594_v6 = vpack.i.bf16 %v506_v3, %v505_v2  ;;  %v308_v0 = vadd.f32 %v3379_v9, %v274_v57 }
  0x59   : > { %2605 = vrot.lane.b32.xlu0 %v3523_v8, %s3225_s17  ;;  %422 = vst.msk [vmem:[#allocation2 + $0x129] sm:$0xff] %vm342_vm0, %v333_v10  ;;  %v481_v24 = vld [vmem:[#allocation2 + $0xd9] sm:$0xff]  ;;  %v3540_v27 = vpack.i.bf16 %v478_v19, %v477_v18  ;;  %v3588_v1 = vpack.i.bf16 %v504_v61, %v503_v60  ;;  %v509_v7 = vld [vmem:[#allocation2 + $0xaa] sm:$0xff] }
  0x5a   : > { %v482_v25 = vld [vmem:[#allocation2 + $0xe1] sm:$0xff]  ;;  %425 = vst.msk [vmem:[#allocation2 + $0x151] sm:$0xff] %vm342_vm0, %v336_v14  ;;  %v510_v10 = vld [vmem:[#allocation2 + $0xb2] sm:$0xff]  ;;  %v512_v15 = vld [vmem:[#allocation2 + $0xca] sm:$0xff] }
  0x5b   : > { %426 = vst.msk [vmem:[#allocation2 + $0x159] sm:$0xff] %vm342_vm0, %v337_v16  ;;  %v3546_v29 = vpack.i.bf16 %v482_v25, %v481_v24  ;;  %v485_v30 = vld [vmem:[#allocation2 + $0x109] sm:$0xff]  ;;  %v3600_v13 = vpack.i.bf16 %v510_v10, %v509_v7  ;;  %v3602_v16 = vpack.i.bf16 %v508_v12, %v507_v11  ;;  %v3648_v61 = vld [vmem:[#allocation2 + $0x38] sm:$0xff]  ;;  %v340_v7 = vmax.f32 %v308_v0, 0.0 }
  0x5c   : > { %423 = vst.msk [vmem:[#allocation2 + $0x139] sm:$0xff] %vm342_vm0, %v334_v20  ;;  %v486_v31 = vld [vmem:[#allocation2 + $0x111] sm:$0xff]  ;;  %v511_v14 = vld [vmem:[#allocation2 + $0xc2] sm:$0xff]  ;;  %v513_v20 = vld [vmem:[#allocation2 + $0xda] sm:$0xff] }
  0x5d   : > { %2615 = vrot.lane.b32.xlu2 %v3536_v22, %s3225_s17  ;;  %424 = vst.msk [vmem:[#allocation2 + $0x141] sm:$0xff] %vm342_vm0, %v335_v23  ;;  %v483_v33 = vld [vmem:[#allocation2 + $0xf1] sm:$0xff]  ;;  %v3555_v35 = vpack.i.bf16 %v486_v31, %v485_v30  ;;  %v3606_v17 = vpack.i.bf16 %v512_v15, %v511_v14  ;;  %v514_v23 = vld [vmem:[#allocation2 + $0xe2] sm:$0xff] }
  0x5e   : > { %427 = vst.msk [vmem:[#allocation2 + $0x169] sm:$0xff] %vm342_vm0, %v338_v26  ;;  %v484_v34 = vld [vmem:[#allocation2 + $0xf9] sm:$0xff]  ;;  %v517_v25 = vld [vmem:[#allocation2 + $0x10a] sm:$0xff] }
  0x5f   : > { %2610 = vrot.lane.b32.xlu1 %v3540_v27, %s3225_s17  ;;  %428 = vst.msk [vmem:[#allocation2 + $0x171] sm:$0xff] %vm342_vm0, %v339_v28  ;;  %v487_v36 = vld [vmem:[#allocation2 + $0x121] sm:$0xff]  ;;  %v3557_v38 = vpack.i.bf16 %v484_v34, %v483_v33  ;;  %v515_v18 = vld [vmem:[#allocation2 + $0xf2] sm:$0xff]  ;;  %v3614_v28 = vpack.i.bf16 %v514_v23, %v513_v20 }
  0x60   : > { %v488_v37 = vld [vmem:[#allocation2 + $0x129] sm:$0xff]  ;;  %4753 = vst [vmem:[#allocation3_spill] sm:$0xff] %v3600_v13  ;;  %v516_v19 = vld [vmem:[#allocation2 + $0xfa] sm:$0xff]  ;;  %v518_v26 = vld [vmem:[#allocation2 + $0x112] sm:$0xff] }
  0x61   : > { %2620 = vrot.lane.b32.xlu0 %v3546_v29, %s3225_s17  ;;  %v3561_v39 = vpack.i.bf16 %v488_v37, %v487_v36  ;;  %v491_v40 = vld [vmem:[#allocation2 + $0x151] sm:$0xff]  ;;  %v3612_v24 = vpack.i.bf16 %v516_v19, %v515_v18  ;;  %4755 = vst [vmem:[#allocation5_spill] sm:$0xff] %v3614_v28  ;;  %v3618_v30 = vpack.i.bf16 %v518_v26, %v517_v25  ;;  %v519_v34 = vld [vmem:[#allocation2 + $0x122] sm:$0xff] }
  0x62   : > { %v492_v41 = vld [vmem:[#allocation2 + $0x159] sm:$0xff]  ;;  %v520_v36 = vld [vmem:[#allocation2 + $0x12a] sm:$0xff]  ;;  %429 = vst.msk [vmem:[#allocation2 + $0x181] sm:$0xff] %vm342_vm0, %v340_v7 }
  0x63   : > { %v489_v42 = vld [vmem:[#allocation2 + $0x139] sm:$0xff]  ;;  %v3567_v45 = vpack.i.bf16 %v492_v41, %v491_v40  ;;  %4754 = vst [vmem:[#allocation4_spill] sm:$0xff] %v3612_v24  ;;  %v3646_v60 = vld [vmem:[#allocation2 + $0x30] sm:$0xff]  ;;  %v534_v11 = vld [vmem:[#allocation2 + $0x68] sm:$0xff] }
  0x64   : > { %v490_v44 = vld [vmem:[#allocation2 + $0x141] sm:$0xff]  ;;  %4756 = vst [vmem:[#allocation6_spill] sm:$0xff] %v3618_v30  ;;  %v523_v40 = vld [vmem:[#allocation2 + $0x152] sm:$0xff]  ;;  %v3657_v3 = vpack.i.bf16 %v3648_v61, %v3646_v60 }
  0x65   : > { %2630 = vrot.lane.b32.xlu2 %v3555_v35, %s3225_s17  ;;  %v493_v46 = vld [vmem:[#allocation2 + $0x169] sm:$0xff]  ;;  %v3569_v48 = vpack.i.bf16 %v490_v44, %v489_v42  ;;  %v521_v31 = vld [vmem:[#allocation2 + $0x13a] sm:$0xff]  ;;  %v3626_v42 = vpack.i.bf16 %v520_v36, %v519_v34 }
  0x66   : > { %v494_v47 = vld [vmem:[#allocation2 + $0x171] sm:$0xff]  ;;  %v522_v33 = vld [vmem:[#allocation2 + $0x142] sm:$0xff]  ;;  %v524_v41 = vld [vmem:[#allocation2 + $0x15a] sm:$0xff]  ;;  %4761 = vst [vmem:[#allocation11_spill] sm:$0xff] %v3657_v3 }
  0x67   : > { %2625 = vrot.lane.b32.xlu1 %v3557_v38, %s3225_s17  ;;  %v3573_v49 = vpack.i.bf16 %v494_v47, %v493_v46  ;;  %v3624_v37 = vpack.i.bf16 %v522_v33, %v521_v31  ;;  %4758 = vst [vmem:[#allocation8_spill] sm:$0xff] %v3626_v42  ;;  %v3630_v44 = vpack.i.bf16 %v524_v41, %v523_v40  ;;  %v3632_v46 = vld [vmem:[#allocation2 + $0x18] sm:$0xff]  ;;  %v3634_v47 = vld [vmem:[#allocation2 + $0x20] sm:$0xff]  ;;  %v525_v50 = vld [vmem:[#allocation2 + $0x16a] sm:$0xff] }
  0x68   : > { %v526_v51 = vld [vmem:[#allocation2 + $0x172] sm:$0xff]  ;;  %v2734_v56 = vpack.i.bf16 %v3634_v47, %v3632_v46  ;;  %v3662_v12 = vld [vmem:[#allocation2 + $0x48] sm:$0xff]  ;;  %v536_v18 = vld [vmem:[#allocation2 + $0x80] sm:$0xff] }
  0x69   : > { %2635 = vrot.lane.b32.xlu0 %v3561_v39, %s3225_s17  ;;  %4757 = vst [vmem:[#allocation7_spill] sm:$0xff] %v3624_v37  ;;  %v3650_v62 = vpack.i.bf16 %v526_v51, %v525_v50  ;;  %v3664_v14 = vld [vmem:[#allocation2 + $0x50] sm:$0xff]  ;;  %v535_v15 = vld [vmem:[#allocation2 + $0x78] sm:$0xff]  ;;  %v3674_v23 = vld [vmem:[#allocation2 + $0xa8] sm:$0xff] }
  0x6a   : > { %4759 = vst [vmem:[#allocation9_spill] sm:$0xff] %v3630_v44  ;;  %v3671_v19 = vpack.i.bf16 %v3664_v14, %v3662_v12  ;;  %v2754_v20 = vpack.i.bf16 %v536_v18, %v535_v15  ;;  %v3676_v25 = vld [vmem:[#allocation2 + $0xb0] sm:$0xff]  ;;  %v3682_v36 = vld [vmem:[#allocation2 + $0x98] sm:$0xff]  ;;  %v541_v51 = vld [vmem:[#allocation2 + $0xc0] sm:$0xff] }
  0x6b   : > { %4760 = vst [vmem:[#allocation10_spill] sm:$0xff] %v3650_v62  ;;  %v3680_v34 = vld [vmem:[#allocation2 + $0x90] sm:$0xff]  ;;  %v2764_v40 = vpack.i.bf16 %v3676_v25, %v3674_v23  ;;  %v542_v52 = vld [vmem:[#allocation2 + $0xc8] sm:$0xff] }
  0x6c   : > { %4762 = vst [vmem:[#allocation12_spill] sm:$0xff] %v3671_v19  ;;  %v3698_v57 = vld [vmem:[#allocation2 + $0xf0] sm:$0xff] }
  0x6d   : > { %2645 = vrot.lane.b32.xlu2 %v3567_v45, %s3225_s17 }
  0x6f   : > { %2640 = vrot.lane.b32.xlu1 %v3569_v48, %s3225_s17 }
  0x71   : > { %2650 = vrot.lane.b32.xlu0 %v3573_v49, %s3225_s17 }
  0x75   : > { %2660 = vrot.lane.b32.xlu2 %v3579_v55, %s3226_s26 }
  0x77   : > { %2655 = vrot.lane.b32.xlu1 %v2654_v58, %s3226_s26  ;;  %v275_v58 = vmul.f32 %v3362_v4, %v241_v53  ;;  %v533_v4 = vld [vmem:[#allocation2 + $0x60] sm:$0xff]  ;;  %v3695_v53 = vpack.i.bf16 %v3682_v36, %v3680_v34 }
  0x79   : > { %2665 = vrot.lane.b32.xlu0 %v3583_v59, %s3226_s26  ;;  %v309_v2 = vadd.f32 %v3379_v9, %v275_v58  ;;  %v2749_v9 = vpack.i.bf16 %v534_v11, %v533_v4  ;;  %4763 = vst [vmem:[#allocation13_spill] sm:$0xff] %v3695_v53  ;;  %v3700_v58 = vld [vmem:[#allocation2 + $0xf8] sm:$0xff] }
  0x7b   : > { %v341_v10 = vmax.f32 %v309_v2, 0.0 }
  0x7d   : > { %2675 = vrot.lane.b32.xlu2 %v3588_v1, %s3226_s26  ;;  %430 = vst.msk [vmem:[#allocation2 + $0x189] sm:$0xff] %vm342_vm0, %v341_v10  ;;  %v3704_v10 = vld [vmem:[#allocation2 + $0xd8] sm:$0xff] }
  0x7f   : > { %2670 = vrot.lane.b32.xlu1 %v3590_v5, %s3226_s26 }
  0x81   : > { %2680 = vrot.lane.b32.xlu0 %v3594_v6, %s3226_s26 }
  0x85   : > { %2690 = vrot.lane.b32.xlu2 %v3600_v13, %s3226_s26 }
  0x87   : > { %2685 = vrot.lane.b32.xlu1 %v3602_v16, %s3226_s26 }
  0x89   : > { %2695 = vrot.lane.b32.xlu0 %v3606_v17, %s3226_s26 }
  0x8d   : > { %2705 = vrot.lane.b32.xlu2 %v3612_v24, %s3226_s26 }
  0x8f   : > { %2700 = vrot.lane.b32.xlu1 %v3614_v28, %s3226_s26 }
  0x91   : > { %2710 = vrot.lane.b32.xlu0 %v3618_v30, %s3226_s26 }
  0x95   : > { %2720 = vrot.lane.b32.xlu2 %v3624_v37, %s3226_s26  ;;  %v554_v37 = vld [vmem:[#allocation2 + $0x158] sm:$0xff] }
  0x97   : > { %2715 = vrot.lane.b32.xlu1 %v3626_v42, %s3226_s26  ;;  %v558_v42 = vld [vmem:[#allocation2 + $0x188] sm:$0xff] }
  0x99   : > { %2725 = vrot.lane.b32.xlu0 %v3630_v44, %s3226_s26 }
  0x9d   : > { %2735 = vrot.lane.b32.xlu2 %v2734_v56, %s3227_s27  ;;  %v2769_v56 = vpack.i.bf16 %v542_v52, %v541_v51 }
  0x9f   : > { %2730 = vrot.lane.b32.xlu1 %v3650_v62, %s3226_s26 }
  0xa1   : > { %2740 = vrot.lane.b32.xlu0 %v3657_v3, %s3227_s27 }
  0xa5   : > { %2750 = vrot.lane.b32.xlu2 %v2749_v9, %s3227_s27 }
  0xa7   : > { %2745 = vrot.lane.b32.xlu1 %v3671_v19, %s3227_s27  ;;  %v2596_v26 = vpop.permute.xlu2 %2595  ;;  %v3733_v19 = vpop.permute.xlu0 %2575 }
  0xa8   : > { %v2598_v31 = vunpack.i.h.bf16 %v2596_v26  ;;  %v2597_v33 = vunpack.i.l.bf16 %v2596_v26  ;;  %v547_v26 = vld [vmem:[#allocation2 + $0x108] sm:$0xff] }
  0xa9   : > { %2755 = vrot.lane.b32.xlu0 %v2754_v20, %s3227_s27 }
  0xaa   : > { %v3688_v41 = vsel %vm342_vm0, %v533_v4, %v2597_v33  ;;  %v3691_v50 = vsel %vm342_vm0, %v534_v11, %v2598_v31  ;;  %v3706_v4 = vld [vmem:[#allocation2 + $0xe0] sm:$0xff]  ;;  %v3711_v11 = vpack.i.bf16 %v3700_v58, %v3698_v57  ;;  %v548_v31 = vld [vmem:[#allocation2 + $0x110] sm:$0xff] }
  0xab   : > { %v2774_v33 = vpack.i.bf16 %v3706_v4, %v3704_v10 }
  0xac   : > { %4764 = vst [vmem:[#allocation14_spill] sm:$0xff] %v3711_v11 }
  0xad   : > { %2765 = vrot.lane.b32.xlu2 %v2764_v40, %s3227_s27  ;;  %v2784_v40 = vpack.i.bf16 %v548_v31, %v547_v26 }
  0xaf   : > { %2760 = vrot.lane.b32.xlu1 %v3695_v53, %s3227_s27  ;;  %v2601_v0 = vpop.permute.xlu2 %2600 }
  0xb0   : > { %v2603_v2 = vunpack.i.h.bf16 %v2601_v0  ;;  %v2602_v7 = vunpack.i.l.bf16 %v2601_v0  ;;  %v3725_v0 = vld [vmem:[#allocation2 + $0x140] sm:$0xff] }
  0xb1   : > { %2770 = vrot.lane.b32.xlu0 %v2769_v56, %s3227_s27  ;;  %v3723_v56 = vld [vmem:[#allocation2 + $0x138] sm:$0xff] }
  0xb2   : > { %v3714_v9 = vsel %vm342_vm0, %v536_v18, %v2603_v2  ;;  %v3717_v20 = vsel %vm342_vm0, %v535_v15, %v2602_v7  ;;  %v3728_v15 = vld [vmem:[#allocation2 + $0x120] sm:$0xff]  ;;  %v3730_v7 = vld [vmem:[#allocation2 + $0x128] sm:$0xff] }
  0xb3   : > { %4765 = vst [vmem:[#allocation15_spill] sm:$0xff] %v3728_v15 }
  0xb4   : > { %4766 = vst [vmem:[#allocation16_spill] sm:$0xff] %v3730_v7 }
  0xb5   : > { %2780 = vrot.lane.b32.xlu2 %v3711_v11, %s3227_s27  ;;  %v2794_v11 = vpack.i.bf16 %v3725_v0, %v3723_v56 }
  0xb7   : > { %2775 = vrot.lane.b32.xlu1 %v2774_v33, %s3227_s27  ;;  %v2616_v18 = vpop.permute.xlu2 %2615  ;;  %v553_v33 = vld [vmem:[#allocation2 + $0x150] sm:$0xff] }
  0xb8   : > { %v2618_v2 = vunpack.i.h.bf16 %v2616_v18  ;;  %v2617_v53 = vunpack.i.l.bf16 %v2616_v18  ;;  %v2789_v18 = vpack.i.bf16 %v3730_v7, %v3728_v15  ;;  %v2799_v44 = vpack.i.bf16 %v554_v37, %v553_v33 }
  0xb9   : > { %2785 = vrot.lane.b32.xlu0 %v2784_v40, %s3227_s27  ;;  %v557_v40 = vld [vmem:[#allocation2 + $0x180] sm:$0xff] }
  0xba   : > { %v3738_v3 = vsel %vm342_vm0, %v542_v52, %v2618_v2  ;;  %v3741_v62 = vsel %vm342_vm0, %v541_v51, %v2617_v53  ;;  %v3747_v52 = vld [vmem:[#allocation2 + $0x168] sm:$0xff]  ;;  %v3749_v2 = vld [vmem:[#allocation2 + $0x170] sm:$0xff]  ;;  %v2809_v53 = vpack.i.bf16 %v558_v42, %v557_v40 }
  0xbd   : > { %2795 = vrot.lane.b32.xlu2 %v2794_v11, %s3227_s27 }
  0xbf   : > { %2790 = vrot.lane.b32.xlu1 %v2789_v18, %s3227_s27  ;;  %v2631_v24 = vpop.permute.xlu2 %2630  ;;  %v2804_v18 = vpack.i.bf16 %v3749_v2, %v3747_v52 }
  0xc0   : > { %v2633_v30 = vunpack.i.h.bf16 %v2631_v24  ;;  %v2632_v28 = vunpack.i.l.bf16 %v2631_v24 }
  0xc1   : > { %2800 = vrot.lane.b32.xlu0 %v2799_v44, %s3227_s27  ;;  %v3752_v51 = vpop.permute.xlu1 %2585 }
  0xc2   : > { %v3755_v15 = vsel %vm342_vm0, %v548_v31, %v2633_v30  ;;  %v3758_v11 = vsel %vm342_vm0, %v547_v26, %v2632_v28 }
  0xc3   : > { %v2581_v7 = vpop.permute.xlu0 %2580 }
  0xc4   : > { %v2583_v31 = vunpack.i.h.bf16 %v2581_v7  ;;  %v2582_v40 = vunpack.i.l.bf16 %v2581_v7 }
  0xc5   : > { %2810 = vrot.lane.b32.xlu2 %v2809_v53, %s3227_s27 }
  0xc7   : > { %2805 = vrot.lane.b32.xlu1 %v2804_v18, %s3227_s27  ;;  %v2646_v24 = vpop.permute.xlu2 %2645 }
  0xc8   : > { %v2648_v13 = vunpack.i.h.bf16 %v2646_v24  ;;  %v2647_v44 = vunpack.i.l.bf16 %v2646_v24 }
  0xc9   : > { %2815 = vrot.lane.b32.xlu0 %v3494_v43, %s3228_s28  ;;  %v3766_v30 = vpop.permute.xlu1 %2590 }
  0xca   : > { %v3769_v28 = vsel %vm342_vm0, %v554_v37, %v2648_v13  ;;  %v3772_v42 = vsel %vm342_vm0, %v553_v33, %v2647_v44  ;;  %v1746_v13 = vsel %vm342_vm0, %v3632_v46, %v2582_v40  ;;  %v1747_v37 = vsel %vm342_vm0, %v3634_v47, %v2583_v31 }
  0xcb   : > { %v3774_v26 = vpop.permute.xlu0 %2605 }
  0xcd   : > { %2825 = vrot.lane.b32.xlu2 %v3514_v63, %s3228_s28 }
  0xcf   : > { %2820 = vrot.lane.b32.xlu1 %v3482_v32, %s3228_s28  ;;  %v2661_v43 = vpop.permute.xlu2 %2660 }
  0xd0   : > { %v2663_v53 = vunpack.i.h.bf16 %v2661_v43  ;;  %v2662_v18 = vunpack.i.l.bf16 %v2661_v43 }
  0xd1   : > { %2830 = vrot.lane.b32.xlu0 %v3470_v21, %s3228_s28  ;;  %v2611_v7 = vpop.permute.xlu1 %2610 }
  0xd2   : > { %v3787_v33 = vsel %vm1776_vm2, %v1746_v13, %v2662_v18  ;;  %v3790_v63 = vsel %vm1776_vm2, %v1747_v37, %v2663_v53  ;;  %v2612_v43 = vunpack.i.l.bf16 %v2611_v7 }
  0xd3   : > { %v3792_v32 = vpop.permute.xlu0 %2620 }
  0xd5   : > { %2840 = vrot.lane.b32.xlu2 %v3523_v8, %s3228_s28  ;;  %v2613_v8 = vunpack.i.h.bf16 %v2611_v7 }
  0xd7   : > { %2835 = vrot.lane.b32.xlu1 %v3506_v54, %s3228_s28  ;;  %v2676_v46 = vpop.permute.xlu2 %2675 }
  0xd8   : > { %v2678_v47 = vunpack.i.h.bf16 %v2676_v46  ;;  %v2677_v24 = vunpack.i.l.bf16 %v2676_v46 }
  0xd9   : > { %2845 = vrot.lane.b32.xlu0 %v3540_v27, %s3228_s28  ;;  %v2626_v21 = vpop.permute.xlu1 %2625 }
  0xda   : > { %v3802_v44 = vsel %vm1776_vm2, %v3691_v50, %v2678_v47  ;;  %v3806_v31 = vsel %vm1776_vm2, %v3688_v41, %v2677_v24  ;;  %v1759_v50 = vsel %vm342_vm0, %v3676_v25, %v2613_v8  ;;  %v1758_v41 = vsel %vm342_vm0, %v3674_v23, %v2612_v43  ;;  %v432_v43 = vld [vmem:[#allocation2 + $0x8] sm:$0xff] }
  0xdb   : > { %v3808_v40 = vpop.permute.xlu0 %2635  ;;  %v2628_v46 = vunpack.i.h.bf16 %v2626_v21  ;;  %v2627_v47 = vunpack.i.l.bf16 %v2626_v21  ;;  %v2578_v25 = vunpack.i.h.bf16 %v3733_v19  ;;  %v2577_v24 = vunpack.i.l.bf16 %v3733_v19 }
  0xdc   : > { %v2587_v8 = vunpack.i.l.bf16 %v3752_v51 }
  0xdd   : > { %2855 = vrot.lane.b32.xlu2 %v3546_v29, %s3228_s28 }
  0xdf   : > { %2850 = vrot.lane.b32.xlu1 %v3536_v22, %s3228_s28  ;;  %v2691_v54 = vpop.permute.xlu2 %2690 }
  0xe0   : > { %v2693_v27 = vunpack.i.h.bf16 %v2691_v54  ;;  %v2692_v53 = vunpack.i.l.bf16 %v2691_v54 }
  0xe1   : > { %2860 = vrot.lane.b32.xlu0 %v3557_v38, %s3228_s28  ;;  %v2641_v18 = vpop.permute.xlu1 %2640 }
  0xe2   : > { %v3821_v13 = vsel %vm1776_vm2, %v1759_v50, %v2693_v27  ;;  %v3824_v29 = vsel %vm1776_vm2, %v1758_v41, %v2692_v53  ;;  %v1764_v53 = vsel %vm342_vm0, %v3698_v57, %v2627_v47  ;;  %v1748_v57 = vsel %vm342_vm0, %v3646_v60, %v2587_v8 }
  0xe3   : > { %v2651_v22 = vpop.permute.xlu0 %2650  ;;  %v2593_v8 = vunpack.i.h.bf16 %v3766_v30 }
  0xe4   : > { %v2653_v37 = vunpack.i.h.bf16 %v2651_v22  ;;  %v2652_v7 = vunpack.i.l.bf16 %v2651_v22 }
  0xe5   : > { %2870 = vrot.lane.b32.xlu2 %v3561_v39, %s3228_s28  ;;  %v431_v39 = vld [vmem:[#allocation2] sm:$0xff] }
  0xe6   : > { %v3830_v23 = vsel %vm342_vm0, %v3749_v2, %v2653_v37  ;;  %v3834_v38 = vsel %vm342_vm0, %v3747_v52, %v2652_v7  ;;  %v2588_v2 = vunpack.i.h.bf16 %v3752_v51  ;;  %v1765_v52 = vsel %vm342_vm0, %v3700_v58, %v2628_v46  ;;  %v589_v37 = vld [vmem:[#allocation2 + $0x181] sm:$0xff]  ;;  %v590_v51 = vld [vmem:[#allocation2 + $0x189] sm:$0xff] }
  0xe7   : > { %2865 = vrot.lane.b32.xlu1 %v3555_v35, %s3228_s28  ;;  %v2706_v21 = vpop.permute.xlu2 %2705  ;;  %v1745_v7 = vsel %vm342_vm0, %v432_v43, %v2578_v25  ;;  %v1744_v58 = vsel %vm342_vm0, %v431_v39, %v2577_v24  ;;  %v2889_v25 = vpack.i.bf16 %v590_v51, %v589_v37  ;;  %v2592_v43 = vunpack.i.l.bf16 %v3766_v30 }
  0xe8   : > { %v2708_v54 = vunpack.i.h.bf16 %v2706_v21  ;;  %v2707_v27 = vunpack.i.l.bf16 %v2706_v21 }
  0xe9   : > { %2875 = vrot.lane.b32.xlu0 %v3569_v48, %s3228_s28  ;;  %v2656_v19 = vpop.permute.xlu1 %2655 }
  0xea   : > { %v2658_v50 = vunpack.i.h.bf16 %v2656_v19  ;;  %v2657_v41 = vunpack.i.l.bf16 %v2656_v19  ;;  %v3849_v35 = vsel %vm1776_vm2, %v1765_v52, %v2708_v54  ;;  %v3852_v22 = vsel %vm1776_vm2, %v1764_v53, %v2707_v27 }
  0xeb   : > { %v2666_v46 = vpop.permute.xlu0 %2665  ;;  %v1749_v27 = vsel %vm342_vm0, %v3648_v61, %v2588_v2  ;;  %v2643_v52 = vunpack.i.h.bf16 %v2641_v18  ;;  %v2642_v53 = vunpack.i.l.bf16 %v2641_v18 }
  0xec   : > { %v1778_v48 = vsel %vm1776_vm2, %v1745_v7, %v2658_v50  ;;  %v1777_v47 = vsel %vm1776_vm2, %v1744_v58, %v2657_v41  ;;  %v2668_v21 = vunpack.i.h.bf16 %v2666_v46  ;;  %v2667_v54 = vunpack.i.l.bf16 %v2666_v46 }
  0xed   : > { %2885 = vrot.lane.b32.xlu2 %v3573_v49, %s3228_s28  ;;  %v1771_v49 = vsel %vm342_vm0, %v3725_v0, %v2643_v52  ;;  %v1770_v2 = vsel %vm342_vm0, %v3723_v56, %v2642_v53  ;;  %v1750_v0 = vsel %vm342_vm0, %v3662_v12, %v2592_v43  ;;  %v2608_v12 = vunpack.i.h.bf16 %v3774_v26 }
  0xee   : > { %v3865_v24 = vsel %vm1776_vm2, %v1749_v27, %v2668_v21  ;;  %v3868_v60 = vsel %vm1776_vm2, %v1748_v57, %v2667_v54  ;;  %v2607_v21 = vunpack.i.l.bf16 %v3774_v26 }
  0xef   : > { %2880 = vrot.lane.b32.xlu1 %v3567_v45, %s3228_s28  ;;  %v2721_v61 = vpop.permute.xlu2 %2720  ;;  %v1751_v45 = vsel %vm342_vm0, %v3664_v14, %v2593_v8  ;;  %v1757_v26 = vsel %vm342_vm0, %v3682_v36, %v2608_v12 }
  0xf0   : > { %v2723_v39 = vunpack.i.h.bf16 %v2721_v61  ;;  %v2722_v18 = vunpack.i.l.bf16 %v2721_v61 }
  0xf1   : > { %2890 = vrot.lane.b32.xlu0 %v2889_v25, %s3228_s28  ;;  %v2671_v19 = vpop.permute.xlu1 %2670 }
  0xf2   : > { %v2673_v50 = vunpack.i.h.bf16 %v2671_v19  ;;  %v2672_v41 = vunpack.i.l.bf16 %v2671_v19  ;;  %v3880_v37 = vsel %vm1776_vm2, %v1771_v49, %v2723_v39  ;;  %v3883_v30 = vsel %vm1776_vm2, %v1770_v2, %v2722_v18 }
  0xf3   : > { %v2681_v51 = vpop.permute.xlu0 %2680 }
  0xf4   : > { %v1783_v56 = vsel %vm1776_vm2, %v1750_v0, %v2672_v41  ;;  %v1784_v7 = vsel %vm1776_vm2, %v1751_v45, %v2673_v50  ;;  %v2683_v58 = vunpack.i.h.bf16 %v2681_v51  ;;  %v2682_v57 = vunpack.i.l.bf16 %v2681_v51 }
  0xf5   : > { %2900 = vrot.lane.b32.xlu2 %v3583_v59, %s3229_s29 }
  0xf6   : > { %v3895_v46 = vsel %vm1776_vm2, %v3714_v9, %v2683_v58  ;;  %v3899_v14 = vsel %vm1776_vm2, %v3717_v20, %v2682_v57  ;;  %v4767_v58 = vld [vmem:[#allocation3_spill] sm:$0xff] }
  0xf7   : > { %2895 = vrot.lane.b32.xlu1 %v3579_v55, %s3229_s29  ;;  %v2736_v54 = vpop.permute.xlu2 %2735  ;;  %v1756_v55 = vsel %vm342_vm0, %v3680_v34, %v2607_v21  ;;  %v2623_v34 = vunpack.i.h.bf16 %v3792_v32 }
  0xf8   : > { %v2738_v27 = vunpack.i.h.bf16 %v2736_v54  ;;  %v2737_v52 = vunpack.i.l.bf16 %v2736_v54 }
  0xf9   : > { %2905 = vrot.lane.b32.xlu0 %v3590_v5, %s3229_s29  ;;  %v2686_v59 = vpop.permute.xlu1 %2685 }
  0xfa   : > { %v2688_v9 = vunpack.i.h.bf16 %v2686_v59  ;;  %v2687_v53 = vunpack.i.l.bf16 %v2686_v59  ;;  %v3908_v20 = vsel %vm1809_vm3, %v1778_v48, %v2738_v27  ;;  %v3911_v25 = vsel %vm1809_vm3, %v1777_v47, %v2737_v52  ;;  %v4769_v59 = vld [vmem:[#allocation16_spill] sm:$0xff] }
  0xfb   : > { %v2696_v8 = vpop.permute.xlu0 %2695  ;;  %v2622_v47 = vunpack.i.l.bf16 %v3792_v32  ;;  %v1763_v32 = vsel %vm342_vm0, %v3706_v4, %v2623_v34  ;;  %v4771_v34 = vld [vmem:[#allocation6_spill] sm:$0xff] }
  0xfc   : > { %v1789_v43 = vsel %vm1776_vm2, %v1756_v55, %v2687_v53  ;;  %v1790_v5 = vsel %vm1776_vm2, %v1757_v26, %v2688_v9  ;;  %v2698_v61 = vunpack.i.h.bf16 %v2696_v8  ;;  %v2697_v39 = vunpack.i.l.bf16 %v2696_v8  ;;  %v4770_v9 = vld [vmem:[#allocation15_spill] sm:$0xff] }
  0xfd   : > { %2915 = vrot.lane.b32.xlu2 %v3594_v6, %s3229_s29 }
  0xfe   : > { %v3923_v48 = vsel %vm1776_vm2, %v3738_v3, %v2698_v61  ;;  %v3927_v36 = vsel %vm1776_vm2, %v3741_v62, %v2697_v39 }
  0xff   : > { %2910 = vrot.lane.b32.xlu1 %v3588_v1, %s3229_s29  ;;  %v2751_v18 = vpop.permute.xlu2 %2750  ;;  %v1762_v1 = vsel %vm342_vm0, %v3704_v10, %v2622_v47  ;;  %v2638_v10 = vunpack.i.h.bf16 %v3808_v40  ;;  %v4772_v47 = vld [vmem:[#allocation4_spill] sm:$0xff] }
 0x100   : > { %v2753_v49 = vunpack.i.h.bf16 %v2751_v18  ;;  %v2752_v2 = vunpack.i.l.bf16 %v2751_v18 }
 0x101   : > { %2920 = vrot.lane.b32.xlu0 %v3602_v16, %s3229_s29  ;;  %v2701_v6 = vpop.permute.xlu1 %2700 }
 0x102   : > { %v2703_v3 = vunpack.i.h.bf16 %v2701_v6  ;;  %v2702_v19 = vunpack.i.l.bf16 %v2701_v6  ;;  %v3936_v50 = vsel %vm1809_vm3, %v1784_v7, %v2753_v49  ;;  %v3939_v62 = vsel %vm1809_vm3, %v1783_v56, %v2752_v2  ;;  %v4773_v6 = vld [vmem:[#allocation8_spill] sm:$0xff] }
 0x103   : > { %v2711_v41 = vpop.permute.xlu0 %2710  ;;  %v2637_v7 = vunpack.i.l.bf16 %v3808_v40  ;;  %v1769_v40 = vsel %vm342_vm0, %v4769_v59, %v2638_v10  ;;  %v656_v59 = vld [vmem:[#allocation2 + $0x31] sm:$0xff] }
 0x104   : > { %v1795_v45 = vsel %vm1776_vm2, %v1762_v1, %v2702_v19  ;;  %v1796_v16 = vsel %vm1776_vm2, %v1763_v32, %v2703_v3  ;;  %v2713_v0 = vunpack.i.h.bf16 %v2711_v41  ;;  %v2712_v51 = vunpack.i.l.bf16 %v2711_v41 }
 0x105   : > { %2930 = vrot.lane.b32.xlu2 %v3606_v17, %s3229_s29  ;;  %v4768_v17 = vld [vmem:[#allocation5_spill] sm:$0xff]  ;;  %v1768_v53 = vsel %vm342_vm0, %v4770_v9, %v2637_v7 }
 0x106   : > { %v3951_v56 = vsel %vm1776_vm2, %v3755_v15, %v2713_v0  ;;  %v3955_v4 = vsel %vm1776_vm2, %v3758_v11, %v2712_v51  ;;  %v4774_v7 = vld [vmem:[#allocation9_spill] sm:$0xff] }
 0x107   : > { %2925 = vrot.lane.b32.xlu1 %v4767_v58, %s3229_s29  ;;  %v2766_v57 = vpop.permute.xlu2 %2765 }
 0x108   : > { %v2768_v12 = vunpack.i.h.bf16 %v2766_v57  ;;  %v2767_v21 = vunpack.i.l.bf16 %v2766_v57 }
 0x109   : > { %2935 = vrot.lane.b32.xlu0 %v4768_v17, %s3229_s29  ;;  %v2716_v54 = vpop.permute.xlu1 %2715  ;;  %v4776_v17 = vld [vmem:[#allocation10_spill] sm:$0xff] }
 0x10a   : > { %v2718_v15 = vunpack.i.h.bf16 %v2716_v54  ;;  %v2717_v27 = vunpack.i.l.bf16 %v2716_v54  ;;  %v3964_v52 = vsel %vm1809_vm3, %v1789_v43, %v2767_v21  ;;  %v3967_v11 = vsel %vm1809_vm3, %v1790_v5, %v2768_v12  ;;  %v622_v21 = vld [vmem:[#allocation2 + $0x18a] sm:$0xff] }
 0x10b   : > { %v2726_v26 = vpop.permute.xlu0 %2725 }
 0x10c   : > { %v1801_v55 = vsel %vm1776_vm2, %v1768_v53, %v2717_v27  ;;  %v1802_v8 = vsel %vm1776_vm2, %v1769_v40, %v2718_v15  ;;  %v2728_v61 = vunpack.i.h.bf16 %v2726_v26  ;;  %v2727_v39 = vunpack.i.l.bf16 %v2726_v26  ;;  %v657_v40 = vld [vmem:[#allocation2 + $0x39] sm:$0xff] }
 0x10d   : > { %2945 = vrot.lane.b32.xlu2 %v4771_v34, %s3229_s29 }
 0x10e   : > { %v3979_v43 = vsel %vm1776_vm2, %v3769_v28, %v2728_v61  ;;  %v3983_v5 = vsel %vm1776_vm2, %v3772_v42, %v2727_v39 }
 0x10f   : > { %2940 = vrot.lane.b32.xlu1 %v4772_v47, %s3229_s29  ;;  %v2781_v18 = vpop.permute.xlu2 %2780  ;;  %v2979_v47 = vpack.i.bf16 %v657_v40, %v656_v59 }
 0x110   : > { %v2783_v49 = vunpack.i.h.bf16 %v2781_v18  ;;  %v2782_v2 = vunpack.i.l.bf16 %v2781_v18 }
 0x111   : > { %2950 = vrot.lane.b32.xlu0 %v4773_v6, %s3229_s29  ;;  %v2731_v3 = vpop.permute.xlu1 %2730  ;;  %v689_v6 = vld [vmem:[#allocation2 + $0x3a] sm:$0xff] }
 0x112   : > { %v2733_v19 = vunpack.i.h.bf16 %v2731_v3  ;;  %v2732_v32 = vunpack.i.l.bf16 %v2731_v3  ;;  %v3990_v1 = vsel %vm1809_vm3, %v1795_v45, %v2782_v2  ;;  %v3993_v28 = vsel %vm1809_vm3, %v1796_v16, %v2783_v49  ;;  %v4775_v16 = vld [vmem:[#allocation7_spill] sm:$0xff] }
 0x113   : > { %v2741_v42 = vpop.permute.xlu0 %2740  ;;  %v688_v2 = vld [vmem:[#allocation2 + $0x32] sm:$0xff] }
 0x114   : > { %v1807_v41 = vsel %vm1776_vm2, %v3834_v38, %v2732_v32  ;;  %v1808_v0 = vsel %vm1776_vm2, %v3830_v23, %v2733_v19  ;;  %v2743_v51 = vunpack.i.h.bf16 %v2741_v42  ;;  %v2742_v10 = vunpack.i.l.bf16 %v2741_v42  ;;  %v621_v23 = vld [vmem:[#allocation2 + $0x182] sm:$0xff] }
 0x115   : > { %2960 = vrot.lane.b32.xlu2 %v4774_v7, %s3229_s29  ;;  %v4019_v53 = vpack.i.bf16 %v622_v21, %v621_v23  ;;  %v665_v23 = vld [vmem:[#allocation2 + $0x99] sm:$0xff] }
 0x116   : > { %v4003_v58 = vsel %vm1809_vm3, %v3787_v33, %v2742_v10  ;;  %v4007_v45 = vsel %vm1809_vm3, %v3790_v63, %v2743_v51  ;;  %v2984_v51 = vpack.i.bf16 %v689_v6, %v688_v2 }
 0x117   : > { %2955 = vrot.lane.b32.xlu1 %v4775_v16, %s3229_s29  ;;  %v2796_v38 = vpop.permute.xlu2 %2795 }
 0x118   : > { %v2798_v57 = vunpack.i.h.bf16 %v2796_v38  ;;  %v2797_v12 = vunpack.i.l.bf16 %v2796_v38 }
 0x119   : > { %2965 = vrot.lane.b32.xlu0 %v4776_v17, %s3229_s29  ;;  %v2746_v54 = vpop.permute.xlu1 %2745  ;;  %v658_v17 = vld [vmem:[#allocation2 + $0x49] sm:$0xff] }
 0x11a   : > { %v2748_v15 = vunpack.i.h.bf16 %v2746_v54  ;;  %v2747_v27 = vunpack.i.l.bf16 %v2746_v54  ;;  %v4014_v33 = vsel %vm1809_vm3, %v1801_v55, %v2797_v12  ;;  %v4017_v63 = vsel %vm1809_vm3, %v1802_v8, %v2798_v57  ;;  %v4777_v55 = vld [vmem:[#allocation11_spill] sm:$0xff]  ;;  %v4778_v57 = vld [vmem:[#allocation12_spill] sm:$0xff] }
 0x11b   : > { %v2756_v9 = vpop.permute.xlu0 %2755  ;;  %v664_v12 = vld [vmem:[#allocation2 + $0x91] sm:$0xff] }
 0x11c   : > { %v1814_v26 = vsel %vm1809_vm3, %v3868_v60, %v2747_v27  ;;  %v1815_v61 = vsel %vm1809_vm3, %v3865_v24, %v2748_v15  ;;  %v2758_v39 = vunpack.i.h.bf16 %v2756_v9  ;;  %v2757_v34 = vunpack.i.l.bf16 %v2756_v9  ;;  %v659_v54 = vld [vmem:[#allocation2 + $0x51] sm:$0xff]  ;;  %v4779_v15 = vld [vmem:[#allocation13_spill] sm:$0xff] }
 0x11d   : > { %2975 = vrot.lane.b32.xlu2 %v4777_v55, %s3230_s30  ;;  %v3004_v27 = vpack.i.bf16 %v665_v23, %v664_v12 }
 0x11e   : > { %v4029_v8 = vsel %vm1809_vm3, %v3802_v44, %v2758_v39  ;;  %v4033_v18 = vsel %vm1809_vm3, %v3806_v31, %v2757_v34  ;;  %v690_v39 = vld [vmem:[#allocation2 + $0x4a] sm:$0xff]  ;;  %v691_v34 = vld [vmem:[#allocation2 + $0x52] sm:$0xff] }
 0x11f   : > { %2970 = vrot.lane.b32.xlu1 %v4019_v53, %s3229_s29  ;;  %v2811_v60 = vpop.permute.xlu2 %2810  ;;  %v3009_v6 = vpack.i.bf16 %v691_v34, %v690_v39  ;;  %v705_v39 = vld [vmem:[#allocation2 + $0xfa] sm:$0xff] }
 0x120   : > { %v2813_v24 = vunpack.i.h.bf16 %v2811_v60  ;;  %v2812_v49 = vunpack.i.l.bf16 %v2811_v60 }
 0x121   : > { %2980 = vrot.lane.b32.xlu0 %v2979_v47, %s3231_s5  ;;  %v2761_v3 = vpop.permute.xlu1 %2760  ;;  %v2999_v47 = vpack.i.bf16 %v659_v54, %v658_v17  ;;  %v4780_v54 = vld [vmem:[#allocation14_spill] sm:$0xff] }
 0x122   : > { %v2763_v19 = vunpack.i.h.bf16 %v2761_v3  ;;  %v2762_v32 = vunpack.i.l.bf16 %v2761_v3  ;;  %v4039_v44 = vsel %vm1809_vm3, %v1807_v41, %v2812_v49  ;;  %v4042_v31 = vsel %vm1809_vm3, %v1808_v0, %v2813_v24 }
 0x123   : > { %v2771_v42 = vpop.permute.xlu0 %2770 }
 0x124   : > { %v1820_v10 = vsel %vm1809_vm3, %v3899_v14, %v2762_v32  ;;  %v1821_v7 = vsel %vm1809_vm3, %v3895_v46, %v2763_v19  ;;  %v2773_v16 = vunpack.i.h.bf16 %v2771_v42  ;;  %v2772_v38 = vunpack.i.l.bf16 %v2771_v42  ;;  %v696_v32 = vld [vmem:[#allocation2 + $0x92] sm:$0xff] }
 0x125   : > { %2990 = vrot.lane.b32.xlu2 %v4778_v57, %s3230_s30  ;;  %v673_v57 = vld [vmem:[#allocation2 + $0xf9] sm:$0xff] }
 0x126   : > { %v4052_v41 = vsel %vm1809_vm3, %v3821_v13, %v2773_v16  ;;  %v4056_v0 = vsel %vm1809_vm3, %v3824_v29, %v2772_v38 }
 0x127   : > { %2985 = vrot.lane.b32.xlu1 %v2984_v51, %s3232_s6  ;;  %v2826_v46 = vpop.permute.xlu2 %2825 }
 0x128   : > { %v2828_v14 = vunpack.i.h.bf16 %v2826_v46  ;;  %v2827_v21 = vunpack.i.l.bf16 %v2826_v46 }
 0x129   : > { %2995 = vrot.lane.b32.xlu0 %v4779_v15, %s3230_s30  ;;  %v2776_v13 = vpop.permute.xlu1 %2775 }
 0x12a   : > { %v2778_v59 = vunpack.i.h.bf16 %v2776_v13  ;;  %v2777_v40 = vunpack.i.l.bf16 %v2776_v13  ;;  %v4062_v29 = vsel %vm1842_vm4, %v1814_v26, %v2827_v21  ;;  %v4065_v9 = vsel %vm1842_vm4, %v1815_v61, %v2828_v14  ;;  %v628_v13 = vld [vmem:[#allocation2 + $0x60] sm:$0xff] }
 0x12b   : > { %v2786_v55 = vpop.permute.xlu0 %2785 }
 0x12c   : > { %v1826_v60 = vsel %vm1809_vm3, %v3927_v36, %v2777_v40  ;;  %v1827_v24 = vsel %vm1809_vm3, %v3923_v48, %v2778_v59  ;;  %v2788_v49 = vunpack.i.h.bf16 %v2786_v55  ;;  %v2787_v2 = vunpack.i.l.bf16 %v2786_v55  ;;  %v697_v48 = vld [vmem:[#allocation2 + $0x9a] sm:$0xff]  ;;  %v704_v40 = vld [vmem:[#allocation2 + $0xf2] sm:$0xff] }
 0x12d   : > { %3005 = vrot.lane.b32.xlu2 %v3004_v27, %s3231_s5  ;;  %v3014_v23 = vpack.i.bf16 %v697_v48, %v696_v32  ;;  %v629_v27 = vld [vmem:[#allocation2 + $0x68] sm:$0xff] }
 0x12e   : > { %v4074_v26 = vsel %vm1809_vm3, %v3849_v35, %v2788_v49  ;;  %v4078_v61 = vsel %vm1809_vm3, %v3852_v22, %v2787_v2  ;;  %v672_v22 = vld [vmem:[#allocation2 + $0xf1] sm:$0xff]  ;;  %v3034_v55 = vpack.i.bf16 %v629_v27, %v628_v13  ;;  %v634_v2 = vld [vmem:[#allocation2 + $0xa8] sm:$0xff] }
 0x12f   : > { %3000 = vrot.lane.b32.xlu1 %v2999_v47, %s3231_s5  ;;  %v2841_v3 = vpop.permute.xlu2 %2840  ;;  %v692_v13 = vld [vmem:[#allocation2 + $0x62] sm:$0xff]  ;;  %v693_v27 = vld [vmem:[#allocation2 + $0x6a] sm:$0xff] }
 0x130   : > { %v2843_v36 = vunpack.i.h.bf16 %v2841_v3  ;;  %v2842_v19 = vunpack.i.l.bf16 %v2841_v3 }
 0x131   : > { %3010 = vrot.lane.b32.xlu0 %v3009_v6, %s3232_s6  ;;  %v2791_v42 = vpop.permute.xlu1 %2790  ;;  %v635_v6 = vld [vmem:[#allocation2 + $0xb0] sm:$0xff] }
 0x132   : > { %v2793_v51 = vunpack.i.h.bf16 %v2791_v42  ;;  %v2792_v16 = vunpack.i.l.bf16 %v2791_v42  ;;  %v4083_v38 = vsel %vm1842_vm4, %v1820_v10, %v2842_v19  ;;  %v4086_v35 = vsel %vm1842_vm4, %v1821_v7, %v2843_v36 }
 0x133   : > { %v2801_v12 = vpop.permute.xlu0 %2800  ;;  %v3024_v10 = vpack.i.bf16 %v673_v57, %v672_v22  ;;  %v3029_v36 = vpack.i.bf16 %v705_v39, %v704_v40  ;;  %v667_v22 = vld [vmem:[#allocation2 + $0xb1] sm:$0xff] }
 0x134   : > { %v1832_v46 = vsel %vm1809_vm3, %v3955_v4, %v2792_v16  ;;  %v1833_v14 = vsel %vm1809_vm3, %v3951_v56, %v2793_v51  ;;  %v2803_v21 = vunpack.i.h.bf16 %v2801_v12  ;;  %v2802_v17 = vunpack.i.l.bf16 %v2801_v12  ;;  %v666_v16 = vld [vmem:[#allocation2 + $0xa9] sm:$0xff]  ;;  %v660_v12 = vld [vmem:[#allocation2 + $0x61] sm:$0xff] }
 0x135   : > { %3020 = vrot.lane.b32.xlu2 %v4780_v54, %s3230_s30  ;;  %v3039_v51 = vpack.i.bf16 %v635_v6, %v634_v2  ;;  %v698_v6 = vld [vmem:[#allocation2 + $0xaa] sm:$0xff] }
 0x136   : > { %v4096_v7 = vsel %vm1809_vm3, %v3880_v37, %v2803_v21  ;;  %v4100_v15 = vsel %vm1809_vm3, %v3883_v30, %v2802_v17  ;;  %v3049_v17 = vpack.i.bf16 %v667_v22, %v666_v16  ;;  %v648_v16 = vld [vmem:[#allocation2 + $0x150] sm:$0xff]  ;;  %v649_v22 = vld [vmem:[#allocation2 + $0x158] sm:$0xff] }
 0x137   : > { %3015 = vrot.lane.b32.xlu1 %v3014_v23, %s3232_s6  ;;  %v2856_v4 = vpop.permute.xlu2 %2855  ;;  %v661_v23 = vld [vmem:[#allocation2 + $0x69] sm:$0xff] }
 0x138   : > { %v2858_v56 = vunpack.i.h.bf16 %v2856_v4  ;;  %v2857_v59 = vunpack.i.l.bf16 %v2856_v4 }
 0x139   : > { %3025 = vrot.lane.b32.xlu0 %v3024_v10, %s3231_s5  ;;  %v2806_v34 = vpop.permute.xlu1 %2805 }
 0x13a   : > { %v2808_v47 = vunpack.i.h.bf16 %v2806_v34  ;;  %v2807_v37 = vunpack.i.l.bf16 %v2806_v34  ;;  %v4105_v49 = vsel %vm1842_vm4, %v1826_v60, %v2857_v59  ;;  %v4108_v30 = vsel %vm1842_vm4, %v1827_v24, %v2858_v56 }
 0x13b   : > { %v2816_v3 = vpop.permute.xlu0 %2815  ;;  %v3044_v56 = vpack.i.bf16 %v661_v23, %v660_v12 }
 0x13c   : > { %v1838_v19 = vsel %vm1809_vm3, %v3983_v5, %v2807_v37  ;;  %v1839_v32 = vsel %vm1809_vm3, %v3979_v43, %v2808_v47  ;;  %v2818_v48 = vunpack.i.h.bf16 %v2816_v3  ;;  %v2817_v42 = vunpack.i.l.bf16 %v2816_v3  ;;  %v642_v47 = vld [vmem:[#allocation2 + $0x108] sm:$0xff]  ;;  %v699_v3 = vld [vmem:[#allocation2 + $0xb2] sm:$0xff] }
 0x13d   : > { %3035 = vrot.lane.b32.xlu2 %v3034_v55, %s3230_s30 }
 0x13e   : > { %v4117_v60 = vsel %vm1842_vm4, %v3908_v20, %v2818_v48  ;;  %v4121_v24 = vsel %vm1842_vm4, %v3911_v25, %v2817_v42 }
 0x13f   : > { %3030 = vrot.lane.b32.xlu1 %v3029_v36, %s3232_s6  ;;  %v2871_v5 = vpop.permute.xlu2 %2870 }
 0x140   : > { %v2873_v57 = vunpack.i.h.bf16 %v2871_v5  ;;  %v2872_v43 = vunpack.i.l.bf16 %v2871_v5 }
 0x141   : > { %3040 = vrot.lane.b32.xlu0 %v3039_v51, %s3230_s30  ;;  %v2821_v21 = vpop.permute.xlu1 %2820 }
 0x142   : > { %v2823_v54 = vunpack.i.h.bf16 %v2821_v21  ;;  %v2822_v20 = vunpack.i.l.bf16 %v2821_v21  ;;  %v4126_v10 = vsel %vm1842_vm4, %v1832_v46, %v2872_v43  ;;  %v4129_v25 = vsel %vm1842_vm4, %v1833_v14, %v2873_v57 }
 0x143   : > { %v2831_v4 = vpop.permute.xlu0 %2830  ;;  %v3054_v46 = vpack.i.bf16 %v693_v27, %v692_v13  ;;  %v3059_v57 = vpack.i.bf16 %v699_v3, %v698_v6  ;;  %v675_v13 = vld [vmem:[#allocation2 + $0x111] sm:$0xff] }
 0x144   : > { %v4133_v59 = vsel %vm1842_vm4, %v4003_v58, %v2822_v20  ;;  %v4137_v40 = vsel %vm1842_vm4, %v4007_v45, %v2823_v54  ;;  %v2833_v39 = vunpack.i.h.bf16 %v2831_v4  ;;  %v2832_v34 = vunpack.i.l.bf16 %v2831_v4  ;;  %v643_v58 = vld [vmem:[#allocation2 + $0x110] sm:$0xff] }
 0x145   : > { %3050 = vrot.lane.b32.xlu2 %v3049_v17, %s3231_s5  ;;  %v3064_v48 = vpack.i.bf16 %v643_v58, %v642_v47  ;;  %v680_v54 = vld [vmem:[#allocation2 + $0x151] sm:$0xff] }
 0x146   : > { %v4142_v14 = vsel %vm1842_vm4, %v3936_v50, %v2833_v39  ;;  %v4146_v55 = vsel %vm1842_vm4, %v3939_v62, %v2832_v34  ;;  %v707_v34 = vld [vmem:[#allocation2 + $0x112] sm:$0xff] }
 0x147   : > { %3045 = vrot.lane.b32.xlu1 %v3044_v56, %s3231_s5  ;;  %v2886_v37 = vpop.permute.xlu2 %2885 }
 0x148   : > { %v2888_v45 = vunpack.i.h.bf16 %v2886_v37  ;;  %v2887_v2 = vunpack.i.l.bf16 %v2886_v37 }
 0x149   : > { %3055 = vrot.lane.b32.xlu0 %v3054_v46, %s3232_s6  ;;  %v2836_v36 = vpop.permute.xlu1 %2835 }
 0x14a   : > { %v2838_v42 = vunpack.i.h.bf16 %v2836_v36  ;;  %v2837_v50 = vunpack.i.l.bf16 %v2836_v36  ;;  %v4151_v51 = vsel %vm1842_vm4, %v1838_v19, %v2887_v2  ;;  %v4154_v62 = vsel %vm1842_vm4, %v1839_v32, %v2888_v45  ;;  %v630_v36 = vld [vmem:[#allocation2 + $0x78] sm:$0xff] }
 0x14b   : > { %v2846_v5 = vpop.permute.xlu0 %2845  ;;  %v3069_v19 = vpack.i.bf16 %v649_v22, %v648_v16 }
 0x14c   : > { %v4158_v43 = vsel %vm1842_vm4, %v4033_v18, %v2837_v50  ;;  %v4162_v12 = vsel %vm1842_vm4, %v4029_v8, %v2838_v42  ;;  %v2848_v23 = vunpack.i.h.bf16 %v2846_v5  ;;  %v2847_v21 = vunpack.i.l.bf16 %v2846_v5  ;;  %v681_v18 = vld [vmem:[#allocation2 + $0x159] sm:$0xff]  ;;  %v674_v8 = vld [vmem:[#allocation2 + $0x109] sm:$0xff] }
 0x14d   : > { %3065 = vrot.lane.b32.xlu2 %v3064_v48, %s3230_s30  ;;  %v3079_v4 = vpack.i.bf16 %v681_v18, %v680_v54  ;;  %v3074_v47 = vpack.i.bf16 %v675_v13, %v674_v8  ;;  %v631_v48 = vld [vmem:[#allocation2 + $0x80] sm:$0xff] }
 0x14e   : > { %v4167_v32 = vsel %vm1842_vm4, %v3964_v52, %v2847_v21  ;;  %v4171_v17 = vsel %vm1842_vm4, %v3967_v11, %v2848_v23  ;;  %v706_v52 = vld [vmem:[#allocation2 + $0x10a] sm:$0xff]  ;;  %v713_v42 = vld [vmem:[#allocation2 + $0x15a] sm:$0xff]  ;;  %v3094_v16 = vpack.i.bf16 %v631_v48, %v630_v36  ;;  %v695_v36 = vld [vmem:[#allocation2 + $0x82] sm:$0xff] }
 0x14f   : > { %3060 = vrot.lane.b32.xlu1 %v3059_v57, %s3232_s6  ;;  %v4174_v20 = vpop.permute.xlu2 %2900  ;;  %v3084_v2 = vpack.i.bf16 %v707_v34, %v706_v52  ;;  %v637_v57 = vld [vmem:[#allocation2 + $0xc8] sm:$0xff]  ;;  %v662_v52 = vld [vmem:[#allocation2 + $0x79] sm:$0xff] }
 0x150   : > { %v663_v34 = vld [vmem:[#allocation2 + $0x81] sm:$0xff] }
 0x151   : > { %3070 = vrot.lane.b32.xlu0 %v3069_v19, %s3230_s30  ;;  %v2851_v27 = vpop.permute.xlu1 %2850 }
 0x152   : > { %v2853_v56 = vunpack.i.h.bf16 %v2851_v27  ;;  %v2852_v39 = vunpack.i.l.bf16 %v2851_v27 }
 0x153   : > { %v2861_v46 = vpop.permute.xlu0 %2860 }
 0x154   : > { %v1857_v11 = vsel %vm1842_vm4, %v4056_v0, %v2852_v39  ;;  %v1858_v58 = vsel %vm1842_vm4, %v4052_v41, %v2853_v56  ;;  %v2863_v37 = vunpack.i.h.bf16 %v2861_v46  ;;  %v2862_v45 = vunpack.i.l.bf16 %v2861_v46  ;;  %v712_v41 = vld [vmem:[#allocation2 + $0x152] sm:$0xff]  ;;  %v669_v56 = vld [vmem:[#allocation2 + $0xc9] sm:$0xff] }
 0x155   : > { %3080 = vrot.lane.b32.xlu2 %v3079_v4, %s3231_s5  ;;  %v3089_v21 = vpack.i.bf16 %v713_v42, %v712_v41  ;;  %v668_v4 = vld [vmem:[#allocation2 + $0xc1] sm:$0xff]  ;;  %v3104_v41 = vpack.i.bf16 %v663_v34, %v662_v52 }
 0x156   : > { %v4184_v6 = vsel %vm1842_vm4, %v3990_v1, %v2862_v45  ;;  %v4188_v3 = vsel %vm1842_vm4, %v3993_v28, %v2863_v37  ;;  %v636_v1 = vld [vmem:[#allocation2 + $0xc0] sm:$0xff] }
 0x157   : > { %3075 = vrot.lane.b32.xlu1 %v3074_v47, %s3231_s5  ;;  %v4191_v0 = vpop.permute.xlu2 %2915  ;;  %v3099_v8 = vpack.i.bf16 %v637_v57, %v636_v1  ;;  %v3109_v47 = vpack.i.bf16 %v669_v56, %v668_v4  ;;  %v644_v1 = vld [vmem:[#allocation2 + $0x120] sm:$0xff]  ;;  %v645_v57 = vld [vmem:[#allocation2 + $0x128] sm:$0xff] }
 0x159   : > { %3085 = vrot.lane.b32.xlu0 %v3084_v2, %s3232_s6  ;;  %v2866_v50 = vpop.permute.xlu1 %2865  ;;  %v694_v2 = vld [vmem:[#allocation2 + $0x7a] sm:$0xff] }
 0x15a   : > { %v2868_v22 = vunpack.i.h.bf16 %v2866_v50  ;;  %v2867_v5 = vunpack.i.l.bf16 %v2866_v50 }
 0x15b   : > { %v2876_v23 = vpop.permute.xlu0 %2875 }
 0x15c   : > { %v1863_v28 = vsel %vm1842_vm4, %v4078_v61, %v2867_v5  ;;  %v1864_v19 = vsel %vm1842_vm4, %v4074_v26, %v2868_v22  ;;  %v2878_v54 = vunpack.i.h.bf16 %v2876_v23  ;;  %v2877_v18 = vunpack.i.l.bf16 %v2876_v23 }
 0x15d   : > { %3095 = vrot.lane.b32.xlu2 %v3094_v16, %s3230_s30  ;;  %v3114_v5 = vpack.i.bf16 %v695_v36, %v694_v2  ;;  %v683_v2 = vld [vmem:[#allocation2 + $0x171] sm:$0xff] }
 0x15e   : > { %v4201_v13 = vsel %vm1842_vm4, %v4014_v33, %v2877_v18  ;;  %v4205_v27 = vsel %vm1842_vm4, %v4017_v63, %v2878_v54  ;;  %v701_v54 = vld [vmem:[#allocation2 + $0xca] sm:$0xff]  ;;  %v2031_v18 = vld [vmem:[%s4736_s2 + $0x20] sm:$0xf] }
 0x15f   : > { %3090 = vrot.lane.b32.xlu1 %v3089_v21, %s3232_s6  ;;  %v2931_v61 = vpop.permute.xlu2 %2930  ;;  %v700_v21 = vld [vmem:[#allocation2 + $0xc2] sm:$0xff] }
 0x160   : > { %v2933_v39 = vunpack.i.h.bf16 %v2931_v61  ;;  %v2932_v26 = vunpack.i.l.bf16 %v2931_v61  ;;  %v650_v61 = vld [vmem:[#allocation2 + $0x168] sm:$0xff]  ;;  %v3119_v52 = vpack.i.bf16 %v701_v54, %v700_v21 }
 0x161   : > { %3100 = vrot.lane.b32.xlu0 %v3099_v8, %s3230_s30  ;;  %v2881_v46 = vpop.permute.xlu1 %2880  ;;  %v3124_v8 = vpack.i.bf16 %v645_v57, %v644_v1  ;;  %v708_v21 = vld [vmem:[#allocation2 + $0x122] sm:$0xff]  ;;  %v709_v54 = vld [vmem:[#allocation2 + $0x12a] sm:$0xff] }
 0x162   : > { %v2883_v33 = vunpack.i.h.bf16 %v2881_v46  ;;  %v2882_v37 = vunpack.i.l.bf16 %v2881_v46  ;;  %v4210_v45 = vsel %vm1875_vm5, %v1857_v11, %v2932_v26  ;;  %v4213_v63 = vsel %vm1875_vm5, %v1858_v58, %v2933_v39  ;;  %v651_v39 = vld [vmem:[#allocation2 + $0x170] sm:$0xff] }
 0x163   : > { %v2891_v48 = vpop.permute.xlu0 %2890 }
 0x164   : > { %v1869_v42 = vsel %vm1842_vm4, %v4100_v15, %v2882_v37  ;;  %v1870_v50 = vsel %vm1842_vm4, %v4096_v7, %v2883_v33  ;;  %v2893_v16 = vunpack.i.h.bf16 %v2891_v48  ;;  %v2892_v22 = vunpack.i.l.bf16 %v2891_v48 }
 0x165   : > { %3110 = vrot.lane.b32.xlu2 %v3109_v47, %s3231_s5  ;;  %v3129_v33 = vpack.i.bf16 %v651_v39, %v650_v61 }
 0x166   : > { %v4222_v11 = vsel %vm1842_vm4, %v4039_v44, %v2892_v22  ;;  %v4226_v58 = vsel %vm1842_vm4, %v4042_v31, %v2893_v16  ;;  %v2049_v31 = vunpack.c.l.b16 %v2031_v18  ;;  %v676_v22 = vld [vmem:[#allocation2 + $0x121] sm:$0xff] }
 0x167   : > { %3105 = vrot.lane.b32.xlu1 %v3104_v41, %s3231_s5  ;;  %v2946_v15 = vpop.permute.xlu2 %2945 }
 0x168   : > { %v2948_v23 = vunpack.i.h.bf16 %v2946_v15  ;;  %v2947_v7 = vunpack.i.l.bf16 %v2946_v15  ;;  %v2054_v34 = vpack.c.b16 %v2049_v31, %v2049_v31 }
 0x169   : > { %3115 = vrot.lane.b32.xlu0 %v3114_v5, %s3232_s6  ;;  %v4233_v44 = vpop.permute.xlu1 %2895  ;;  %v677_v5 = vld [vmem:[#allocation2 + $0x129] sm:$0xff] }
 0x16a   : > { %v4236_v4 = vsel %vm1875_vm5, %v1863_v28, %v2947_v7  ;;  %v4239_v56 = vsel %vm1875_vm5, %v1864_v19, %v2948_v23  ;;  %v682_v19 = vld [vmem:[#allocation2 + $0x169] sm:$0xff]  ;;  %v2110_v36 = vsel %vm2108_vm6, %v2054_v34, 0  ;;  %v639_v34 = vld [vmem:[#allocation2 + $0xe0] sm:$0xff] }
 0x16b   : > { %v2906_v26 = vpop.permute.xlu0 %2905  ;;  %2115 = vmatpush.bf16.msra.mxu0 %v2110_v36  ;;  %2542 = vmatpush.bf16.msra.mxu1 %v2110_v36  ;;  %v3139_v1 = vpack.i.bf16 %v683_v2, %v682_v19  ;;  %v2539_v19 = vld [vmem:[%s4736_s2 + $0x8] sm:$0xff] }
 0x16c   : > { %v2908_v46 = vunpack.i.h.bf16 %v2906_v26  ;;  %v2907_v47 = vunpack.i.l.bf16 %v2906_v26  ;;  %2543 = vmatpush.bf16.msra.mxu2 %v2110_v36  ;;  %2544 = vmatpush.bf16.msra.mxu3 %v2110_v36 }
 0x16d   : > { %3125 = vrot.lane.b32.xlu2 %v3124_v8, %s3230_s30  ;;  %v3134_v8 = vpack.i.bf16 %v677_v5, %v676_v22 }
 0x16e   : > { %v4244_v37 = vsel %vm1875_vm5, %v4062_v29, %v2907_v47  ;;  %v4248_v28 = vsel %vm1875_vm5, %v4065_v9, %v2908_v46  ;;  %v2541_v29 = vld [vmem:[%s4736_s2 + $0x18] sm:$0xff]  ;;  %v714_v47 = vld [vmem:[#allocation2 + $0x16a] sm:$0xff] }
 0x16f   : > { %3120 = vrot.lane.b32.xlu1 %v3119_v52, %s3232_s6  ;;  %v2961_v48 = vpop.permute.xlu2 %2960  ;;  %2116 = vmatpush.bf16.msra.mxu0 %v2541_v29  ;;  %v638_v52 = vld [vmem:[#allocation2 + $0xd8] sm:$0xff] }
 0x170   : > { %v2963_v41 = vunpack.i.h.bf16 %v2961_v48  ;;  %v2962_v16 = vunpack.i.l.bf16 %v2961_v48  ;;  %2545 = vmatpush.bf16.msra.mxu1 %v2541_v29  ;;  %2546 = vmatpush.bf16.msra.mxu2 %v2541_v29  ;;  %v670_v48 = vld [vmem:[#allocation2 + $0xd9] sm:$0xff] }
 0x171   : > { %3130 = vrot.lane.b32.xlu0 %v3129_v33, %s3230_s30  ;;  %v2911_v9 = vpop.permute.xlu1 %2910  ;;  %2547 = vmatpush.bf16.msra.mxu3 %v2541_v29  ;;  %v715_v33 = vld [vmem:[#allocation2 + $0x172] sm:$0xff] }
 0x172   : > { %v2913_v57 = vunpack.i.h.bf16 %v2911_v9  ;;  %v2912_v15 = vunpack.i.l.bf16 %v2911_v9  ;;  %v4256_v23 = vsel %vm1875_vm5, %v1869_v42, %v2962_v16  ;;  %v4259_v7 = vsel %vm1875_vm5, %v1870_v50, %v2963_v41  ;;  %v2540_v42 = vld [vmem:[%s4736_s2 + $0x10] sm:$0xff]  ;;  %v671_v41 = vld [vmem:[#allocation2 + $0xe1] sm:$0xff] }
 0x173   : > { %v2921_v18 = vpop.permute.xlu0 %2920  ;;  %v3144_v50 = vpack.i.bf16 %v709_v54, %v708_v21  ;;  %2117 = vmatpush.bf16.msra.mxu0 %v2540_v42  ;;  %v3149_v22 = vpack.i.bf16 %v715_v33, %v714_v47  ;;  %v2538_v9 = vld [vmem:[%s4736_s2] sm:$0xff] }
 0x174   : > { %v4263_v31 = vsel %vm1875_vm5, %v4146_v55, %v2912_v15  ;;  %v4267_v61 = vsel %vm1875_vm5, %v4142_v14, %v2913_v57  ;;  %v2923_v39 = vunpack.i.h.bf16 %v2921_v18  ;;  %v2922_v26 = vunpack.i.l.bf16 %v2921_v18  ;;  %2548 = vmatpush.bf16.msra.mxu1 %v2540_v42  ;;  %2549 = vmatpush.bf16.msra.mxu2 %v2540_v42  ;;  %v646_v57 = vld [vmem:[#allocation2 + $0x138] sm:$0xff]  ;;  %v647_v15 = vld [vmem:[#allocation2 + $0x140] sm:$0xff] }
 0x175   : > { %3140 = vrot.lane.b32.xlu2 %v3139_v1, %s3231_s5  ;;  %2550 = vmatpush.bf16.msra.mxu3 %v2540_v42  ;;  %v3159_v1 = vpack.i.bf16 %v671_v41, %v670_v48  ;;  %v702_v21 = vld [vmem:[#allocation2 + $0xda] sm:$0xff]  ;;  %v3169_v18 = vpack.i.bf16 %v647_v15, %v646_v57  ;;  %v653_v42 = vld [vmem:[#allocation2 + $0x188] sm:$0xff] }
 0x176   : > { %v4275_v55 = vsel %vm1875_vm5, %v4083_v38, %v2922_v26  ;;  %v4279_v14 = vsel %vm1875_vm5, %v4086_v35, %v2923_v39  ;;  %v3154_v35 = vpack.i.bf16 %v639_v34, %v638_v52  ;;  %v652_v26 = vld [vmem:[#allocation2 + $0x180] sm:$0xff] }
 0x177   : > { %3135 = vrot.lane.b32.xlu1 %v3134_v8, %s3231_s5  ;;  %v4282_v46 = vpop.permute.xlu2 %2975  ;;  %2118 = vmatpush.bf16.msra.mxu0 %v2539_v19  ;;  %v678_v48 = vld [vmem:[#allocation2 + $0x139] sm:$0xff]  ;;  %v711_v15 = vld [vmem:[#allocation2 + $0x142] sm:$0xff] }
 0x178   : > { %2551 = vmatpush.bf16.msra.mxu1 %v2539_v19  ;;  %2552 = vmatpush.bf16.msra.mxu2 %v2539_v19 }
 0x179   : > { %3145 = vrot.lane.b32.xlu0 %v3144_v50, %s3232_s6  ;;  %v2926_v38 = vpop.permute.xlu1 %2925  ;;  %2553 = vmatpush.bf16.msra.mxu3 %v2539_v19 }
 0x17a   : > { %v2928_v2 = vunpack.i.h.bf16 %v2926_v38  ;;  %v2927_v36 = vunpack.i.l.bf16 %v2926_v38  ;;  %v3174_v38 = vpack.i.bf16 %v653_v42, %v652_v26 }
 0x17b   : > { %v4288_v16 = vpop.permute.xlu0 %2935  ;;  %2119 = vmatpush.bf16.msra.mxu0 %v2538_v9 }
 0x17c   : > { %v4292_v5 = vsel %vm1875_vm5, %v4167_v32, %v2927_v36  ;;  %v4296_v29 = vsel %vm1875_vm5, %v4171_v17, %v2928_v2  ;;  %v703_v17 = vld [vmem:[#allocation2 + $0xe2] sm:$0xff]  ;;  %2554 = vmatpush.bf16.msra.mxu1 %v2538_v9  ;;  %2555 = vmatpush.bf16.msra.mxu2 %v2538_v9 }
 0x17d   : > { %3155 = vrot.lane.b32.xlu2 %v3154_v35, %s3230_s30  ;;  %2556 = vmatpush.bf16.msra.mxu3 %v2538_v9  ;;  %v3164_v52 = vpack.i.bf16 %v703_v17, %v702_v21  ;;  %v684_v36 = vld [vmem:[#allocation2 + $0x181] sm:$0xff] }
 0x17f   : > { %3150 = vrot.lane.b32.xlu1 %v3149_v22, %s3232_s6  ;;  %v4303_v32 = vpop.permute.xlu2 %2990 }
 0x181   : > { %3160 = vrot.lane.b32.xlu0 %v3159_v1, %s3231_s5  ;;  %v2941_v54 = vpop.permute.xlu1 %2940 }
 0x182   : > { %v2943_v8 = vunpack.i.h.bf16 %v2941_v54  ;;  %v2942_v39 = vunpack.i.l.bf16 %v2941_v54 }
 0x183   : > { %v2951_v50 = vpop.permute.xlu0 %2950 }
 0x184   : > { %v4308_v34 = vsel %vm1875_vm5, %v4184_v6, %v2942_v39  ;;  %v4312_v47 = vsel %vm1875_vm5, %v4188_v3, %v2943_v8  ;;  %v2953_v33 = vunpack.i.h.bf16 %v2951_v50  ;;  %v2952_v19 = vunpack.i.l.bf16 %v2951_v50  ;;  %v685_v6 = vld [vmem:[#allocation2 + $0x189] sm:$0xff]  ;;  %v679_v3 = vld [vmem:[#allocation2 + $0x141] sm:$0xff]  ;;  %v654_v50 = vld [vmem:[#allocation2 + $0x198] sm:$0xff] }
 0x185   : > { %3170 = vrot.lane.b32.xlu2 %v3169_v18, %s3230_s30  ;;  %v3184_v9 = vpack.i.bf16 %v685_v6, %v684_v36  ;;  %v3179_v17 = vpack.i.bf16 %v679_v3, %v678_v48  ;;  %v687_v36 = vld [vmem:[#allocation2 + $0x1a1] sm:$0xff]  ;;  %v2898_v3 = vunpack.i.h.bf16 %v4233_v44 }
 0x186   : > { %v4317_v35 = vsel %vm1875_vm5, %v4126_v10, %v2952_v19  ;;  %v4321_v2 = vsel %vm1875_vm5, %v4129_v25, %v2953_v33  ;;  %v710_v10 = vld [vmem:[#allocation2 + $0x13a] sm:$0xff] }
 0x187   : > { %3165 = vrot.lane.b32.xlu1 %v3164_v52, %s3232_s6  ;;  %v4325_v22 = vpop.permute.xlu2 %3005  ;;  %v3189_v39 = vpack.i.bf16 %v711_v15, %v710_v10 }
 0x189   : > { %3175 = vrot.lane.b32.xlu0 %v3174_v38, %s3230_s30  ;;  %v2956_v41 = vpop.permute.xlu1 %2955  ;;  %v686_v38 = vld [vmem:[#allocation2 + $0x199] sm:$0xff] }
 0x18a   : > { %v2958_v1 = vunpack.i.h.bf16 %v2956_v41  ;;  %v2957_v57 = vunpack.i.l.bf16 %v2956_v41  ;;  %v2897_v41 = vunpack.i.l.bf16 %v4233_v44  ;;  %v1877_v44 = vsel %vm1875_vm5, %v4117_v60, %v2898_v3 }
 0x18b   : > { %v2966_v21 = vpop.permute.xlu0 %2965 }
 0x18c   : > { %v4329_v25 = vsel %vm1875_vm5, %v4201_v13, %v2957_v57  ;;  %v4333_v54 = vsel %vm1875_vm5, %v4205_v27, %v2958_v1  ;;  %v2968_v18 = vunpack.i.h.bf16 %v2966_v21  ;;  %v2967_v8 = vunpack.i.l.bf16 %v2966_v21  ;;  %v655_v13 = vld [vmem:[#allocation2 + $0x1a0] sm:$0xff] }
 0x18d   : > { %3185 = vrot.lane.b32.xlu2 %v3184_v9, %s3231_s5  ;;  %v3199_v52 = vpack.i.bf16 %v655_v13, %v654_v50  ;;  %v3204_v9 = vpack.i.bf16 %v687_v36, %v686_v38  ;;  %v2978_v1 = vunpack.i.h.bf16 %v4282_v46  ;;  %v2977_v57 = vunpack.i.l.bf16 %v4282_v46 }
 0x18e   : > { %v4338_v26 = vsel %vm1875_vm5, %v4151_v51, %v2967_v8  ;;  %v4342_v42 = vsel %vm1875_vm5, %v4154_v62, %v2968_v18  ;;  %v1876_v21 = vsel %vm1875_vm5, %v4121_v24, %v2897_v41  ;;  %v2993_v36 = vunpack.i.h.bf16 %v4303_v32 }
 0x18f   : > { %3180 = vrot.lane.b32.xlu1 %v3179_v17, %s3231_s5  ;;  %v4346_v6 = vpop.permute.xlu2 %3020  ;;  %v1909_v46 = vsel %vm1908_vm7, %v1876_v21, %v2977_v57  ;;  %v1910_v18 = vsel %vm1908_vm7, %v1877_v44, %v2978_v1  ;;  %v2917_v1 = vunpack.i.l.bf16 %v4191_v0 }
 0x191   : > { %3190 = vrot.lane.b32.xlu0 %v3189_v39, %s3232_s6  ;;  %v2971_v27 = vpop.permute.xlu1 %2970 }
 0x192   : > { %v2973_v33 = vunpack.i.h.bf16 %v2971_v27  ;;  %v2972_v19 = vunpack.i.l.bf16 %v2971_v27 }
 0x193   : > { %v2981_v51 = vpop.permute.xlu0 %2980 }
 0x194   : > { %v4350_v48 = vsel %vm1875_vm5, %v4222_v11, %v2972_v19  ;;  %v4354_v62 = vsel %vm1875_vm5, %v4226_v58, %v2973_v33  ;;  %v2983_v10 = vunpack.i.h.bf16 %v2981_v51  ;;  %v2982_v15 = vunpack.i.l.bf16 %v2981_v51  ;;  %v718_v11 = vld [vmem:[#allocation2 + $0x19a] sm:$0xff]  ;;  %v719_v58 = vld [vmem:[#allocation2 + $0x1a2] sm:$0xff] }
 0x195   : > { %3200 = vrot.lane.b32.xlu2 %v3199_v52, %s3230_s30  ;;  %v3209_v27 = vpack.i.bf16 %v719_v58, %v718_v11  ;;  %v2903_v52 = vunpack.i.h.bf16 %v4174_v20  ;;  %v2902_v33 = vunpack.i.l.bf16 %v4174_v20  ;;  %v2992_v51 = vunpack.i.l.bf16 %v4303_v32 }
 0x196   : > { %v1943_v50 = vsel %vm1941_vm8, %v1910_v18, %v2983_v10  ;;  %v2918_v20 = vunpack.i.h.bf16 %v4191_v0 }
 0x197   : > { %3195 = vrot.lane.b32.xlu1 %v4019_v53, %s3232_s6  ;;  %v1942_v53 = vsel %vm1941_vm8, %v1909_v46, %v2982_v15  ;;  %v4376_v19 = vpop.permute.xlu2 %3035  ;;  %v1878_v3 = vsel %vm1875_vm5, %v4133_v59, %v2902_v33  ;;  %v1879_v41 = vsel %vm1875_vm5, %v4137_v40, %v2903_v52  ;;  %v1884_v46 = vsel %vm1875_vm5, %v4158_v43, %v2917_v1 }
 0x198   : > { %v1911_v15 = vsel %vm1908_vm7, %v1878_v3, %v2992_v51  ;;  %v1912_v32 = vsel %vm1908_vm7, %v1879_v41, %v2993_v36  ;;  %v2937_v3 = vunpack.i.l.bf16 %v4288_v16 }
 0x199   : > { %3205 = vrot.lane.b32.xlu0 %v3204_v9, %s3231_s5  ;;  %v2986_v17 = vpop.permute.xlu1 %2985 }
 0x19a   : > { %v2988_v8 = vunpack.i.h.bf16 %v2986_v17  ;;  %v2987_v39 = vunpack.i.l.bf16 %v2986_v17 }
 0x19b   : > { %v2996_v13 = vpop.permute.xlu0 %2995 }
 0x19c   : > { %v1975_v24 = vsel %vm1974_vm9, %v1942_v53, %v2987_v39  ;;  %v1976_v60 = vsel %vm1974_vm9, %v1943_v50, %v2988_v8  ;;  %v2998_v11 = vunpack.i.h.bf16 %v2996_v13  ;;  %v2997_v58 = vunpack.i.l.bf16 %v2996_v13 }
 0x19d   : > { %v2007_v38 = vpack.c.bf16 %v1976_v60, %v1975_v24  ;;  %v1885_v8 = vsel %vm1875_vm5, %v4162_v12, %v2918_v20  ;;  %v3008_v39 = vunpack.i.h.bf16 %v4325_v22  ;;  %v3007_v53 = vunpack.i.l.bf16 %v4325_v22 }
 0x19e   : > { %v1918_v24 = vsel %vm1908_vm7, %v1885_v8, %v2998_v11  ;;  %v2938_v22 = vunpack.i.h.bf16 %v4288_v16  ;;  %v3022_v20 = vunpack.i.l.bf16 %v4346_v6 }
 0x19f   : > { %3210 = vrot.lane.b32.xlu1 %v3209_v27, %s3232_s6  ;;  %2518 = vmatmul.msk.bf16.vlgmr.msra.gmra.mxu0 %vm2059_vm10, %v2007_v38  ;;  %v4400_v50 = vpop.permute.xlu2 %3050  ;;  %v1917_v27 = vsel %vm1908_vm7, %v1884_v46, %v2997_v58  ;;  %v1951_v36 = vsel %vm1941_vm8, %v1918_v24, %v3008_v39 }
 0x1a0   : > { %v1950_v38 = vsel %vm1941_vm8, %v1917_v27, %v3007_v53 }
 0x1a1   : > { %v3001_v9 = vpop.permute.xlu1 %3000 }
 0x1a2   : > { %v3003_v57 = vunpack.i.h.bf16 %v3001_v9  ;;  %v3002_v10 = vunpack.i.l.bf16 %v3001_v9  ;;  %v3023_v9 = vunpack.i.h.bf16 %v4346_v6 }
 0x1a3   : > { %v3011_v21 = vpop.permute.xlu0 %3010 }
 0x1a4   : > { %v1944_v44 = vsel %vm1941_vm8, %v1911_v15, %v3002_v10  ;;  %v1945_v59 = vsel %vm1941_vm8, %v1912_v32, %v3003_v57  ;;  %v3013_v17 = vunpack.i.h.bf16 %v3011_v21  ;;  %v3012_v40 = vunpack.i.l.bf16 %v3011_v21 }
 0x1a5   : > { %v1892_v10 = vsel %vm1875_vm5, %v4105_v49, %v2937_v3  ;;  %v1893_v15 = vsel %vm1875_vm5, %v4108_v30, %v2938_v22  ;;  %v3038_v30 = vunpack.i.h.bf16 %v4376_v19 }
 0x1a6   : > { %v1977_v0 = vsel %vm1974_vm9, %v1944_v44, %v3012_v40  ;;  %v1978_v18 = vsel %vm1974_vm9, %v1945_v59, %v3013_v17  ;;  %v1925_v16 = vsel %vm1908_vm7, %v1892_v10, %v3022_v20  ;;  %v1926_v58 = vsel %vm1908_vm7, %v1893_v15, %v3023_v9 }
 0x1a7   : > { %v2008_v13 = vpack.c.bf16 %v1978_v18, %v1977_v0  ;;  %v3066_v32 = vpop.permute.xlu2 %3065  ;;  %v3037_v0 = vunpack.i.l.bf16 %v4376_v19 }
 0x1a9   : > { %v3016_v60 = vpop.permute.xlu1 %3015  ;;  %v1913_v53 = vsel %vm1908_vm7, %v4244_v37, %v3037_v0  ;;  %v3052_v37 = vunpack.i.l.bf16 %v4400_v50 }
 0x1aa   : > { %v3018_v43 = vunpack.i.h.bf16 %v3016_v60  ;;  %v3017_v52 = vunpack.i.l.bf16 %v3016_v60 }
 0x1ab   : > { %v3026_v33 = vpop.permute.xlu0 %3025 }
 0x1ac   : > { %v1983_v12 = vsel %vm1974_vm9, %v1950_v38, %v3017_v52  ;;  %v1984_v51 = vsel %vm1974_vm9, %v1951_v36, %v3018_v43  ;;  %v3028_v1 = vunpack.i.h.bf16 %v3026_v33  ;;  %v3027_v57 = vunpack.i.l.bf16 %v3026_v33 }
 0x1ad   : > { %v2011_v41 = vpack.c.bf16 %v1984_v51, %v1983_v12  ;;  %v3053_v51 = vunpack.i.h.bf16 %v4400_v50 }
 0x1ae   : > { %v1958_v44 = vsel %vm1941_vm8, %v1925_v16, %v3027_v57  ;;  %v1959_v59 = vsel %vm1941_vm8, %v1926_v58, %v3028_v1  ;;  %v3067_v58 = vunpack.i.l.bf16 %v3066_v32 }
 0x1af   : > { %2519 = vmatmul.msk.bf16.gmra.mxu0 %vm2059_vm10, %v2008_v13  ;;  %2522 = vmatmul.msk.bf16.vlgmr.msra.gmra.mxu1 %vm2059_vm10, %v2011_v41  ;;  %v1914_v13 = vsel %vm1908_vm7, %v4248_v28, %v3038_v30  ;;  %v3081_v27 = vpop.permute.xlu2 %3080 }
 0x1b1   : > { %v3031_v11 = vpop.permute.xlu1 %3030 }
 0x1b2   : > { %v3033_v21 = vunpack.i.h.bf16 %v3031_v11  ;;  %v3032_v6 = vunpack.i.l.bf16 %v3031_v11 }
 0x1b3   : > { %v3041_v17 = vpop.permute.xlu0 %3040 }
 0x1b4   : > { %v1991_v40 = vsel %vm1974_vm9, %v1958_v44, %v3032_v6  ;;  %v1992_v49 = vsel %vm1974_vm9, %v1959_v59, %v3033_v21  ;;  %v3043_v24 = vunpack.i.h.bf16 %v3041_v17  ;;  %v3042_v60 = vunpack.i.l.bf16 %v3041_v17 }
 0x1b5   : > { %v2015_v46 = vpack.c.bf16 %v1992_v49, %v1991_v40  ;;  %v1927_v44 = vsel %vm1908_vm7, %v4308_v34, %v3067_v58 }
 0x1b6   : > { %v1919_v28 = vsel %vm1908_vm7, %v4275_v55, %v3042_v60  ;;  %v1920_v3 = vsel %vm1908_vm7, %v4279_v14, %v3043_v24  ;;  %v3068_v55 = vunpack.i.h.bf16 %v3066_v32 }
 0x1b7   : > { %2526 = vmatmul.msk.bf16.vlgmr.msra.gmra.mxu2 %vm2059_vm10, %v2015_v46  ;;  %v1952_v57 = vsel %vm1941_vm8, %v1919_v28, %v3052_v37  ;;  %v1953_v10 = vsel %vm1941_vm8, %v1920_v3, %v3053_v51  ;;  %v3096_v11 = vpop.permute.xlu2 %3095 }
 0x1b8   : > { %v1928_v59 = vsel %vm1908_vm7, %v4312_v47, %v3068_v55  ;;  %v3098_v51 = vunpack.i.h.bf16 %v3096_v11 }
 0x1b9   : > { %v3046_v18 = vpop.permute.xlu1 %3045 }
 0x1ba   : > { %v3048_v8 = vunpack.i.h.bf16 %v3046_v18  ;;  %v3047_v39 = vunpack.i.l.bf16 %v3046_v18 }
 0x1bb   : > { %v3056_v43 = vpop.permute.xlu0 %3055 }
 0x1bc   : > { %v1946_v52 = vsel %vm1941_vm8, %v1913_v53, %v3047_v39  ;;  %v1947_v33 = vsel %vm1941_vm8, %v1914_v13, %v3048_v8  ;;  %v3058_v19 = vunpack.i.h.bf16 %v3056_v43  ;;  %v3057_v38 = vunpack.i.l.bf16 %v3056_v43 }
 0x1bd   : > { %v3083_v39 = vunpack.i.h.bf16 %v3081_v27  ;;  %v3082_v53 = vunpack.i.l.bf16 %v3081_v27 }
 0x1be   : > { %v1979_v36 = vsel %vm1974_vm9, %v1946_v52, %v3057_v38  ;;  %v1980_v12 = vsel %vm1974_vm9, %v1947_v33, %v3058_v19 }
 0x1bf   : > { %v2009_v22 = vpack.c.bf16 %v1980_v12, %v1979_v36  ;;  %v3111_v13 = vpop.permute.xlu2 %3110 }
 0x1c0   : > { %v3113_v55 = vunpack.i.h.bf16 %v3111_v13  ;;  %v3112_v58 = vunpack.i.l.bf16 %v3111_v13 }
 0x1c1   : > { %2520 = vmatmul.msk.bf16.gmra.mxu0 %vm2059_vm10, %v2009_v22  ;;  %v3061_v41 = vpop.permute.xlu1 %3060 }
 0x1c2   : > { %v3063_v9 = vunpack.i.h.bf16 %v3061_v41  ;;  %v3062_v20 = vunpack.i.l.bf16 %v3061_v41  ;;  %v1916_v41 = vsel %vm1908_vm7, %v4267_v61, %v3098_v51 }
 0x1c3   : > { %v3071_v1 = vpop.permute.xlu0 %3070 }
 0x1c4   : > { %v1985_v15 = vsel %vm1974_vm9, %v1952_v57, %v3062_v20  ;;  %v1986_v50 = vsel %vm1974_vm9, %v1953_v10, %v3063_v9  ;;  %v3073_v17 = vunpack.i.h.bf16 %v3071_v1  ;;  %v3072_v40 = vunpack.i.l.bf16 %v3071_v1 }
 0x1c5   : > { %v2012_v16 = vpack.c.bf16 %v1986_v50, %v1985_v15 }
 0x1c6   : > { %v1933_v47 = vsel %vm1908_vm7, %v4329_v25, %v3072_v40  ;;  %v1934_v24 = vsel %vm1908_vm7, %v4333_v54, %v3073_v17  ;;  %v3097_v25 = vunpack.i.l.bf16 %v3096_v11 }
 0x1c7   : > { %2523 = vmatmul.msk.bf16.gmra.mxu1 %vm2059_vm10, %v2012_v16  ;;  %v1966_v19 = vsel %vm1941_vm8, %v1933_v47, %v3082_v53  ;;  %v1967_v38 = vsel %vm1941_vm8, %v1934_v24, %v3083_v39  ;;  %v3126_v54 = vpop.permute.xlu2 %3125 }
 0x1c8   : > { %v1915_v3 = vsel %vm1908_vm7, %v4263_v31, %v3097_v25 }
 0x1c9   : > { %v3076_v14 = vpop.permute.xlu1 %3075 }
 0x1ca   : > { %v3078_v21 = vunpack.i.h.bf16 %v3076_v14  ;;  %v3077_v6 = vunpack.i.l.bf16 %v3076_v14 }
 0x1cb   : > { %v3086_v49 = vpop.permute.xlu0 %3085 }
 0x1cc   : > { %v1960_v46 = vsel %vm1941_vm8, %v1927_v44, %v3077_v6  ;;  %v1961_v30 = vsel %vm1941_vm8, %v1928_v59, %v3078_v21  ;;  %v3088_v0 = vunpack.i.h.bf16 %v3086_v49  ;;  %v3087_v32 = vunpack.i.l.bf16 %v3086_v49 }
 0x1ce   : > { %v1993_v18 = vsel %vm1974_vm9, %v1960_v46, %v3087_v32  ;;  %v1994_v8 = vsel %vm1974_vm9, %v1961_v30, %v3088_v0  ;;  %v3127_v32 = vunpack.i.l.bf16 %v3126_v54 }
 0x1cf   : > { %v2016_v34 = vpack.c.bf16 %v1994_v8, %v1993_v18  ;;  %v3141_v59 = vpop.permute.xlu2 %3140 }
 0x1d0   : > { %v1929_v39 = vsel %vm1908_vm7, %v4236_v4, %v3127_v32 }
 0x1d1   : > { %2527 = vmatmul.msk.bf16.gmra.mxu2 %vm2059_vm10, %v2016_v34  ;;  %v3091_v60 = vpop.permute.xlu1 %3090 }
 0x1d2   : > { %v3093_v43 = vunpack.i.h.bf16 %v3091_v60  ;;  %v3092_v52 = vunpack.i.l.bf16 %v3091_v60 }
 0x1d3   : > { %v3101_v33 = vpop.permute.xlu0 %3100 }
 0x1d4   : > { %v1999_v27 = vsel %vm1974_vm9, %v1966_v19, %v3092_v52  ;;  %v2000_v36 = vsel %vm1974_vm9, %v1967_v38, %v3093_v43  ;;  %v3103_v9 = vunpack.i.h.bf16 %v3101_v33  ;;  %v3102_v20 = vunpack.i.l.bf16 %v3101_v33 }
 0x1d5   : > { %v2019_v12 = vpack.c.bf16 %v2000_v36, %v1999_v27  ;;  %v3143_v27 = vunpack.i.h.bf16 %v3141_v59  ;;  %v3142_v36 = vunpack.i.l.bf16 %v3141_v59 }
 0x1d6   : > { %v1921_v31 = vsel %vm1908_vm7, %v4292_v5, %v3102_v20  ;;  %v1922_v61 = vsel %vm1908_vm7, %v4296_v29, %v3103_v9  ;;  %v3128_v5 = vunpack.i.h.bf16 %v3126_v54 }
 0x1d7   : > { %2530 = vmatmul.msk.bf16.vlgmr.msra.gmra.mxu3 %vm2059_vm10, %v2019_v12  ;;  %v1954_v40 = vsel %vm1941_vm8, %v1921_v31, %v3112_v58  ;;  %v1955_v49 = vsel %vm1941_vm8, %v1922_v61, %v3113_v55  ;;  %v3156_v33 = vpop.permute.xlu2 %3155 }
 0x1d8   : > { %v1930_v53 = vsel %vm1908_vm7, %v4239_v56, %v3128_v5  ;;  %v3158_v20 = vunpack.i.h.bf16 %v3156_v33 }
 0x1d9   : > { %v3106_v37 = vpop.permute.xlu1 %3105 }
 0x1da   : > { %v3108_v22 = vunpack.i.h.bf16 %v3106_v37  ;;  %v3107_v28 = vunpack.i.l.bf16 %v3106_v37 }
 0x1db   : > { %v3116_v1 = vpop.permute.xlu0 %3115 }
 0x1dc   : > { %v1948_v57 = vsel %vm1941_vm8, %v1915_v3, %v3107_v28  ;;  %v1949_v10 = vsel %vm1941_vm8, %v1916_v41, %v3108_v22  ;;  %v3118_v15 = vunpack.i.h.bf16 %v3116_v1  ;;  %v3117_v50 = vunpack.i.l.bf16 %v3116_v1 }
 0x1de   : > { %v1981_v11 = vsel %vm1974_vm9, %v1948_v57, %v3117_v50  ;;  %v1982_v16 = vsel %vm1974_vm9, %v1949_v10, %v3118_v15  ;;  %v1924_v50 = vsel %vm1908_vm7, %v4213_v63, %v3158_v20 }
 0x1df   : > { %v2010_v14 = vpack.c.bf16 %v1982_v16, %v1981_v11  ;;  %v3171_v1 = vpop.permute.xlu2 %3170 }
 0x1e1   : > { %2521 = vmatmul.msk.bf16.gmra.mxu0 %vm2059_vm10, %v2010_v14  ;;  %v3121_v21 = vpop.permute.xlu1 %3120 }
 0x1e2   : > { %v3123_v6 = vunpack.i.h.bf16 %v3121_v21  ;;  %v3122_v44 = vunpack.i.l.bf16 %v3121_v21 }
 0x1e3   : > { %v3131_v17 = vpop.permute.xlu0 %3130 }
 0x1e4   : > { %v1987_v46 = vsel %vm1974_vm9, %v1954_v40, %v3122_v44  ;;  %v1988_v30 = vsel %vm1974_vm9, %v1955_v49, %v3123_v6  ;;  %v3133_v13 = vunpack.i.h.bf16 %v3131_v17  ;;  %v3132_v34 = vunpack.i.l.bf16 %v3131_v17 }
 0x1e5   : > { %v2013_v0 = vpack.c.bf16 %v1988_v30, %v1987_v46  ;;  %v3173_v6 = vunpack.i.h.bf16 %v3171_v1  ;;  %v3172_v44 = vunpack.i.l.bf16 %v3171_v1 }
 0x1e6   : > { %v1935_v56 = vsel %vm1908_vm7, %v4256_v23, %v3132_v34  ;;  %v1936_v12 = vsel %vm1908_vm7, %v4259_v7, %v3133_v13  ;;  %v3157_v23 = vunpack.i.l.bf16 %v3156_v33 }
 0x1e7   : > { %2524 = vmatmul.msk.bf16.gmra.mxu1 %vm2059_vm10, %v2013_v0  ;;  %v1968_v22 = vsel %vm1941_vm8, %v1935_v56, %v3142_v36  ;;  %v1969_v28 = vsel %vm1941_vm8, %v1936_v12, %v3143_v27  ;;  %v1931_v40 = vsel %vm1908_vm7, %v4317_v35, %v3172_v44  ;;  %v1932_v49 = vsel %vm1908_vm7, %v4321_v2, %v3173_v6 }
 0x1e8   : > { %v1923_v15 = vsel %vm1908_vm7, %v4210_v45, %v3157_v23  ;;  %v3186_v45 = vpop.permute.xlu2 %3185 }
 0x1e9   : > { %v3136_v29 = vpop.permute.xlu1 %3135  ;;  %v3187_v13 = vunpack.i.l.bf16 %v3186_v45 }
 0x1ea   : > { %v3138_v18 = vunpack.i.h.bf16 %v3136_v29  ;;  %v3137_v8 = vunpack.i.l.bf16 %v3136_v29 }
 0x1eb   : > { %v3146_v47 = vpop.permute.xlu0 %3145 }
 0x1ec   : > { %v1962_v24 = vsel %vm1941_vm8, %v1929_v39, %v3137_v8  ;;  %v1963_v60 = vsel %vm1941_vm8, %v1930_v53, %v3138_v18  ;;  %v3148_v43 = vunpack.i.h.bf16 %v3146_v47  ;;  %v3147_v52 = vunpack.i.l.bf16 %v3146_v47 }
 0x1ed   : > { %v3188_v53 = vunpack.i.h.bf16 %v3186_v45 }
 0x1ee   : > { %v1995_v19 = vsel %vm1974_vm9, %v1962_v24, %v3147_v52  ;;  %v1996_v38 = vsel %vm1974_vm9, %v1963_v60, %v3148_v43 }
 0x1ef   : > { %v2017_v4 = vpack.c.bf16 %v1996_v38, %v1995_v19 }
 0x1f0   : > { %v3201_v43 = vpop.permute.xlu2 %3200 }
 0x1f1   : > { %2528 = vmatmul.msk.bf16.gmra.mxu2 %vm2059_vm10, %v2017_v4  ;;  %v3151_v51 = vpop.permute.xlu1 %3150  ;;  %v3202_v4 = vunpack.i.l.bf16 %v3201_v43 }
 0x1f2   : > { %v3153_v25 = vunpack.i.h.bf16 %v3151_v51  ;;  %v3152_v54 = vunpack.i.l.bf16 %v3151_v51 }
 0x1f3   : > { %v3161_v37 = vpop.permute.xlu0 %3160  ;;  %v1939_v51 = vsel %vm1908_vm7, %v4350_v48, %v3202_v4 }
 0x1f4   : > { %v2001_v3 = vsel %vm1974_vm9, %v1968_v22, %v3152_v54  ;;  %v2002_v41 = vsel %vm1974_vm9, %v1969_v28, %v3153_v25  ;;  %v3163_v57 = vunpack.i.h.bf16 %v3161_v37  ;;  %v3162_v7 = vunpack.i.l.bf16 %v3161_v37 }
 0x1f5   : > { %v2020_v9 = vpack.c.bf16 %v2002_v41, %v2001_v3 }
 0x1f6   : > { %v1956_v55 = vsel %vm1941_vm8, %v1923_v15, %v3162_v7  ;;  %v1957_v58 = vsel %vm1941_vm8, %v1924_v50, %v3163_v57 }
 0x1f7   : > { %2531 = vmatmul.msk.bf16.gmra.mxu3 %vm2059_vm10, %v2020_v9 }
 0x1f9   : > { %v3166_v10 = vpop.permute.xlu1 %3165 }
 0x1fa   : > { %v3168_v11 = vunpack.i.h.bf16 %v3166_v10  ;;  %v3167_v16 = vunpack.i.l.bf16 %v3166_v10 }
 0x1fb   : > { %v3176_v14 = vpop.permute.xlu0 %3175 }
 0x1fc   : > { %v1989_v31 = vsel %vm1974_vm9, %v1956_v55, %v3167_v16  ;;  %v1990_v61 = vsel %vm1974_vm9, %v1957_v58, %v3168_v11  ;;  %v3178_v46 = vunpack.i.h.bf16 %v3176_v14  ;;  %v3177_v30 = vunpack.i.l.bf16 %v3176_v14 }
 0x1fd   : > { %v2014_v21 = vpack.c.bf16 %v1990_v61, %v1989_v31 }
 0x1fe   : > { %v1937_v35 = vsel %vm1908_vm7, %v4338_v26, %v3177_v30  ;;  %v1938_v2 = vsel %vm1908_vm7, %v4342_v42, %v3178_v46  ;;  %v3203_v26 = vunpack.i.h.bf16 %v3201_v43 }
 0x1ff   : > { %2525 = vmatmul.msk.bf16.gmra.mxu1 %vm2059_vm10, %v2014_v21  ;;  %v1970_v52 = vsel %vm1941_vm8, %v1937_v35, %v3187_v13  ;;  %v1971_v33 = vsel %vm1941_vm8, %v1938_v2, %v3188_v53 }
 0x200   : > { %v1940_v25 = vsel %vm1908_vm7, %v4354_v62, %v3203_v26 }
 0x201   : > { %v3181_v59 = vpop.permute.xlu1 %3180 }
 0x202   : > { %v3183_v17 = vunpack.i.h.bf16 %v3181_v59  ;;  %v3182_v63 = vunpack.i.l.bf16 %v3181_v59 }
 0x203   : > { %v3191_v0 = vpop.permute.xlu0 %3190 }
 0x204   : > { %v1964_v5 = vsel %vm1941_vm8, %v1931_v40, %v3182_v63  ;;  %v1965_v32 = vsel %vm1941_vm8, %v1932_v49, %v3183_v17  ;;  %v3193_v29 = vunpack.i.h.bf16 %v3191_v0  ;;  %v3192_v18 = vunpack.i.l.bf16 %v3191_v0 }
 0x206   : > { %v1997_v8 = vsel %vm1974_vm9, %v1964_v5, %v3192_v18  ;;  %v1998_v39 = vsel %vm1974_vm9, %v1965_v32, %v3193_v29 }
 0x207   : > { %v2018_v34 = vpack.c.bf16 %v1998_v39, %v1997_v8 }
 0x209   : > { %2529 = vmatmul.msk.bf16.gmra.mxu2 %vm2059_vm10, %v2018_v34  ;;  %v3196_v47 = vpop.permute.xlu1 %3195 }
 0x20a   : > { %v3198_v24 = vunpack.i.h.bf16 %v3196_v47  ;;  %v3197_v60 = vunpack.i.l.bf16 %v3196_v47 }
 0x20b   : > { %v3206_v19 = vpop.permute.xlu0 %3205 }
 0x20c   : > { %v2003_v38 = vsel %vm1974_vm9, %v1970_v52, %v3197_v60  ;;  %v2004_v27 = vsel %vm1974_vm9, %v1971_v33, %v3198_v24  ;;  %v3208_v42 = vunpack.i.h.bf16 %v3206_v19  ;;  %v3207_v56 = vunpack.i.l.bf16 %v3206_v19 }
 0x20d   : > { %v2021_v36 = vpack.c.bf16 %v2004_v27, %v2003_v38 }
 0x20e   : > { %v1972_v22 = vsel %vm1941_vm8, %v1939_v51, %v3207_v56  ;;  %v1973_v28 = vsel %vm1941_vm8, %v1940_v25, %v3208_v42 }
 0x20f   : > { %2532 = vmatmul.msk.bf16.gmra.mxu3 %vm2059_vm10, %v2021_v36 }
 0x211   : > { %v3211_v12 = vpop.permute.xlu1 %3210 }
 0x212   : > { %v3213_v54 = vunpack.i.h.bf16 %v3211_v12  ;;  %v3212_v37 = vunpack.i.l.bf16 %v3211_v12 }
 0x214   : > { %v2005_v3 = vsel %vm1974_vm9, %v1972_v22, %v3212_v37  ;;  %v2006_v41 = vsel %vm1974_vm9, %v1973_v28, %v3213_v54 }
 0x215   : > { %v2022_v9 = vpack.c.bf16 %v2006_v41, %v2005_v3 }
 0x21c   : > { %v2121_v48 = vpop.f32.mrf.mxu0 }
 0x21d   : > { %2201 = vst.msk [vmem:[%s4541_s22] sm:$0xff] %vm342_vm0, %v2121_v48  ;;  %v2302_v62 = vmul.f32 %v2121_v48, %v2121_v48  ;;  %v2233_v23 = vsel %vm342_vm0, %v2121_v48, 0.0 }
 0x21f   : > { %2533 = vmatmul.msk.bf16.gmra.mxu3 %vm2059_vm10, %v2022_v9  ;;  %v2334_v10 = vsel %vm342_vm0, %v2302_v62, 0.0 }
 0x224   : > { %v2123_v20 = vpop.f32.mrf.mxu0 }
 0x225   : > { %2202 = vst.msk [vmem:[%s4541_s22 + $0x8] sm:$0xff] %vm342_vm0, %v2123_v20  ;;  %v2234_v1 = vsel %vm342_vm0, %v2123_v20, 0.0  ;;  %v2303_v57 = vmul.f32 %v2123_v20, %v2123_v20 }
 0x226   : > { %v2235_v7 = vadd.f32 %v2234_v1, %v2233_v23 }
 0x227   : > { %v2335_v15 = vsel %vm342_vm0, %v2303_v57, 0.0 }
 0x228   : > { %v2336_v50 = vadd.f32 %v2335_v15, %v2334_v10 }
 0x22c   : > { %v2126_v11 = vpop.f32.mrf.mxu0  ;;  %v2141_v16 = vpop.f32.mrf.mxu1 }
 0x22d   : > { %2203 = vst.msk [vmem:[%s4541_s22 + $0x10] sm:$0xff] %vm342_vm0, %v2126_v11  ;;  %v2236_v55 = vsel %vm342_vm0, %v2126_v11, 0.0  ;;  %v2304_v58 = vmul.f32 %v2126_v11, %v2126_v11  ;;  %v2310_v4 = vmul.f32 %v2141_v16, %v2141_v16  ;;  %v2248_v25 = vsel %vm342_vm0, %v2141_v16, 0.0 }
 0x22e   : > { %v2237_v14 = vadd.f32 %v2236_v55, %v2235_v7  ;;  %2209 = vst.msk [vmem:[%s4541_s22 + $0x40] sm:$0xff] %vm342_vm0, %v2141_v16 }
 0x22f   : > { %v2337_v31 = vsel %vm342_vm0, %v2304_v58, 0.0  ;;  %v2349_v3 = vsel %vm342_vm0, %v2310_v4, 0.0 }
 0x230   : > { %v2338_v61 = vadd.f32 %v2337_v31, %v2336_v50 }
 0x234   : > { %v2128_v21 = vpop.f32.mrf.mxu0  ;;  %v2143_v6 = vpop.f32.mrf.mxu1 }
 0x235   : > { %2204 = vst.msk [vmem:[%s4541_s22 + $0x18] sm:$0xff] %vm342_vm0, %v2128_v21  ;;  %v2238_v44 = vsel %vm342_vm0, %v2128_v21, 0.0  ;;  %v2305_v5 = vmul.f32 %v2128_v21, %v2128_v21  ;;  %v2311_v54 = vmul.f32 %v2143_v6, %v2143_v6  ;;  %v2250_v41 = vsel %vm342_vm0, %v2143_v6, 0.0 }
 0x236   : > { %v2239_v45 = vadd.f32 %v2238_v44, %v2237_v14  ;;  %2210 = vst.msk [vmem:[%s4541_s22 + $0x48] sm:$0xff] %vm342_vm0, %v2143_v6 }
 0x237   : > { %v2339_v8 = vsel %vm342_vm0, %v2305_v5, 0.0  ;;  %v2351_v20 = vsel %vm342_vm0, %v2311_v54, 0.0 }
 0x238   : > { %v2340_v2 = vadd.f32 %v2339_v8, %v2338_v61 }
 0x23a   : > { %v4563_v59 = vpop.f32.mrf.mxu2 }
 0x23b   : > { %2217 = vst.msk [vmem:[%s4541_s22 + $0x80] sm:$0xff] %vm342_vm0, %v4563_v59 }
 0x23e   : > { %v2131_v17 = vpop.f32.mrf.mxu0 }
 0x23f   : > { %2205 = vst.msk [vmem:[%s4541_s22 + $0x20] sm:$0xff] %vm342_vm0, %v2131_v17  ;;  %v2306_v29 = vmul.f32 %v2131_v17, %v2131_v17  ;;  %v2240_v39 = vsel %vm342_vm0, %v2131_v17, 0.0 }
 0x240   : > { %v2241_v47 = vadd.f32 %v2240_v39, %v2239_v45 }
 0x241   : > { %v2341_v13 = vsel %vm342_vm0, %v2306_v29, 0.0 }
 0x242   : > { %v4570_v63 = vpop.f32.mrf.mxu2  ;;  %v2342_v52 = vadd.f32 %v2341_v13, %v2340_v2  ;;  %v2318_v2 = vmul.f32 %v4563_v59, %v4563_v59 }
 0x243   : > { %2218 = vst.msk [vmem:[%s4541_s22 + $0x88] sm:$0xff] %vm342_vm0, %v4570_v63  ;;  %v2266_v4 = vsel %vm342_vm0, %v4570_v63, 0.0 }
 0x244   : > { %v2146_v40 = vpop.f32.mrf.mxu1 }
 0x245   : > { %2211 = vst.msk [vmem:[%s4541_s22 + $0x50] sm:$0xff] %vm342_vm0, %v2146_v40  ;;  %v2312_v1 = vmul.f32 %v2146_v40, %v2146_v40  ;;  %v2252_v7 = vsel %vm342_vm0, %v2146_v40, 0.0 }
 0x246   : > { %v2133_v49 = vpop.f32.mrf.mxu0 }
 0x247   : > { %2206 = vst.msk [vmem:[%s4541_s22 + $0x28] sm:$0xff] %vm342_vm0, %v2133_v49  ;;  %v2307_v53 = vmul.f32 %v2133_v49, %v2133_v49  ;;  %v2242_v34 = vsel %vm342_vm0, %v2133_v49, 0.0  ;;  %v2353_v15 = vsel %vm342_vm0, %v2312_v1, 0.0 }
 0x248   : > { %v2243_v33 = vadd.f32 %v2242_v34, %v2241_v47 }
 0x249   : > { %v2343_v60 = vsel %vm342_vm0, %v2307_v53, 0.0 }
 0x24a   : > { %v2344_v27 = vadd.f32 %v2343_v60, %v2342_v52 }
 0x24c   : > { %v2148_v46 = vpop.f32.mrf.mxu1 }
 0x24d   : > { %2212 = vst.msk [vmem:[%s4541_s22 + $0x58] sm:$0xff] %vm342_vm0, %v2148_v46  ;;  %v2313_v50 = vmul.f32 %v2148_v46, %v2148_v46  ;;  %v2254_v16 = vsel %vm342_vm0, %v2148_v46, 0.0 }
 0x24f   : > { %v2355_v14 = vsel %vm342_vm0, %v2313_v50, 0.0 }
 0x254   : > { %v4581_v30 = vpop.f32.mrf.mxu2 }
 0x255   : > { %2219 = vst.msk [vmem:[%s4541_s22 + $0x90] sm:$0xff] %vm342_vm0, %v4581_v30 }
 0x25a   : > { %v4586_v0 = vpop.f32.mrf.mxu3 }
 0x25b   : > { %2225 = vst.msk [vmem:[%s4541_s22 + $0xc0] sm:$0xff] %vm342_vm0, %v4586_v0 }
 0x25c   : > { %v4591_v32 = vpop.f32.mrf.mxu2 }
 0x25d   : > { %2220 = vst.msk [vmem:[%s4541_s22 + $0x98] sm:$0xff] %vm342_vm0, %v4591_v32 }
 0x25e   : > { %v2136_v18 = vpop.f32.mrf.mxu0 }
 0x25f   : > { %2207 = vst.msk [vmem:[%s4541_s22 + $0x30] sm:$0xff] %vm342_vm0, %v2136_v18  ;;  %v2308_v35 = vmul.f32 %v2136_v18, %v2136_v18  ;;  %v2244_v43 = vsel %vm342_vm0, %v2136_v18, 0.0 }
 0x260   : > { %v2245_v36 = vadd.f32 %v2244_v43, %v2243_v33  ;;  %v2264_v33 = vsel %vm342_vm0, %v4563_v59, 0.0 }
 0x261   : > { %v2345_v38 = vsel %vm342_vm0, %v2308_v35, 0.0 }
 0x262   : > { %v4602_v24 = vpop.f32.mrf.mxu3  ;;  %v2346_v12 = vadd.f32 %v2345_v38, %v2344_v27 }
 0x263   : > { %2226 = vst.msk [vmem:[%s4541_s22 + $0xc8] sm:$0xff] %vm342_vm0, %v4602_v24 }
 0x264   : > { %v2151_v19 = vpop.f32.mrf.mxu1 }
 0x265   : > { %2213 = vst.msk [vmem:[%s4541_s22 + $0x60] sm:$0xff] %vm342_vm0, %v2151_v19  ;;  %v2314_v31 = vmul.f32 %v2151_v19, %v2151_v19  ;;  %v2256_v44 = vsel %vm342_vm0, %v2151_v19, 0.0  ;;  %v2319_v19 = vmul.f32 %v4570_v63, %v4570_v63  ;;  %v2270_v63 = vsel %vm342_vm0, %v4591_v32, 0.0 }
 0x266   : > { %v2138_v26 = vpop.f32.mrf.mxu0 }
 0x267   : > { %2208 = vst.msk [vmem:[%s4541_s22 + $0x38] sm:$0xff] %vm342_vm0, %v2138_v26  ;;  %v2246_v42 = vsel %vm342_vm0, %v2138_v26, 0.0  ;;  %v2309_v56 = vmul.f32 %v2138_v26, %v2138_v26  ;;  %v2357_v17 = vsel %vm342_vm0, %v2314_v31, 0.0  ;;  %v2365_v26 = vsel %vm342_vm0, %v2318_v2, 0.0 }
 0x268   : > { %v2247_v51 = vadd.f32 %v2246_v42, %v2245_v36  ;;  %v2320_v42 = vmul.f32 %v4581_v30, %v4581_v30  ;;  %v2367_v59 = vsel %vm342_vm0, %v2319_v19, 0.0  ;;  %v2326_v31 = vmul.f32 %v4586_v0, %v4586_v0 }
 0x269   : > { %v2347_v37 = vsel %vm342_vm0, %v2309_v56, 0.0 }
 0x26a   : > { %v2249_v22 = vadd.f32 %v2248_v25, %v2247_v51  ;;  %v2348_v28 = vadd.f32 %v2347_v37, %v2346_v12  ;;  %v2268_v51 = vsel %vm342_vm0, %v4581_v30, 0.0  ;;  %v2321_v25 = vmul.f32 %v4591_v32, %v4591_v32 }
 0x26c   : > { %v2251_v9 = vadd.f32 %v2250_v41, %v2249_v22  ;;  %v2350_v48 = vadd.f32 %v2349_v3, %v2348_v28  ;;  %v2153_v62 = vpop.f32.mrf.mxu1  ;;  %v2369_v28 = vsel %vm342_vm0, %v2320_v42, 0.0  ;;  %v2371_v30 = vsel %vm342_vm0, %v2321_v25, 0.0 }
 0x26d   : > { %2214 = vst.msk [vmem:[%s4541_s22 + $0x68] sm:$0xff] %vm342_vm0, %v2153_v62  ;;  %v2315_v40 = vmul.f32 %v2153_v62, %v2153_v62  ;;  %v2258_v5 = vsel %vm342_vm0, %v2153_v62, 0.0 }
 0x26e   : > { %v2352_v23 = vadd.f32 %v2351_v20, %v2350_v48  ;;  %v2253_v10 = vadd.f32 %v2252_v7, %v2251_v9 }
 0x26f   : > { %v2359_v39 = vsel %vm342_vm0, %v2315_v40, 0.0  ;;  %v2327_v40 = vmul.f32 %v4602_v24, %v4602_v24 }
 0x270   : > { %v2354_v11 = vadd.f32 %v2353_v15, %v2352_v23  ;;  %v2255_v55 = vadd.f32 %v2254_v16, %v2253_v10 }
 0x272   : > { %v2356_v61 = vadd.f32 %v2355_v14, %v2354_v11  ;;  %v2257_v45 = vadd.f32 %v2256_v44, %v2255_v55 }
 0x274   : > { %v4622_v57 = vpop.f32.mrf.mxu2  ;;  %v2358_v46 = vadd.f32 %v2357_v17, %v2356_v61  ;;  %v2259_v18 = vadd.f32 %v2258_v5, %v2257_v45  ;;  %v2280_v17 = vsel %vm342_vm0, %v4586_v0, 0.0  ;;  %v2383_v0 = vsel %vm342_vm0, %v2327_v40, 0.0 }
 0x275   : > { %2221 = vst.msk [vmem:[%s4541_s22 + $0xa0] sm:$0xff] %vm342_vm0, %v4622_v57  ;;  %v2322_v3 = vmul.f32 %v4622_v57, %v4622_v57  ;;  %v2272_v48 = vsel %vm342_vm0, %v4622_v57, 0.0 }
 0x276   : > { %v2360_v13 = vadd.f32 %v2359_v39, %v2358_v46 }
 0x277   : > { %v2373_v1 = vsel %vm342_vm0, %v2322_v3, 0.0 }
 0x27a   : > { %v4630_v58 = vpop.f32.mrf.mxu3 }
 0x27b   : > { %2227 = vst.msk [vmem:[%s4541_s22 + $0xd0] sm:$0xff] %vm342_vm0, %v4630_v58  ;;  %v2328_v39 = vmul.f32 %v4630_v58, %v4630_v58 }
 0x27c   : > { %v2173_v21 = vpop.f32.mrf.mxu2  ;;  %v2156_v6 = vpop.f32.mrf.mxu1 }
 0x27d   : > { %2222 = vst.msk [vmem:[%s4541_s22 + $0xa8] sm:$0xff] %vm342_vm0, %v2173_v21  ;;  %v2316_v49 = vmul.f32 %v2156_v6, %v2156_v6  ;;  %v2260_v29 = vsel %vm342_vm0, %v2156_v6, 0.0  ;;  %v2323_v62 = vmul.f32 %v2173_v21, %v2173_v21  ;;  %v2274_v32 = vsel %vm342_vm0, %v2173_v21, 0.0 }
 0x27e   : > { %2215 = vst.msk [vmem:[%s4541_s22 + $0x70] sm:$0xff] %vm342_vm0, %v2156_v6  ;;  %v2261_v34 = vadd.f32 %v2260_v29, %v2259_v18  ;;  %v2381_v29 = vsel %vm342_vm0, %v2326_v31, 0.0  ;;  %v2282_v18 = vsel %vm342_vm0, %v4602_v24, 0.0  ;;  %v2385_v24 = vsel %vm342_vm0, %v2328_v39, 0.0 }
 0x27f   : > { %v2361_v53 = vsel %vm342_vm0, %v2316_v49, 0.0  ;;  %v2375_v11 = vsel %vm342_vm0, %v2323_v62, 0.0 }
 0x280   : > { %v2362_v43 = vadd.f32 %v2361_v53, %v2360_v13 }
 0x282   : > { %v4644_v8 = vpop.f32.mrf.mxu3 }
 0x283   : > { %2228 = vst.msk [vmem:[%s4541_s22 + $0xd8] sm:$0xff] %vm342_vm0, %v4644_v8  ;;  %v2329_v2 = vmul.f32 %v4644_v8, %v4644_v8 }
 0x284   : > { %v2158_v35 = vpop.f32.mrf.mxu1 }
 0x285   : > { %2216 = vst.msk [vmem:[%s4541_s22 + $0x78] sm:$0xff] %vm342_vm0, %v2158_v35  ;;  %v2262_v47 = vsel %vm342_vm0, %v2158_v35, 0.0  ;;  %v2317_v60 = vmul.f32 %v2158_v35, %v2158_v35  ;;  %v2284_v35 = vsel %vm342_vm0, %v4630_v58, 0.0  ;;  %v2387_v19 = vsel %vm342_vm0, %v2329_v2, 0.0 }
 0x286   : > { %v2263_v52 = vadd.f32 %v2262_v47, %v2261_v34 }
 0x287   : > { %v2363_v38 = vsel %vm342_vm0, %v2317_v60, 0.0 }
 0x288   : > { %v2265_v27 = vadd.f32 %v2264_v33, %v2263_v52  ;;  %v2364_v36 = vadd.f32 %v2363_v38, %v2362_v43  ;;  %v2286_v43 = vsel %vm342_vm0, %v4644_v8, 0.0 }
 0x28a   : > { %v2267_v56 = vadd.f32 %v2266_v4, %v2265_v27  ;;  %v2366_v12 = vadd.f32 %v2365_v26, %v2364_v36 }
 0x28c   : > { %v2269_v54 = vadd.f32 %v2268_v51, %v2267_v56  ;;  %v2368_v37 = vadd.f32 %v2367_v59, %v2366_v12  ;;  %v2176_v22 = vpop.f32.mrf.mxu2 }
 0x28d   : > { %2223 = vst.msk [vmem:[%s4541_s22 + $0xb0] sm:$0xff] %vm342_vm0, %v2176_v22  ;;  %v2324_v7 = vmul.f32 %v2176_v22, %v2176_v22  ;;  %v2276_v16 = vsel %vm342_vm0, %v2176_v22, 0.0 }
 0x28e   : > { %v2370_v41 = vadd.f32 %v2369_v28, %v2368_v37  ;;  %v2271_v9 = vadd.f32 %v2270_v63, %v2269_v54 }
 0x28f   : > { %v2377_v61 = vsel %vm342_vm0, %v2324_v7, 0.0 }
 0x290   : > { %v2273_v20 = vadd.f32 %v2272_v48, %v2271_v9  ;;  %v2372_v23 = vadd.f32 %v2371_v30, %v2370_v41 }
 0x292   : > { %v2275_v10 = vadd.f32 %v2274_v32, %v2273_v20  ;;  %v2374_v15 = vadd.f32 %v2373_v1, %v2372_v23  ;;  %v2191_v50 = vpop.f32.mrf.mxu3 }
 0x293   : > { %2229 = vst.msk [vmem:[%s4541_s22 + $0xe0] sm:$0xff] %vm342_vm0, %v2191_v50  ;;  %v2330_v38 = vmul.f32 %v2191_v50, %v2191_v50  ;;  %v2288_v58 = vsel %vm342_vm0, %v2191_v50, 0.0 }
 0x294   : > { %v2277_v55 = vadd.f32 %v2276_v16, %v2275_v10  ;;  %v2376_v57 = vadd.f32 %v2375_v11, %v2374_v15  ;;  %v2178_v14 = vpop.f32.mrf.mxu2 }
 0x295   : > { %2224 = vst.msk [vmem:[%s4541_s22 + $0xb8] sm:$0xff] %vm342_vm0, %v2178_v14  ;;  %v2278_v21 = vsel %vm342_vm0, %v2178_v14, 0.0  ;;  %v2325_v6 = vmul.f32 %v2178_v14, %v2178_v14  ;;  %v2389_v4 = vsel %vm342_vm0, %v2330_v38, 0.0 }
 0x296   : > { %v2378_v44 = vadd.f32 %v2377_v61, %v2376_v57  ;;  %v2279_v45 = vadd.f32 %v2278_v21, %v2277_v55 }
 0x297   : > { %v2379_v49 = vsel %vm342_vm0, %v2325_v6, 0.0 }
 0x298   : > { %v2281_v46 = vadd.f32 %v2280_v17, %v2279_v45  ;;  %v2380_v5 = vadd.f32 %v2379_v49, %v2378_v44 }
 0x29a   : > { %v2283_v53 = vadd.f32 %v2282_v18, %v2281_v46  ;;  %v2382_v13 = vadd.f32 %v2381_v29, %v2380_v5  ;;  %v2193_v34 = vpop.f32.mrf.mxu3 }
 0x29b   : > { %2230 = vst.msk [vmem:[%s4541_s22 + $0xe8] sm:$0xff] %vm342_vm0, %v2193_v34  ;;  %v2331_v42 = vmul.f32 %v2193_v34, %v2193_v34  ;;  %v2290_v12 = vsel %vm342_vm0, %v2193_v34, 0.0 }
 0x29c   : > { %v2285_v47 = vadd.f32 %v2284_v35, %v2283_v53  ;;  %v2384_v60 = vadd.f32 %v2383_v0, %v2382_v13 }
 0x29d   : > { %v2391_v51 = vsel %vm342_vm0, %v2331_v42, 0.0 }
 0x29e   : > { %v2386_v52 = vadd.f32 %v2385_v24, %v2384_v60  ;;  %v2287_v33 = vadd.f32 %v2286_v43, %v2285_v47 }
 0x2a0   : > { %v2388_v27 = vadd.f32 %v2387_v19, %v2386_v52  ;;  %v2289_v36 = vadd.f32 %v2288_v58, %v2287_v33 }
 0x2a2   : > { %v2196_v26 = vpop.f32.mrf.mxu3  ;;  %v2390_v56 = vadd.f32 %v2389_v4, %v2388_v27  ;;  %v2291_v59 = vadd.f32 %v2290_v12, %v2289_v36 }
 0x2a3   : > { %2231 = vst.msk [vmem:[%s4541_s22 + $0xf0] sm:$0xff] %vm342_vm0, %v2196_v26  ;;  %v2332_v8 = vmul.f32 %v2196_v26, %v2196_v26  ;;  %v2292_v25 = vsel %vm342_vm0, %v2196_v26, 0.0 }
 0x2a4   : > { %v2392_v54 = vadd.f32 %v2391_v51, %v2390_v56  ;;  %v2293_v22 = vadd.f32 %v2292_v25, %v2291_v59 }
 0x2a5   : > { %v2393_v37 = vsel %vm342_vm0, %v2332_v8, 0.0 }
 0x2a6   : > { %v2394_v41 = vadd.f32 %v2393_v37, %v2392_v54 }
 0x2aa   : > { %v2198_v28 = vpop.f32.mrf.mxu3 }
 0x2ab   : > { %2232 = vst.msk [vmem:[%s4541_s22 + $0xf8] sm:$0xff] %vm342_vm0, %v2198_v28  ;;  %v2294_v63 = vsel %vm342_vm0, %v2198_v28, 0.0  ;;  %v2333_v3 = vmul.f32 %v2198_v28, %v2198_v28 }
 0x2ac   : > { %v2295_v9 = vadd.f32 %v2294_v63, %v2293_v22 }
 0x2ad   : > { %v2395_v30 = vsel %vm342_vm0, %v2333_v3, 0.0 }
 0x2ae   : > { %v2296_v48 = vrot.slane %v2295_v9, 4  ;;  %v2396_v62 = vadd.f32 %v2395_v30, %v2394_v41 }
 0x2b0   : > { %v2297_v20 = vadd.f32 %v2296_v48, %v2295_v9  ;;  %v2397_v23 = vrot.slane %v2396_v62, 4 }
 0x2b2   : > { %v2298_v1 = vrot.slane %v2297_v20, 2  ;;  %v2398_v32 = vadd.f32 %v2397_v23, %v2396_v62 }
 0x2b4   : > { %v2299_v7 = vadd.f32 %v2298_v1, %v2297_v20  ;;  %v2399_v10 = vrot.slane %v2398_v32, 2 }
 0x2b6   : > { %v2300_v15 = vrot.slane %v2299_v7, 1  ;;  %v2400_v50 = vadd.f32 %v2399_v10, %v2398_v32 }
 0x2b8   : > { %v2401_v11 = vrot.slane %v2400_v50, 1  ;;  %v2301_v16 = vadd.f32 %v2300_v15, %v2299_v7 }
 0x2ba   : > { %v2402_v55 = vadd.f32 %v2401_v11, %v2400_v50 }
 0x2bc   : > { %v2404_v57 = vsel %vm2403_vm11, %v2301_v16, %v2402_v55 }
 0x2bd   : > { %2405 = vst.msk [vmem:[%s208_s25] sm:$0x3] %vm345_vm1, %v2404_v57 }
 0x2be PF: > { %s15_s15 = sadd.s32 1, %s3222_s15  }
 0x2bf   : > { %p12_p4 = scmp.ge.s32.totalorder %s15_s15, 4  }
 0x2c1   :  { %14 = sbr.rel (!%p12_p4) target bundleno = 1 (0x1), region = 76 }

</bundles_post_ra>
